<compile_context>
chip_gen: v5e
topology: v5e:2x2
jax: 0.10.0
libtpu: 0.0.40
codegen_flags: <defaults>
</compile_context>

<pallas_src>
import functools

import jax
import jax.numpy as jnp
from jax.experimental import pallas as pl
from jax.experimental.pallas import tpu as pltpu

# ----------------------- small, config-consistent sizes ----------------------
VOCAB = 96
PADDED_VOCAB = 128          # util.ceil(vocab_size, 64)
D_MODEL = 32
D_KEY = 16
N_HEAD = D_MODEL // D_KEY   # 2
D_FF = 4 * D_MODEL          # d_ff_mult = 4
N_LAYERS = 2
CONTEXT = 16
BATCH = 2
SEQ = 8
EPS = 1e-5                  # nn.LayerNorm default
NEG_INF = -1e30


# ------------------------------ kernel helpers -------------------------------
def _ln(x, g, b):
    # variance as E[x^2] - mu^2: the two row-reductions are independent and
    # can overlap in the XLU FIFO (vs the serialized mean -> centered-var form)
    mu = jnp.mean(x, axis=-1, keepdims=True)
    var = jnp.mean(x * x, axis=-1, keepdims=True) - mu * mu
    return (x - mu) * jax.lax.rsqrt(var + EPS) * g + b


def _linear(x, w):
    # x: [M, d_in], w: [d_out, d_in]  ->  [M, d_out]   (== x @ w.T, F.linear)
    return jax.lax.dot_general(
        x, w, (((1,), (1,)), ((), ())), preferred_element_type=jnp.float32)


# --------------------------- fully fused forward kernel -----------------------
def fused_forward_kernel(tok_ref, emb_ref, pos_ref, bias_ref,
                         wqkv_ref, wo_ref, w1_ref, w2_ref,
                         ln1_ref, qln_ref, kln_ref, ln2_ref,
                         lnf_ref, wlog_ref, out_ref,
                         *, d_k, n_h, n_layers):
    BT = out_ref.shape[0]

    # ---- embedding gather as one-hot matmul (MXU; no dynamic VMEM indexing) --
    toks = tok_ref[...]                                          # [BT, 1] int32
    vocab = emb_ref.shape[0]
    vocab_iota = jax.lax.broadcasted_iota(jnp.int32, (BT, vocab), 1)
    onehot = (toks == vocab_iota).astype(jnp.float32)            # [BT, V]
    x = jnp.dot(onehot, emb_ref[...], preferred_element_type=jnp.float32)
    x = x + pos_ref[...]                                         # pre-tiled [BT, d]

    bias = bias_ref[...]                                         # [BT, BT] 0 / -1e30

    # ---- transformer blocks (static unroll over layers, weights resident) ----
    for l in range(n_layers):
        ln1 = ln1_ref[l]                                         # [2, d]
        h = _ln(x, ln1[0], ln1[1])

        # one fused QKV matmul per layer: [BT, d] x [d, 3*n_h*d_k]
        qkv = _linear(h, wqkv_ref[l])                            # [BT, 3*n_h*d_k]

        qg = qln_ref[l]                                          # [2, d_k] (scale folded in)
        kg = kln_ref[l]
        o_heads = []
        for hh in range(n_h):                                    # static unroll (n_h = 2)
            q = _ln(qkv[:, hh * d_k:(hh + 1) * d_k], qg[0], qg[1])
            k = _ln(qkv[:, (n_h + hh) * d_k:(n_h + hh + 1) * d_k], kg[0], kg[1])
            v = qkv[:, (2 * n_h + hh) * d_k:(2 * n_h + hh + 1) * d_k]
            s = jax.lax.dot_general(q, k, (((1,), (1,)), ((), ())),
                                    preferred_element_type=jnp.float32) + bias
            s = s - jnp.max(s, axis=-1, keepdims=True)
            p = jnp.exp(s)
            p = p * pl.reciprocal(jnp.sum(p, axis=-1, keepdims=True),
                                  approx=True)
            o_heads.append(jnp.dot(p, v, preferred_element_type=jnp.float32))
        o = jnp.concatenate(o_heads, axis=-1)                    # [BT, d]
        x = x + _linear(o, wo_ref[l])                            # residual 1 (single o-proj)

        ln2 = ln2_ref[l]
        h2 = _ln(x, ln2[0], ln2[1])
        f = jnp.maximum(_linear(h2, w1_ref[l]), 0.0)
        x = x + _linear(f, w2_ref[l])                            # residual 2

    # ---- final layer norm + logits (lane-dense 128-wide store) ----
    lnf = lnf_ref[...]
    h = _ln(x, lnf[0], lnf[1])
    out_ref[...] = _linear(h, wlog_ref[...])                     # [BT, 128]


# ------------------------------- pallas wrapper -------------------------------
def _full_spec(a):
    nd = a.ndim
    return pl.BlockSpec(a.shape, lambda i, _nd=nd: (0,) * _nd)


def fused_forward(tokens, fp):
    B, T = tokens.shape
    BT = B * T
    toks = tokens.reshape(BT, 1).astype(jnp.int32)   # layout plumbing (free)
    args = (toks, fp['tok_emb'], fp['pos_tiled'], fp['mask_bias'],
            fp['wqkv'], fp['wo'], fp['w1'], fp['w2'],
            fp['ln1'], fp['qln'], fp['kln'], fp['ln2'],
            fp['lnf'], fp['wlog'])
    kernel = functools.partial(fused_forward_kernel, d_k=D_KEY,
                               n_h=N_HEAD, n_layers=N_LAYERS)
    logits = pl.pallas_call(
        kernel,
        out_shape=jax.ShapeDtypeStruct((BT, PADDED_VOCAB), jnp.float32),
        grid=(1,),
        in_specs=[_full_spec(a) for a in args],
        out_specs=pl.BlockSpec((BT, PADDED_VOCAB), lambda i: (0, 0)),
        compiler_params=pltpu.CompilerParams(
            dimension_semantics=("arbitrary",)),
    )(*args)
    return logits.reshape(B, T, PADDED_VOCAB)[:, :, :VOCAB]   # drop vocab pad


# -------------------------- params & full forward ----------------------------
def init_params(key):
    d, dff = D_MODEL, D_FF
    keys = iter(jax.random.split(key, 3 + 4 * N_LAYERS))
    std_d = d ** -0.5
    std_ff = dff ** -0.5
    params = {
        'tok_emb': jax.random.normal(next(keys), (VOCAB, d), jnp.float32),
        'pos_enc': jax.random.normal(next(keys), (CONTEXT, d), jnp.float32),
    }
    blocks = []
    for _ in range(N_LAYERS):
        blocks.append(dict(
            wqkv=std_d * jax.random.normal(next(keys), (3 * d, d), jnp.float32),
            wo=std_d * jax.random.normal(next(keys), (d, d), jnp.float32),
            w1=std_d * jax.random.normal(next(keys), (dff, d), jnp.float32),
            w2=std_ff * jax.random.normal(next(keys), (d, dff), jnp.float32),
            ln1=jnp.stack([jnp.ones(d), jnp.zeros(d)]).astype(jnp.float32),
            qln=jnp.stack([jnp.ones(D_KEY), jnp.zeros(D_KEY)]).astype(jnp.float32),
            kln=jnp.stack([jnp.ones(D_KEY), jnp.zeros(D_KEY)]).astype(jnp.float32),
            ln2=jnp.stack([jnp.ones(d), jnp.zeros(d)]).astype(jnp.float32),
        ))
    params['blocks'] = blocks
    params['logits'] = dict(
        w=std_d * jax.random.normal(next(keys), (PADDED_VOCAB, d), jnp.float32),
        ln=jnp.stack([jnp.ones(d), jnp.zeros(d)]).astype(jnp.float32),
    )
    return params


def pack_params(params, B=BATCH, T=SEQ):
    """One-time host-side transform: stacked weights + folded scale + tiled
    position encoding + precomputed block-diagonal causal bias."""
    scale = D_KEY ** -0.5     # folded into q-LN gamma AND beta (LN after the
                              # projection is scale-invariant, so Wq can't carry it)
    wqkv, wo, w1, w2, ln1, qln, kln, ln2 = ([] for _ in range(8))
    for blk in params['blocks']:
        wqkv.append(blk['wqkv'])               # [3*n_h*d_k, d] fused QKV weight
        wo.append(blk['wo'])                   # [d, d] single o-projection
        w1.append(blk['w1'])
        w2.append(blk['w2'])
        ln1.append(blk['ln1'])
        qln.append(blk['qln'] * scale)         # gamma & beta scaled by 1/sqrt(d_k)
        kln.append(blk['kln'])
        ln2.append(blk['ln2'])
    st = lambda xs: jnp.stack(xs)

    BT = B * T
    # pre-tiled position encoding: [BT, d]
    pos_tiled = jnp.tile(params['pos_enc'][:T], (B, 1))
    # block-diagonal causal mask as additive bias: 0 allowed / -1e30 masked
    row = jnp.arange(BT)[:, None]
    col = jnp.arange(BT)[None, :]
    allowed = ((row // T) == (col // T)) & (row >= col)
    mask_bias = jnp.where(allowed, 0.0, NEG_INF).astype(jnp.float32)

    return dict(
        tok_emb=params['tok_emb'], pos_tiled=pos_tiled, mask_bias=mask_bias,
        wqkv=st(wqkv), wo=st(wo), w1=st(w1), w2=st(w2),
        ln1=st(ln1), qln=st(qln), kln=st(kln), ln2=st(ln2),
        lnf=params['logits']['ln'], wlog=params['logits']['w'])


@jax.jit
def forward(tokens, packed):
    return fused_forward(tokens, packed)


# ------------------------------ pure-JAX reference ---------------------------
def ref_forward(tokens, params):
    def ln(x, w):
        g, b = w[0], w[1]
        mu = x.mean(-1, keepdims=True)
        var = ((x - mu) ** 2).mean(-1, keepdims=True)
        return (x - mu) / jnp.sqrt(var + EPS) * g + b

    T = tokens.shape[1]
    x = params['tok_emb'][tokens] + params['pos_enc'][:T]
    B, _, d = x.shape
    for blk in params['blocks']:
        h = ln(x, blk['ln1'])
        qkv = (h @ blk['wqkv'].T).reshape(B, T, 3 * N_HEAD, D_KEY)
        q, k, v = (qkv[:, :, :N_HEAD], qkv[:, :, N_HEAD:2 * N_HEAD],
                   qkv[:, :, 2 * N_HEAD:])
        q = ln(q, blk['qln']).transpose(0, 2, 1, 3)
        k = ln(k, blk['kln']).transpose(0, 2, 1, 3)
        v = v.transpose(0, 2, 1, 3)
        s = jnp.einsum('bhtd,bhsd->bhts', q, k) / (D_KEY ** 0.5)
        mask = jnp.tril(jnp.ones((T, T), bool))
        s = jnp.where(mask, s, -1e30)
        p = jax.nn.softmax(s, axis=-1)
        o = jnp.einsum('bhts,bhsd->bhtd', p, v).transpose(0, 2, 1, 3)
        x = x + o.reshape(B, T, d) @ blk['wo'].T
        h2 = ln(x, blk['ln2'])
        x = x + jnp.maximum(h2 @ blk['w1'].T, 0.0) @ blk['w2'].T
    logits = ln(x, params['logits']['ln']) @ params['logits']['w'].T
    return logits[:, :, :VOCAB]


# ------------------------------------ main ------------------------------------
if __name__ == "__main__":
    key = jax.random.PRNGKey(0)
    pkey, tkey = jax.random.split(key)
    params = init_params(pkey)
    packed = pack_params(params)
    tokens = jax.random.randint(tkey, (BATCH, SEQ), 0, VOCAB, dtype=jnp.int32)

    out = forward(tokens, packed)
    out = jax.block_until_ready(out)
    assert out.shape == (BATCH, SEQ, VOCAB), out.shape

    ref = jax.block_until_ready(ref_forward(tokens, params))
    max_err = float(jnp.max(jnp.abs(out - ref)))
    assert max_err < 1e-2, f"mismatch vs reference: max abs err = {max_err}"

    print("KERNEL_OK")
</pallas_src>

<mosaic_0001>
module attributes {stable_mosaic.version = 11 : i64} {
  func.func @fused_forward_kernel(%arg0: i32, %arg1: memref<16x1xi32, #tpu.memory_space<vmem>>, %arg2: memref<96x32xf32, #tpu.memory_space<vmem>>, %arg3: memref<16x32xf32, #tpu.memory_space<vmem>>, %arg4: memref<16x16xf32, #tpu.memory_space<vmem>>, %arg5: memref<2x96x32xf32, #tpu.memory_space<vmem>>, %arg6: memref<2x32x32xf32, #tpu.memory_space<vmem>>, %arg7: memref<2x128x32xf32, #tpu.memory_space<vmem>>, %arg8: memref<2x32x128xf32, #tpu.memory_space<vmem>>, %arg9: memref<2x2x32xf32, #tpu.memory_space<vmem>>, %arg10: memref<2x2x16xf32, #tpu.memory_space<vmem>>, %arg11: memref<2x2x16xf32, #tpu.memory_space<vmem>>, %arg12: memref<2x2x32xf32, #tpu.memory_space<vmem>>, %arg13: memref<2x32xf32, #tpu.memory_space<vmem>>, %arg14: memref<128x32xf32, #tpu.memory_space<vmem>>, %arg15: memref<16x128xf32, #tpu.memory_space<vmem>>) attributes {dimension_semantics = [#tpu.dimension_semantics<arbitrary>], iteration_bounds = array<i64: 1>, scalar_prefetch = 0 : i64, scratch_operands = 0 : i64, tpu.core_type = #tpu.core_type<tc>, window_params = [{pipeline_mode = #tpu.pipeline_mode<synchronous>, transform_indices = @transform_0, window_bounds = array<i64: 16, 1>}, {pipeline_mode = #tpu.pipeline_mode<synchronous>, transform_indices = @transform_1, window_bounds = array<i64: 96, 32>}, {pipeline_mode = #tpu.pipeline_mode<synchronous>, transform_indices = @transform_2, window_bounds = array<i64: 16, 32>}, {pipeline_mode = #tpu.pipeline_mode<synchronous>, transform_indices = @transform_3, window_bounds = array<i64: 16, 16>}, {pipeline_mode = #tpu.pipeline_mode<synchronous>, transform_indices = @transform_4, window_bounds = array<i64: 2, 96, 32>}, {pipeline_mode = #tpu.pipeline_mode<synchronous>, transform_indices = @transform_5, window_bounds = array<i64: 2, 32, 32>}, {pipeline_mode = #tpu.pipeline_mode<synchronous>, transform_indices = @transform_6, window_bounds = array<i64: 2, 128, 32>}, {pipeline_mode = #tpu.pipeline_mode<synchronous>, transform_indices = @transform_7, window_bounds = array<i64: 2, 32, 128>}, {pipeline_mode = #tpu.pipeline_mode<synchronous>, transform_indices = @transform_8, window_bounds = array<i64: 2, 2, 32>}, {pipeline_mode = #tpu.pipeline_mode<synchronous>, transform_indices = @transform_9, window_bounds = array<i64: 2, 2, 16>}, {pipeline_mode = #tpu.pipeline_mode<synchronous>, transform_indices = @transform_10, window_bounds = array<i64: 2, 2, 16>}, {pipeline_mode = #tpu.pipeline_mode<synchronous>, transform_indices = @transform_11, window_bounds = array<i64: 2, 2, 32>}, {pipeline_mode = #tpu.pipeline_mode<synchronous>, transform_indices = @transform_12, window_bounds = array<i64: 2, 32>}, {pipeline_mode = #tpu.pipeline_mode<synchronous>, transform_indices = @transform_13, window_bounds = array<i64: 128, 32>}, {pipeline_mode = #tpu.pipeline_mode<synchronous>, transform_indices = @transform_14, window_bounds = array<i64: 16, 128>}]} {
    %c0 = arith.constant 0 : index
    %c0_0 = arith.constant 0 : index
    %0 = vector.load %arg1[%c0, %c0_0] : memref<16x1xi32, #tpu.memory_space<vmem>>, vector<16x1xi32>
    %1 = tpu.iota {dimensions = array<i32: 1>} : vector<16x96xi32>
    %2 = vector.broadcast %0 : vector<16x1xi32> to vector<16x96xi32>
    %3 = arith.cmpi eq, %2, %1 : vector<16x96xi32>
    %4 = arith.extui %3 : vector<16x96xi1> to vector<16x96xi32>
    %5 = arith.sitofp %4 : vector<16x96xi32> to vector<16x96xf32>
    %c0_1 = arith.constant 0 : index
    %c0_2 = arith.constant 0 : index
    %6 = vector.load %arg2[%c0_1, %c0_2] : memref<96x32xf32, #tpu.memory_space<vmem>>, vector<96x32xf32>
    %cst = arith.constant dense<0.000000e+00> : vector<16x32xf32>
    %7 = tpu.matmul %5, %6, %cst {dimension_numbers = #tpu.dot_dimension_numbers<[1], [0], [0], [1], [0, 0, 1, 1], [], []>} : vector<16x96xf32>, vector<96x32xf32>, vector<16x32xf32> -> vector<16x32xf32>
    %c0_3 = arith.constant 0 : index
    %c0_4 = arith.constant 0 : index
    %8 = vector.load %arg3[%c0_3, %c0_4] : memref<16x32xf32, #tpu.memory_space<vmem>>, vector<16x32xf32>
    %9 = arith.addf %7, %8 : vector<16x32xf32>
    %c0_5 = arith.constant 0 : index
    %c0_6 = arith.constant 0 : index
    %10 = vector.load %arg4[%c0_5, %c0_6] : memref<16x16xf32, #tpu.memory_space<vmem>>, vector<16x16xf32>
    %c0_7 = arith.constant 0 : index
    %c0_8 = arith.constant 0 : index
    %c0_9 = arith.constant 0 : index
    %11 = vector.load %arg9[%c0_7, %c0_8, %c0_9] : memref<2x2x32xf32, #tpu.memory_space<vmem>>, vector<1x2x32xf32>
    %12 = vector.shape_cast %11 : vector<1x2x32xf32> to vector<2x32xf32>
    %13 = vector.extract_strided_slice %12 {offsets = [0, 0], sizes = [1, 32], strides = [1, 1]} : vector<2x32xf32> to vector<1x32xf32>
    %14 = vector.shape_cast %13 : vector<1x32xf32> to vector<32xf32>
    %15 = vector.extract_strided_slice %12 {offsets = [1, 0], sizes = [1, 32], strides = [1, 1]} : vector<2x32xf32> to vector<1x32xf32>
    %16 = vector.shape_cast %15 : vector<1x32xf32> to vector<32xf32>
    %cst_10 = arith.constant dense<0.000000e+00> : vector<16xf32>
    %17 = vector.multi_reduction <add>, %9, %cst_10 [1] : vector<16x32xf32> to vector<16xf32>
    %18 = vector.shape_cast %17 : vector<16xf32> to vector<16x1xf32>
    %cst_11 = arith.constant 3.200000e+01 : f32
    %19 = vector.broadcast %cst_11 : f32 to vector<16x1xf32>
    %20 = arith.divf %18, %19 : vector<16x1xf32>
    %21 = arith.mulf %9, %9 : vector<16x32xf32>
    %cst_12 = arith.constant dense<0.000000e+00> : vector<16xf32>
    %22 = vector.multi_reduction <add>, %21, %cst_12 [1] : vector<16x32xf32> to vector<16xf32>
    %23 = vector.shape_cast %22 : vector<16xf32> to vector<16x1xf32>
    %cst_13 = arith.constant 3.200000e+01 : f32
    %24 = vector.broadcast %cst_13 : f32 to vector<16x1xf32>
    %25 = arith.divf %23, %24 : vector<16x1xf32>
    %26 = arith.mulf %20, %20 : vector<16x1xf32>
    %27 = arith.subf %25, %26 : vector<16x1xf32>
    %28 = vector.broadcast %20 : vector<16x1xf32> to vector<16x32xf32>
    %29 = arith.subf %9, %28 : vector<16x32xf32>
    %cst_14 = arith.constant 9.99999974E-6 : f32
    %30 = vector.broadcast %cst_14 : f32 to vector<16x1xf32>
    %31 = arith.addf %27, %30 : vector<16x1xf32>
    %32 = math.rsqrt %31 : vector<16x1xf32>
    %33 = vector.broadcast %32 : vector<16x1xf32> to vector<16x32xf32>
    %34 = arith.mulf %29, %33 : vector<16x32xf32>
    %35 = vector.shape_cast %14 : vector<32xf32> to vector<1x32xf32>
    %36 = vector.broadcast %35 : vector<1x32xf32> to vector<16x32xf32>
    %37 = arith.mulf %34, %36 : vector<16x32xf32>
    %38 = vector.shape_cast %16 : vector<32xf32> to vector<1x32xf32>
    %39 = vector.broadcast %38 : vector<1x32xf32> to vector<16x32xf32>
    %40 = arith.addf %37, %39 : vector<16x32xf32>
    %c0_15 = arith.constant 0 : index
    %c0_16 = arith.constant 0 : index
    %c0_17 = arith.constant 0 : index
    %41 = vector.load %arg5[%c0_15, %c0_16, %c0_17] : memref<2x96x32xf32, #tpu.memory_space<vmem>>, vector<1x96x32xf32>
    %42 = vector.shape_cast %41 : vector<1x96x32xf32> to vector<96x32xf32>
    %cst_18 = arith.constant dense<0.000000e+00> : vector<16x96xf32>
    %43 = tpu.matmul %40, %42, %cst_18 {dimension_numbers = #tpu.dot_dimension_numbers<[1], [1], [0], [0], [0, 0, 1, 0], [], []>} : vector<16x32xf32>, vector<96x32xf32>, vector<16x96xf32> -> vector<16x96xf32>
    %c0_19 = arith.constant 0 : index
    %c0_20 = arith.constant 0 : index
    %c0_21 = arith.constant 0 : index
    %44 = vector.load %arg10[%c0_19, %c0_20, %c0_21] : memref<2x2x16xf32, #tpu.memory_space<vmem>>, vector<1x2x16xf32>
    %45 = vector.shape_cast %44 : vector<1x2x16xf32> to vector<2x16xf32>
    %c0_22 = arith.constant 0 : index
    %c0_23 = arith.constant 0 : index
    %c0_24 = arith.constant 0 : index
    %46 = vector.load %arg11[%c0_22, %c0_23, %c0_24] : memref<2x2x16xf32, #tpu.memory_space<vmem>>, vector<1x2x16xf32>
    %47 = vector.shape_cast %46 : vector<1x2x16xf32> to vector<2x16xf32>
    %48 = vector.extract_strided_slice %43 {offsets = [0, 0], sizes = [16, 16], strides = [1, 1]} : vector<16x96xf32> to vector<16x16xf32>
    %49 = vector.extract_strided_slice %45 {offsets = [0, 0], sizes = [1, 16], strides = [1, 1]} : vector<2x16xf32> to vector<1x16xf32>
    %50 = vector.shape_cast %49 : vector<1x16xf32> to vector<16xf32>
    %51 = vector.extract_strided_slice %45 {offsets = [1, 0], sizes = [1, 16], strides = [1, 1]} : vector<2x16xf32> to vector<1x16xf32>
    %52 = vector.shape_cast %51 : vector<1x16xf32> to vector<16xf32>
    %cst_25 = arith.constant dense<0.000000e+00> : vector<16xf32>
    %53 = vector.multi_reduction <add>, %48, %cst_25 [1] : vector<16x16xf32> to vector<16xf32>
    %54 = vector.shape_cast %53 : vector<16xf32> to vector<16x1xf32>
    %cst_26 = arith.constant 1.600000e+01 : f32
    %55 = vector.broadcast %cst_26 : f32 to vector<16x1xf32>
    %56 = arith.divf %54, %55 : vector<16x1xf32>
    %57 = arith.mulf %48, %48 : vector<16x16xf32>
    %cst_27 = arith.constant dense<0.000000e+00> : vector<16xf32>
    %58 = vector.multi_reduction <add>, %57, %cst_27 [1] : vector<16x16xf32> to vector<16xf32>
    %59 = vector.shape_cast %58 : vector<16xf32> to vector<16x1xf32>
    %cst_28 = arith.constant 1.600000e+01 : f32
    %60 = vector.broadcast %cst_28 : f32 to vector<16x1xf32>
    %61 = arith.divf %59, %60 : vector<16x1xf32>
    %62 = arith.mulf %56, %56 : vector<16x1xf32>
    %63 = arith.subf %61, %62 : vector<16x1xf32>
    %64 = vector.broadcast %56 : vector<16x1xf32> to vector<16x16xf32>
    %65 = arith.subf %48, %64 : vector<16x16xf32>
    %cst_29 = arith.constant 9.99999974E-6 : f32
    %66 = vector.broadcast %cst_29 : f32 to vector<16x1xf32>
    %67 = arith.addf %63, %66 : vector<16x1xf32>
    %68 = math.rsqrt %67 : vector<16x1xf32>
    %69 = vector.broadcast %68 : vector<16x1xf32> to vector<16x16xf32>
    %70 = arith.mulf %65, %69 : vector<16x16xf32>
    %71 = vector.shape_cast %50 : vector<16xf32> to vector<1x16xf32>
    %72 = vector.broadcast %71 : vector<1x16xf32> to vector<16x16xf32>
    %73 = arith.mulf %70, %72 : vector<16x16xf32>
    %74 = vector.shape_cast %52 : vector<16xf32> to vector<1x16xf32>
    %75 = vector.broadcast %74 : vector<1x16xf32> to vector<16x16xf32>
    %76 = arith.addf %73, %75 : vector<16x16xf32>
    %77 = vector.extract_strided_slice %43 {offsets = [0, 32], sizes = [16, 16], strides = [1, 1]} : vector<16x96xf32> to vector<16x16xf32>
    %78 = vector.extract_strided_slice %47 {offsets = [0, 0], sizes = [1, 16], strides = [1, 1]} : vector<2x16xf32> to vector<1x16xf32>
    %79 = vector.shape_cast %78 : vector<1x16xf32> to vector<16xf32>
    %80 = vector.extract_strided_slice %47 {offsets = [1, 0], sizes = [1, 16], strides = [1, 1]} : vector<2x16xf32> to vector<1x16xf32>
    %81 = vector.shape_cast %80 : vector<1x16xf32> to vector<16xf32>
    %cst_30 = arith.constant dense<0.000000e+00> : vector<16xf32>
    %82 = vector.multi_reduction <add>, %77, %cst_30 [1] : vector<16x16xf32> to vector<16xf32>
    %83 = vector.shape_cast %82 : vector<16xf32> to vector<16x1xf32>
    %cst_31 = arith.constant 1.600000e+01 : f32
    %84 = vector.broadcast %cst_31 : f32 to vector<16x1xf32>
    %85 = arith.divf %83, %84 : vector<16x1xf32>
    %86 = arith.mulf %77, %77 : vector<16x16xf32>
    %cst_32 = arith.constant dense<0.000000e+00> : vector<16xf32>
    %87 = vector.multi_reduction <add>, %86, %cst_32 [1] : vector<16x16xf32> to vector<16xf32>
    %88 = vector.shape_cast %87 : vector<16xf32> to vector<16x1xf32>
    %cst_33 = arith.constant 1.600000e+01 : f32
    %89 = vector.broadcast %cst_33 : f32 to vector<16x1xf32>
    %90 = arith.divf %88, %89 : vector<16x1xf32>
    %91 = arith.mulf %85, %85 : vector<16x1xf32>
    %92 = arith.subf %90, %91 : vector<16x1xf32>
    %93 = vector.broadcast %85 : vector<16x1xf32> to vector<16x16xf32>
    %94 = arith.subf %77, %93 : vector<16x16xf32>
    %cst_34 = arith.constant 9.99999974E-6 : f32
    %95 = vector.broadcast %cst_34 : f32 to vector<16x1xf32>
    %96 = arith.addf %92, %95 : vector<16x1xf32>
    %97 = math.rsqrt %96 : vector<16x1xf32>
    %98 = vector.broadcast %97 : vector<16x1xf32> to vector<16x16xf32>
    %99 = arith.mulf %94, %98 : vector<16x16xf32>
    %100 = vector.shape_cast %79 : vector<16xf32> to vector<1x16xf32>
    %101 = vector.broadcast %100 : vector<1x16xf32> to vector<16x16xf32>
    %102 = arith.mulf %99, %101 : vector<16x16xf32>
    %103 = vector.shape_cast %81 : vector<16xf32> to vector<1x16xf32>
    %104 = vector.broadcast %103 : vector<1x16xf32> to vector<16x16xf32>
    %105 = arith.addf %102, %104 : vector<16x16xf32>
    %106 = vector.extract_strided_slice %43 {offsets = [0, 64], sizes = [16, 16], strides = [1, 1]} : vector<16x96xf32> to vector<16x16xf32>
    %cst_35 = arith.constant dense<0.000000e+00> : vector<16x16xf32>
    %107 = tpu.matmul %76, %105, %cst_35 {dimension_numbers = #tpu.dot_dimension_numbers<[1], [1], [0], [0], [0, 0, 1, 0], [], []>} : vector<16x16xf32>, vector<16x16xf32>, vector<16x16xf32> -> vector<16x16xf32>
    %108 = arith.addf %107, %10 : vector<16x16xf32>
    %cst_36 = arith.constant dense<0xFF800000> : vector<16xf32>
    %109 = vector.multi_reduction <maximumf>, %108, %cst_36 [1] : vector<16x16xf32> to vector<16xf32>
    %110 = vector.shape_cast %109 : vector<16xf32> to vector<16x1xf32>
    %111 = vector.broadcast %110 : vector<16x1xf32> to vector<16x16xf32>
    %112 = arith.subf %108, %111 : vector<16x16xf32>
    %113 = math.exp %112 : vector<16x16xf32>
    %cst_37 = arith.constant dense<0.000000e+00> : vector<16xf32>
    %114 = vector.multi_reduction <add>, %113, %cst_37 [1] : vector<16x16xf32> to vector<16xf32>
    %115 = vector.shape_cast %114 : vector<16xf32> to vector<16x1xf32>
    %116 = tpu.reciprocal %115 {approx = true} : vector<16x1xf32> -> vector<16x1xf32>
    %117 = vector.broadcast %116 : vector<16x1xf32> to vector<16x16xf32>
    %118 = arith.mulf %113, %117 : vector<16x16xf32>
    %cst_38 = arith.constant dense<0.000000e+00> : vector<16x16xf32>
    %119 = tpu.matmul %118, %106, %cst_38 {dimension_numbers = #tpu.dot_dimension_numbers<[1], [0], [0], [1], [0, 0, 1, 1], [], []>} : vector<16x16xf32>, vector<16x16xf32>, vector<16x16xf32> -> vector<16x16xf32>
    %120 = vector.extract_strided_slice %43 {offsets = [0, 16], sizes = [16, 16], strides = [1, 1]} : vector<16x96xf32> to vector<16x16xf32>
    %121 = vector.extract_strided_slice %45 {offsets = [0, 0], sizes = [1, 16], strides = [1, 1]} : vector<2x16xf32> to vector<1x16xf32>
    %122 = vector.shape_cast %121 : vector<1x16xf32> to vector<16xf32>
    %123 = vector.extract_strided_slice %45 {offsets = [1, 0], sizes = [1, 16], strides = [1, 1]} : vector<2x16xf32> to vector<1x16xf32>
    %124 = vector.shape_cast %123 : vector<1x16xf32> to vector<16xf32>
    %cst_39 = arith.constant dense<0.000000e+00> : vector<16xf32>
    %125 = vector.multi_reduction <add>, %120, %cst_39 [1] : vector<16x16xf32> to vector<16xf32>
    %126 = vector.shape_cast %125 : vector<16xf32> to vector<16x1xf32>
    %cst_40 = arith.constant 1.600000e+01 : f32
    %127 = vector.broadcast %cst_40 : f32 to vector<16x1xf32>
    %128 = arith.divf %126, %127 : vector<16x1xf32>
    %129 = arith.mulf %120, %120 : vector<16x16xf32>
    %cst_41 = arith.constant dense<0.000000e+00> : vector<16xf32>
    %130 = vector.multi_reduction <add>, %129, %cst_41 [1] : vector<16x16xf32> to vector<16xf32>
    %131 = vector.shape_cast %130 : vector<16xf32> to vector<16x1xf32>
    %cst_42 = arith.constant 1.600000e+01 : f32
    %132 = vector.broadcast %cst_42 : f32 to vector<16x1xf32>
    %133 = arith.divf %131, %132 : vector<16x1xf32>
    %134 = arith.mulf %128, %128 : vector<16x1xf32>
    %135 = arith.subf %133, %134 : vector<16x1xf32>
    %136 = vector.broadcast %128 : vector<16x1xf32> to vector<16x16xf32>
    %137 = arith.subf %120, %136 : vector<16x16xf32>
    %cst_43 = arith.constant 9.99999974E-6 : f32
    %138 = vector.broadcast %cst_43 : f32 to vector<16x1xf32>
    %139 = arith.addf %135, %138 : vector<16x1xf32>
    %140 = math.rsqrt %139 : vector<16x1xf32>
    %141 = vector.broadcast %140 : vector<16x1xf32> to vector<16x16xf32>
    %142 = arith.mulf %137, %141 : vector<16x16xf32>
    %143 = vector.shape_cast %122 : vector<16xf32> to vector<1x16xf32>
    %144 = vector.broadcast %143 : vector<1x16xf32> to vector<16x16xf32>
    %145 = arith.mulf %142, %144 : vector<16x16xf32>
    %146 = vector.shape_cast %124 : vector<16xf32> to vector<1x16xf32>
    %147 = vector.broadcast %146 : vector<1x16xf32> to vector<16x16xf32>
    %148 = arith.addf %145, %147 : vector<16x16xf32>
    %149 = vector.extract_strided_slice %43 {offsets = [0, 48], sizes = [16, 16], strides = [1, 1]} : vector<16x96xf32> to vector<16x16xf32>
    %150 = vector.extract_strided_slice %47 {offsets = [0, 0], sizes = [1, 16], strides = [1, 1]} : vector<2x16xf32> to vector<1x16xf32>
    %151 = vector.shape_cast %150 : vector<1x16xf32> to vector<16xf32>
    %152 = vector.extract_strided_slice %47 {offsets = [1, 0], sizes = [1, 16], strides = [1, 1]} : vector<2x16xf32> to vector<1x16xf32>
    %153 = vector.shape_cast %152 : vector<1x16xf32> to vector<16xf32>
    %cst_44 = arith.constant dense<0.000000e+00> : vector<16xf32>
    %154 = vector.multi_reduction <add>, %149, %cst_44 [1] : vector<16x16xf32> to vector<16xf32>
    %155 = vector.shape_cast %154 : vector<16xf32> to vector<16x1xf32>
    %cst_45 = arith.constant 1.600000e+01 : f32
    %156 = vector.broadcast %cst_45 : f32 to vector<16x1xf32>
    %157 = arith.divf %155, %156 : vector<16x1xf32>
    %158 = arith.mulf %149, %149 : vector<16x16xf32>
    %cst_46 = arith.constant dense<0.000000e+00> : vector<16xf32>
    %159 = vector.multi_reduction <add>, %158, %cst_46 [1] : vector<16x16xf32> to vector<16xf32>
    %160 = vector.shape_cast %159 : vector<16xf32> to vector<16x1xf32>
    %cst_47 = arith.constant 1.600000e+01 : f32
    %161 = vector.broadcast %cst_47 : f32 to vector<16x1xf32>
    %162 = arith.divf %160, %161 : vector<16x1xf32>
    %163 = arith.mulf %157, %157 : vector<16x1xf32>
    %164 = arith.subf %162, %163 : vector<16x1xf32>
    %165 = vector.broadcast %157 : vector<16x1xf32> to vector<16x16xf32>
    %166 = arith.subf %149, %165 : vector<16x16xf32>
    %cst_48 = arith.constant 9.99999974E-6 : f32
    %167 = vector.broadcast %cst_48 : f32 to vector<16x1xf32>
    %168 = arith.addf %164, %167 : vector<16x1xf32>
    %169 = math.rsqrt %168 : vector<16x1xf32>
    %170 = vector.broadcast %169 : vector<16x1xf32> to vector<16x16xf32>
    %171 = arith.mulf %166, %170 : vector<16x16xf32>
    %172 = vector.shape_cast %151 : vector<16xf32> to vector<1x16xf32>
    %173 = vector.broadcast %172 : vector<1x16xf32> to vector<16x16xf32>
    %174 = arith.mulf %171, %173 : vector<16x16xf32>
    %175 = vector.shape_cast %153 : vector<16xf32> to vector<1x16xf32>
    %176 = vector.broadcast %175 : vector<1x16xf32> to vector<16x16xf32>
    %177 = arith.addf %174, %176 : vector<16x16xf32>
    %178 = vector.extract_strided_slice %43 {offsets = [0, 80], sizes = [16, 16], strides = [1, 1]} : vector<16x96xf32> to vector<16x16xf32>
    %cst_49 = arith.constant dense<0.000000e+00> : vector<16x16xf32>
    %179 = tpu.matmul %148, %177, %cst_49 {dimension_numbers = #tpu.dot_dimension_numbers<[1], [1], [0], [0], [0, 0, 1, 0], [], []>} : vector<16x16xf32>, vector<16x16xf32>, vector<16x16xf32> -> vector<16x16xf32>
    %180 = arith.addf %179, %10 : vector<16x16xf32>
    %cst_50 = arith.constant dense<0xFF800000> : vector<16xf32>
    %181 = vector.multi_reduction <maximumf>, %180, %cst_50 [1] : vector<16x16xf32> to vector<16xf32>
    %182 = vector.shape_cast %181 : vector<16xf32> to vector<16x1xf32>
    %183 = vector.broadcast %182 : vector<16x1xf32> to vector<16x16xf32>
    %184 = arith.subf %180, %183 : vector<16x16xf32>
    %185 = math.exp %184 : vector<16x16xf32>
    %cst_51 = arith.constant dense<0.000000e+00> : vector<16xf32>
    %186 = vector.multi_reduction <add>, %185, %cst_51 [1] : vector<16x16xf32> to vector<16xf32>
    %187 = vector.shape_cast %186 : vector<16xf32> to vector<16x1xf32>
    %188 = tpu.reciprocal %187 {approx = true} : vector<16x1xf32> -> vector<16x1xf32>
    %189 = vector.broadcast %188 : vector<16x1xf32> to vector<16x16xf32>
    %190 = arith.mulf %185, %189 : vector<16x16xf32>
    %cst_52 = arith.constant dense<0.000000e+00> : vector<16x16xf32>
    %191 = tpu.matmul %190, %178, %cst_52 {dimension_numbers = #tpu.dot_dimension_numbers<[1], [0], [0], [1], [0, 0, 1, 1], [], []>} : vector<16x16xf32>, vector<16x16xf32>, vector<16x16xf32> -> vector<16x16xf32>
    %192 = tpu.concatenate %119, %191 in 1 : vector<16x16xf32>, vector<16x16xf32> -> vector<16x32xf32>
    %c0_53 = arith.constant 0 : index
    %c0_54 = arith.constant 0 : index
    %c0_55 = arith.constant 0 : index
    %193 = vector.load %arg6[%c0_53, %c0_54, %c0_55] : memref<2x32x32xf32, #tpu.memory_space<vmem>>, vector<1x32x32xf32>
    %194 = vector.shape_cast %193 : vector<1x32x32xf32> to vector<32x32xf32>
    %cst_56 = arith.constant dense<0.000000e+00> : vector<16x32xf32>
    %195 = tpu.matmul %192, %194, %cst_56 {dimension_numbers = #tpu.dot_dimension_numbers<[1], [1], [0], [0], [0, 0, 1, 0], [], []>} : vector<16x32xf32>, vector<32x32xf32>, vector<16x32xf32> -> vector<16x32xf32>
    %196 = arith.addf %9, %195 : vector<16x32xf32>
    %c0_57 = arith.constant 0 : index
    %c0_58 = arith.constant 0 : index
    %c0_59 = arith.constant 0 : index
    %197 = vector.load %arg12[%c0_57, %c0_58, %c0_59] : memref<2x2x32xf32, #tpu.memory_space<vmem>>, vector<1x2x32xf32>
    %198 = vector.shape_cast %197 : vector<1x2x32xf32> to vector<2x32xf32>
    %199 = vector.extract_strided_slice %198 {offsets = [0, 0], sizes = [1, 32], strides = [1, 1]} : vector<2x32xf32> to vector<1x32xf32>
    %200 = vector.shape_cast %199 : vector<1x32xf32> to vector<32xf32>
    %201 = vector.extract_strided_slice %198 {offsets = [1, 0], sizes = [1, 32], strides = [1, 1]} : vector<2x32xf32> to vector<1x32xf32>
    %202 = vector.shape_cast %201 : vector<1x32xf32> to vector<32xf32>
    %cst_60 = arith.constant dense<0.000000e+00> : vector<16xf32>
    %203 = vector.multi_reduction <add>, %196, %cst_60 [1] : vector<16x32xf32> to vector<16xf32>
    %204 = vector.shape_cast %203 : vector<16xf32> to vector<16x1xf32>
    %cst_61 = arith.constant 3.200000e+01 : f32
    %205 = vector.broadcast %cst_61 : f32 to vector<16x1xf32>
    %206 = arith.divf %204, %205 : vector<16x1xf32>
    %207 = arith.mulf %196, %196 : vector<16x32xf32>
    %cst_62 = arith.constant dense<0.000000e+00> : vector<16xf32>
    %208 = vector.multi_reduction <add>, %207, %cst_62 [1] : vector<16x32xf32> to vector<16xf32>
    %209 = vector.shape_cast %208 : vector<16xf32> to vector<16x1xf32>
    %cst_63 = arith.constant 3.200000e+01 : f32
    %210 = vector.broadcast %cst_63 : f32 to vector<16x1xf32>
    %211 = arith.divf %209, %210 : vector<16x1xf32>
    %212 = arith.mulf %206, %206 : vector<16x1xf32>
    %213 = arith.subf %211, %212 : vector<16x1xf32>
    %214 = vector.broadcast %206 : vector<16x1xf32> to vector<16x32xf32>
    %215 = arith.subf %196, %214 : vector<16x32xf32>
    %cst_64 = arith.constant 9.99999974E-6 : f32
    %216 = vector.broadcast %cst_64 : f32 to vector<16x1xf32>
    %217 = arith.addf %213, %216 : vector<16x1xf32>
    %218 = math.rsqrt %217 : vector<16x1xf32>
    %219 = vector.broadcast %218 : vector<16x1xf32> to vector<16x32xf32>
    %220 = arith.mulf %215, %219 : vector<16x32xf32>
    %221 = vector.shape_cast %200 : vector<32xf32> to vector<1x32xf32>
    %222 = vector.broadcast %221 : vector<1x32xf32> to vector<16x32xf32>
    %223 = arith.mulf %220, %222 : vector<16x32xf32>
    %224 = vector.shape_cast %202 : vector<32xf32> to vector<1x32xf32>
    %225 = vector.broadcast %224 : vector<1x32xf32> to vector<16x32xf32>
    %226 = arith.addf %223, %225 : vector<16x32xf32>
    %c0_65 = arith.constant 0 : index
    %c0_66 = arith.constant 0 : index
    %c0_67 = arith.constant 0 : index
    %227 = vector.load %arg7[%c0_65, %c0_66, %c0_67] : memref<2x128x32xf32, #tpu.memory_space<vmem>>, vector<1x128x32xf32>
    %228 = vector.shape_cast %227 : vector<1x128x32xf32> to vector<128x32xf32>
    %cst_68 = arith.constant dense<0.000000e+00> : vector<16x128xf32>
    %229 = tpu.matmul %226, %228, %cst_68 {dimension_numbers = #tpu.dot_dimension_numbers<[1], [1], [0], [0], [0, 0, 1, 0], [], []>} : vector<16x32xf32>, vector<128x32xf32>, vector<16x128xf32> -> vector<16x128xf32>
    %cst_69 = arith.constant 0.000000e+00 : f32
    %230 = vector.broadcast %cst_69 : f32 to vector<16x128xf32>
    %231 = arith.maximumf %229, %230 : vector<16x128xf32>
    %c0_70 = arith.constant 0 : index
    %c0_71 = arith.constant 0 : index
    %c0_72 = arith.constant 0 : index
    %232 = vector.load %arg8[%c0_70, %c0_71, %c0_72] : memref<2x32x128xf32, #tpu.memory_space<vmem>>, vector<1x32x128xf32>
    %233 = vector.shape_cast %232 : vector<1x32x128xf32> to vector<32x128xf32>
    %cst_73 = arith.constant dense<0.000000e+00> : vector<16x32xf32>
    %234 = tpu.matmul %231, %233, %cst_73 {dimension_numbers = #tpu.dot_dimension_numbers<[1], [1], [0], [0], [0, 0, 1, 0], [], []>} : vector<16x128xf32>, vector<32x128xf32>, vector<16x32xf32> -> vector<16x32xf32>
    %235 = arith.addf %196, %234 : vector<16x32xf32>
    %c1 = arith.constant 1 : index
    %c0_74 = arith.constant 0 : index
    %c0_75 = arith.constant 0 : index
    %236 = vector.load %arg9[%c1, %c0_74, %c0_75] : memref<2x2x32xf32, #tpu.memory_space<vmem>>, vector<1x2x32xf32>
    %237 = vector.shape_cast %236 : vector<1x2x32xf32> to vector<2x32xf32>
    %238 = vector.extract_strided_slice %237 {offsets = [0, 0], sizes = [1, 32], strides = [1, 1]} : vector<2x32xf32> to vector<1x32xf32>
    %239 = vector.shape_cast %238 : vector<1x32xf32> to vector<32xf32>
    %240 = vector.extract_strided_slice %237 {offsets = [1, 0], sizes = [1, 32], strides = [1, 1]} : vector<2x32xf32> to vector<1x32xf32>
    %241 = vector.shape_cast %240 : vector<1x32xf32> to vector<32xf32>
    %cst_76 = arith.constant dense<0.000000e+00> : vector<16xf32>
    %242 = vector.multi_reduction <add>, %235, %cst_76 [1] : vector<16x32xf32> to vector<16xf32>
    %243 = vector.shape_cast %242 : vector<16xf32> to vector<16x1xf32>
    %cst_77 = arith.constant 3.200000e+01 : f32
    %244 = vector.broadcast %cst_77 : f32 to vector<16x1xf32>
    %245 = arith.divf %243, %244 : vector<16x1xf32>
    %246 = arith.mulf %235, %235 : vector<16x32xf32>
    %cst_78 = arith.constant dense<0.000000e+00> : vector<16xf32>
    %247 = vector.multi_reduction <add>, %246, %cst_78 [1] : vector<16x32xf32> to vector<16xf32>
    %248 = vector.shape_cast %247 : vector<16xf32> to vector<16x1xf32>
    %cst_79 = arith.constant 3.200000e+01 : f32
    %249 = vector.broadcast %cst_79 : f32 to vector<16x1xf32>
    %250 = arith.divf %248, %249 : vector<16x1xf32>
    %251 = arith.mulf %245, %245 : vector<16x1xf32>
    %252 = arith.subf %250, %251 : vector<16x1xf32>
    %253 = vector.broadcast %245 : vector<16x1xf32> to vector<16x32xf32>
    %254 = arith.subf %235, %253 : vector<16x32xf32>
    %cst_80 = arith.constant 9.99999974E-6 : f32
    %255 = vector.broadcast %cst_80 : f32 to vector<16x1xf32>
    %256 = arith.addf %252, %255 : vector<16x1xf32>
    %257 = math.rsqrt %256 : vector<16x1xf32>
    %258 = vector.broadcast %257 : vector<16x1xf32> to vector<16x32xf32>
    %259 = arith.mulf %254, %258 : vector<16x32xf32>
    %260 = vector.shape_cast %239 : vector<32xf32> to vector<1x32xf32>
    %261 = vector.broadcast %260 : vector<1x32xf32> to vector<16x32xf32>
    %262 = arith.mulf %259, %261 : vector<16x32xf32>
    %263 = vector.shape_cast %241 : vector<32xf32> to vector<1x32xf32>
    %264 = vector.broadcast %263 : vector<1x32xf32> to vector<16x32xf32>
    %265 = arith.addf %262, %264 : vector<16x32xf32>
    %c1_81 = arith.constant 1 : index
    %c0_82 = arith.constant 0 : index
    %c0_83 = arith.constant 0 : index
    %266 = vector.load %arg5[%c1_81, %c0_82, %c0_83] : memref<2x96x32xf32, #tpu.memory_space<vmem>>, vector<1x96x32xf32>
    %267 = vector.shape_cast %266 : vector<1x96x32xf32> to vector<96x32xf32>
    %cst_84 = arith.constant dense<0.000000e+00> : vector<16x96xf32>
    %268 = tpu.matmul %265, %267, %cst_84 {dimension_numbers = #tpu.dot_dimension_numbers<[1], [1], [0], [0], [0, 0, 1, 0], [], []>} : vector<16x32xf32>, vector<96x32xf32>, vector<16x96xf32> -> vector<16x96xf32>
    %c1_85 = arith.constant 1 : index
    %c0_86 = arith.constant 0 : index
    %c0_87 = arith.constant 0 : index
    %269 = vector.load %arg10[%c1_85, %c0_86, %c0_87] : memref<2x2x16xf32, #tpu.memory_space<vmem>>, vector<1x2x16xf32>
    %270 = vector.shape_cast %269 : vector<1x2x16xf32> to vector<2x16xf32>
    %c1_88 = arith.constant 1 : index
    %c0_89 = arith.constant 0 : index
    %c0_90 = arith.constant 0 : index
    %271 = vector.load %arg11[%c1_88, %c0_89, %c0_90] : memref<2x2x16xf32, #tpu.memory_space<vmem>>, vector<1x2x16xf32>
    %272 = vector.shape_cast %271 : vector<1x2x16xf32> to vector<2x16xf32>
    %273 = vector.extract_strided_slice %268 {offsets = [0, 0], sizes = [16, 16], strides = [1, 1]} : vector<16x96xf32> to vector<16x16xf32>
    %274 = vector.extract_strided_slice %270 {offsets = [0, 0], sizes = [1, 16], strides = [1, 1]} : vector<2x16xf32> to vector<1x16xf32>
    %275 = vector.shape_cast %274 : vector<1x16xf32> to vector<16xf32>
    %276 = vector.extract_strided_slice %270 {offsets = [1, 0], sizes = [1, 16], strides = [1, 1]} : vector<2x16xf32> to vector<1x16xf32>
    %277 = vector.shape_cast %276 : vector<1x16xf32> to vector<16xf32>
    %cst_91 = arith.constant dense<0.000000e+00> : vector<16xf32>
    %278 = vector.multi_reduction <add>, %273, %cst_91 [1] : vector<16x16xf32> to vector<16xf32>
    %279 = vector.shape_cast %278 : vector<16xf32> to vector<16x1xf32>
    %cst_92 = arith.constant 1.600000e+01 : f32
    %280 = vector.broadcast %cst_92 : f32 to vector<16x1xf32>
    %281 = arith.divf %279, %280 : vector<16x1xf32>
    %282 = arith.mulf %273, %273 : vector<16x16xf32>
    %cst_93 = arith.constant dense<0.000000e+00> : vector<16xf32>
    %283 = vector.multi_reduction <add>, %282, %cst_93 [1] : vector<16x16xf32> to vector<16xf32>
    %284 = vector.shape_cast %283 : vector<16xf32> to vector<16x1xf32>
    %cst_94 = arith.constant 1.600000e+01 : f32
    %285 = vector.broadcast %cst_94 : f32 to vector<16x1xf32>
    %286 = arith.divf %284, %285 : vector<16x1xf32>
    %287 = arith.mulf %281, %281 : vector<16x1xf32>
    %288 = arith.subf %286, %287 : vector<16x1xf32>
    %289 = vector.broadcast %281 : vector<16x1xf32> to vector<16x16xf32>
    %290 = arith.subf %273, %289 : vector<16x16xf32>
    %cst_95 = arith.constant 9.99999974E-6 : f32
    %291 = vector.broadcast %cst_95 : f32 to vector<16x1xf32>
    %292 = arith.addf %288, %291 : vector<16x1xf32>
    %293 = math.rsqrt %292 : vector<16x1xf32>
    %294 = vector.broadcast %293 : vector<16x1xf32> to vector<16x16xf32>
    %295 = arith.mulf %290, %294 : vector<16x16xf32>
    %296 = vector.shape_cast %275 : vector<16xf32> to vector<1x16xf32>
    %297 = vector.broadcast %296 : vector<1x16xf32> to vector<16x16xf32>
    %298 = arith.mulf %295, %297 : vector<16x16xf32>
    %299 = vector.shape_cast %277 : vector<16xf32> to vector<1x16xf32>
    %300 = vector.broadcast %299 : vector<1x16xf32> to vector<16x16xf32>
    %301 = arith.addf %298, %300 : vector<16x16xf32>
    %302 = vector.extract_strided_slice %268 {offsets = [0, 32], sizes = [16, 16], strides = [1, 1]} : vector<16x96xf32> to vector<16x16xf32>
    %303 = vector.extract_strided_slice %272 {offsets = [0, 0], sizes = [1, 16], strides = [1, 1]} : vector<2x16xf32> to vector<1x16xf32>
    %304 = vector.shape_cast %303 : vector<1x16xf32> to vector<16xf32>
    %305 = vector.extract_strided_slice %272 {offsets = [1, 0], sizes = [1, 16], strides = [1, 1]} : vector<2x16xf32> to vector<1x16xf32>
    %306 = vector.shape_cast %305 : vector<1x16xf32> to vector<16xf32>
    %cst_96 = arith.constant dense<0.000000e+00> : vector<16xf32>
    %307 = vector.multi_reduction <add>, %302, %cst_96 [1] : vector<16x16xf32> to vector<16xf32>
    %308 = vector.shape_cast %307 : vector<16xf32> to vector<16x1xf32>
    %cst_97 = arith.constant 1.600000e+01 : f32
    %309 = vector.broadcast %cst_97 : f32 to vector<16x1xf32>
    %310 = arith.divf %308, %309 : vector<16x1xf32>
    %311 = arith.mulf %302, %302 : vector<16x16xf32>
    %cst_98 = arith.constant dense<0.000000e+00> : vector<16xf32>
    %312 = vector.multi_reduction <add>, %311, %cst_98 [1] : vector<16x16xf32> to vector<16xf32>
    %313 = vector.shape_cast %312 : vector<16xf32> to vector<16x1xf32>
    %cst_99 = arith.constant 1.600000e+01 : f32
    %314 = vector.broadcast %cst_99 : f32 to vector<16x1xf32>
    %315 = arith.divf %313, %314 : vector<16x1xf32>
    %316 = arith.mulf %310, %310 : vector<16x1xf32>
    %317 = arith.subf %315, %316 : vector<16x1xf32>
    %318 = vector.broadcast %310 : vector<16x1xf32> to vector<16x16xf32>
    %319 = arith.subf %302, %318 : vector<16x16xf32>
    %cst_100 = arith.constant 9.99999974E-6 : f32
    %320 = vector.broadcast %cst_100 : f32 to vector<16x1xf32>
    %321 = arith.addf %317, %320 : vector<16x1xf32>
    %322 = math.rsqrt %321 : vector<16x1xf32>
    %323 = vector.broadcast %322 : vector<16x1xf32> to vector<16x16xf32>
    %324 = arith.mulf %319, %323 : vector<16x16xf32>
    %325 = vector.shape_cast %304 : vector<16xf32> to vector<1x16xf32>
    %326 = vector.broadcast %325 : vector<1x16xf32> to vector<16x16xf32>
    %327 = arith.mulf %324, %326 : vector<16x16xf32>
    %328 = vector.shape_cast %306 : vector<16xf32> to vector<1x16xf32>
    %329 = vector.broadcast %328 : vector<1x16xf32> to vector<16x16xf32>
    %330 = arith.addf %327, %329 : vector<16x16xf32>
    %331 = vector.extract_strided_slice %268 {offsets = [0, 64], sizes = [16, 16], strides = [1, 1]} : vector<16x96xf32> to vector<16x16xf32>
    %cst_101 = arith.constant dense<0.000000e+00> : vector<16x16xf32>
    %332 = tpu.matmul %301, %330, %cst_101 {dimension_numbers = #tpu.dot_dimension_numbers<[1], [1], [0], [0], [0, 0, 1, 0], [], []>} : vector<16x16xf32>, vector<16x16xf32>, vector<16x16xf32> -> vector<16x16xf32>
    %333 = arith.addf %332, %10 : vector<16x16xf32>
    %cst_102 = arith.constant dense<0xFF800000> : vector<16xf32>
    %334 = vector.multi_reduction <maximumf>, %333, %cst_102 [1] : vector<16x16xf32> to vector<16xf32>
    %335 = vector.shape_cast %334 : vector<16xf32> to vector<16x1xf32>
    %336 = vector.broadcast %335 : vector<16x1xf32> to vector<16x16xf32>
    %337 = arith.subf %333, %336 : vector<16x16xf32>
    %338 = math.exp %337 : vector<16x16xf32>
    %cst_103 = arith.constant dense<0.000000e+00> : vector<16xf32>
    %339 = vector.multi_reduction <add>, %338, %cst_103 [1] : vector<16x16xf32> to vector<16xf32>
    %340 = vector.shape_cast %339 : vector<16xf32> to vector<16x1xf32>
    %341 = tpu.reciprocal %340 {approx = true} : vector<16x1xf32> -> vector<16x1xf32>
    %342 = vector.broadcast %341 : vector<16x1xf32> to vector<16x16xf32>
    %343 = arith.mulf %338, %342 : vector<16x16xf32>
    %cst_104 = arith.constant dense<0.000000e+00> : vector<16x16xf32>
    %344 = tpu.matmul %343, %331, %cst_104 {dimension_numbers = #tpu.dot_dimension_numbers<[1], [0], [0], [1], [0, 0, 1, 1], [], []>} : vector<16x16xf32>, vector<16x16xf32>, vector<16x16xf32> -> vector<16x16xf32>
    %345 = vector.extract_strided_slice %268 {offsets = [0, 16], sizes = [16, 16], strides = [1, 1]} : vector<16x96xf32> to vector<16x16xf32>
    %346 = vector.extract_strided_slice %270 {offsets = [0, 0], sizes = [1, 16], strides = [1, 1]} : vector<2x16xf32> to vector<1x16xf32>
    %347 = vector.shape_cast %346 : vector<1x16xf32> to vector<16xf32>
    %348 = vector.extract_strided_slice %270 {offsets = [1, 0], sizes = [1, 16], strides = [1, 1]} : vector<2x16xf32> to vector<1x16xf32>
    %349 = vector.shape_cast %348 : vector<1x16xf32> to vector<16xf32>
    %cst_105 = arith.constant dense<0.000000e+00> : vector<16xf32>
    %350 = vector.multi_reduction <add>, %345, %cst_105 [1] : vector<16x16xf32> to vector<16xf32>
    %351 = vector.shape_cast %350 : vector<16xf32> to vector<16x1xf32>
    %cst_106 = arith.constant 1.600000e+01 : f32
    %352 = vector.broadcast %cst_106 : f32 to vector<16x1xf32>
    %353 = arith.divf %351, %352 : vector<16x1xf32>
    %354 = arith.mulf %345, %345 : vector<16x16xf32>
    %cst_107 = arith.constant dense<0.000000e+00> : vector<16xf32>
    %355 = vector.multi_reduction <add>, %354, %cst_107 [1] : vector<16x16xf32> to vector<16xf32>
    %356 = vector.shape_cast %355 : vector<16xf32> to vector<16x1xf32>
    %cst_108 = arith.constant 1.600000e+01 : f32
    %357 = vector.broadcast %cst_108 : f32 to vector<16x1xf32>
    %358 = arith.divf %356, %357 : vector<16x1xf32>
    %359 = arith.mulf %353, %353 : vector<16x1xf32>
    %360 = arith.subf %358, %359 : vector<16x1xf32>
    %361 = vector.broadcast %353 : vector<16x1xf32> to vector<16x16xf32>
    %362 = arith.subf %345, %361 : vector<16x16xf32>
    %cst_109 = arith.constant 9.99999974E-6 : f32
    %363 = vector.broadcast %cst_109 : f32 to vector<16x1xf32>
    %364 = arith.addf %360, %363 : vector<16x1xf32>
    %365 = math.rsqrt %364 : vector<16x1xf32>
    %366 = vector.broadcast %365 : vector<16x1xf32> to vector<16x16xf32>
    %367 = arith.mulf %362, %366 : vector<16x16xf32>
    %368 = vector.shape_cast %347 : vector<16xf32> to vector<1x16xf32>
    %369 = vector.broadcast %368 : vector<1x16xf32> to vector<16x16xf32>
    %370 = arith.mulf %367, %369 : vector<16x16xf32>
    %371 = vector.shape_cast %349 : vector<16xf32> to vector<1x16xf32>
    %372 = vector.broadcast %371 : vector<1x16xf32> to vector<16x16xf32>
    %373 = arith.addf %370, %372 : vector<16x16xf32>
    %374 = vector.extract_strided_slice %268 {offsets = [0, 48], sizes = [16, 16], strides = [1, 1]} : vector<16x96xf32> to vector<16x16xf32>
    %375 = vector.extract_strided_slice %272 {offsets = [0, 0], sizes = [1, 16], strides = [1, 1]} : vector<2x16xf32> to vector<1x16xf32>
    %376 = vector.shape_cast %375 : vector<1x16xf32> to vector<16xf32>
    %377 = vector.extract_strided_slice %272 {offsets = [1, 0], sizes = [1, 16], strides = [1, 1]} : vector<2x16xf32> to vector<1x16xf32>
    %378 = vector.shape_cast %377 : vector<1x16xf32> to vector<16xf32>
    %cst_110 = arith.constant dense<0.000000e+00> : vector<16xf32>
    %379 = vector.multi_reduction <add>, %374, %cst_110 [1] : vector<16x16xf32> to vector<16xf32>
    %380 = vector.shape_cast %379 : vector<16xf32> to vector<16x1xf32>
    %cst_111 = arith.constant 1.600000e+01 : f32
    %381 = vector.broadcast %cst_111 : f32 to vector<16x1xf32>
    %382 = arith.divf %380, %381 : vector<16x1xf32>
    %383 = arith.mulf %374, %374 : vector<16x16xf32>
    %cst_112 = arith.constant dense<0.000000e+00> : vector<16xf32>
    %384 = vector.multi_reduction <add>, %383, %cst_112 [1] : vector<16x16xf32> to vector<16xf32>
    %385 = vector.shape_cast %384 : vector<16xf32> to vector<16x1xf32>
    %cst_113 = arith.constant 1.600000e+01 : f32
    %386 = vector.broadcast %cst_113 : f32 to vector<16x1xf32>
    %387 = arith.divf %385, %386 : vector<16x1xf32>
    %388 = arith.mulf %382, %382 : vector<16x1xf32>
    %389 = arith.subf %387, %388 : vector<16x1xf32>
    %390 = vector.broadcast %382 : vector<16x1xf32> to vector<16x16xf32>
    %391 = arith.subf %374, %390 : vector<16x16xf32>
    %cst_114 = arith.constant 9.99999974E-6 : f32
    %392 = vector.broadcast %cst_114 : f32 to vector<16x1xf32>
    %393 = arith.addf %389, %392 : vector<16x1xf32>
    %394 = math.rsqrt %393 : vector<16x1xf32>
    %395 = vector.broadcast %394 : vector<16x1xf32> to vector<16x16xf32>
    %396 = arith.mulf %391, %395 : vector<16x16xf32>
    %397 = vector.shape_cast %376 : vector<16xf32> to vector<1x16xf32>
    %398 = vector.broadcast %397 : vector<1x16xf32> to vector<16x16xf32>
    %399 = arith.mulf %396, %398 : vector<16x16xf32>
    %400 = vector.shape_cast %378 : vector<16xf32> to vector<1x16xf32>
    %401 = vector.broadcast %400 : vector<1x16xf32> to vector<16x16xf32>
    %402 = arith.addf %399, %401 : vector<16x16xf32>
    %403 = vector.extract_strided_slice %268 {offsets = [0, 80], sizes = [16, 16], strides = [1, 1]} : vector<16x96xf32> to vector<16x16xf32>
    %cst_115 = arith.constant dense<0.000000e+00> : vector<16x16xf32>
    %404 = tpu.matmul %373, %402, %cst_115 {dimension_numbers = #tpu.dot_dimension_numbers<[1], [1], [0], [0], [0, 0, 1, 0], [], []>} : vector<16x16xf32>, vector<16x16xf32>, vector<16x16xf32> -> vector<16x16xf32>
    %405 = arith.addf %404, %10 : vector<16x16xf32>
    %cst_116 = arith.constant dense<0xFF800000> : vector<16xf32>
    %406 = vector.multi_reduction <maximumf>, %405, %cst_116 [1] : vector<16x16xf32> to vector<16xf32>
    %407 = vector.shape_cast %406 : vector<16xf32> to vector<16x1xf32>
    %408 = vector.broadcast %407 : vector<16x1xf32> to vector<16x16xf32>
    %409 = arith.subf %405, %408 : vector<16x16xf32>
    %410 = math.exp %409 : vector<16x16xf32>
    %cst_117 = arith.constant dense<0.000000e+00> : vector<16xf32>
    %411 = vector.multi_reduction <add>, %410, %cst_117 [1] : vector<16x16xf32> to vector<16xf32>
    %412 = vector.shape_cast %411 : vector<16xf32> to vector<16x1xf32>
    %413 = tpu.reciprocal %412 {approx = true} : vector<16x1xf32> -> vector<16x1xf32>
    %414 = vector.broadcast %413 : vector<16x1xf32> to vector<16x16xf32>
    %415 = arith.mulf %410, %414 : vector<16x16xf32>
    %cst_118 = arith.constant dense<0.000000e+00> : vector<16x16xf32>
    %416 = tpu.matmul %415, %403, %cst_118 {dimension_numbers = #tpu.dot_dimension_numbers<[1], [0], [0], [1], [0, 0, 1, 1], [], []>} : vector<16x16xf32>, vector<16x16xf32>, vector<16x16xf32> -> vector<16x16xf32>
    %417 = tpu.concatenate %344, %416 in 1 : vector<16x16xf32>, vector<16x16xf32> -> vector<16x32xf32>
    %c1_119 = arith.constant 1 : index
    %c0_120 = arith.constant 0 : index
    %c0_121 = arith.constant 0 : index
    %418 = vector.load %arg6[%c1_119, %c0_120, %c0_121] : memref<2x32x32xf32, #tpu.memory_space<vmem>>, vector<1x32x32xf32>
    %419 = vector.shape_cast %418 : vector<1x32x32xf32> to vector<32x32xf32>
    %cst_122 = arith.constant dense<0.000000e+00> : vector<16x32xf32>
    %420 = tpu.matmul %417, %419, %cst_122 {dimension_numbers = #tpu.dot_dimension_numbers<[1], [1], [0], [0], [0, 0, 1, 0], [], []>} : vector<16x32xf32>, vector<32x32xf32>, vector<16x32xf32> -> vector<16x32xf32>
    %421 = arith.addf %235, %420 : vector<16x32xf32>
    %c1_123 = arith.constant 1 : index
    %c0_124 = arith.constant 0 : index
    %c0_125 = arith.constant 0 : index
    %422 = vector.load %arg12[%c1_123, %c0_124, %c0_125] : memref<2x2x32xf32, #tpu.memory_space<vmem>>, vector<1x2x32xf32>
    %423 = vector.shape_cast %422 : vector<1x2x32xf32> to vector<2x32xf32>
    %424 = vector.extract_strided_slice %423 {offsets = [0, 0], sizes = [1, 32], strides = [1, 1]} : vector<2x32xf32> to vector<1x32xf32>
    %425 = vector.shape_cast %424 : vector<1x32xf32> to vector<32xf32>
    %426 = vector.extract_strided_slice %423 {offsets = [1, 0], sizes = [1, 32], strides = [1, 1]} : vector<2x32xf32> to vector<1x32xf32>
    %427 = vector.shape_cast %426 : vector<1x32xf32> to vector<32xf32>
    %cst_126 = arith.constant dense<0.000000e+00> : vector<16xf32>
    %428 = vector.multi_reduction <add>, %421, %cst_126 [1] : vector<16x32xf32> to vector<16xf32>
    %429 = vector.shape_cast %428 : vector<16xf32> to vector<16x1xf32>
    %cst_127 = arith.constant 3.200000e+01 : f32
    %430 = vector.broadcast %cst_127 : f32 to vector<16x1xf32>
    %431 = arith.divf %429, %430 : vector<16x1xf32>
    %432 = arith.mulf %421, %421 : vector<16x32xf32>
    %cst_128 = arith.constant dense<0.000000e+00> : vector<16xf32>
    %433 = vector.multi_reduction <add>, %432, %cst_128 [1] : vector<16x32xf32> to vector<16xf32>
    %434 = vector.shape_cast %433 : vector<16xf32> to vector<16x1xf32>
    %cst_129 = arith.constant 3.200000e+01 : f32
    %435 = vector.broadcast %cst_129 : f32 to vector<16x1xf32>
    %436 = arith.divf %434, %435 : vector<16x1xf32>
    %437 = arith.mulf %431, %431 : vector<16x1xf32>
    %438 = arith.subf %436, %437 : vector<16x1xf32>
    %439 = vector.broadcast %431 : vector<16x1xf32> to vector<16x32xf32>
    %440 = arith.subf %421, %439 : vector<16x32xf32>
    %cst_130 = arith.constant 9.99999974E-6 : f32
    %441 = vector.broadcast %cst_130 : f32 to vector<16x1xf32>
    %442 = arith.addf %438, %441 : vector<16x1xf32>
    %443 = math.rsqrt %442 : vector<16x1xf32>
    %444 = vector.broadcast %443 : vector<16x1xf32> to vector<16x32xf32>
    %445 = arith.mulf %440, %444 : vector<16x32xf32>
    %446 = vector.shape_cast %425 : vector<32xf32> to vector<1x32xf32>
    %447 = vector.broadcast %446 : vector<1x32xf32> to vector<16x32xf32>
    %448 = arith.mulf %445, %447 : vector<16x32xf32>
    %449 = vector.shape_cast %427 : vector<32xf32> to vector<1x32xf32>
    %450 = vector.broadcast %449 : vector<1x32xf32> to vector<16x32xf32>
    %451 = arith.addf %448, %450 : vector<16x32xf32>
    %c1_131 = arith.constant 1 : index
    %c0_132 = arith.constant 0 : index
    %c0_133 = arith.constant 0 : index
    %452 = vector.load %arg7[%c1_131, %c0_132, %c0_133] : memref<2x128x32xf32, #tpu.memory_space<vmem>>, vector<1x128x32xf32>
    %453 = vector.shape_cast %452 : vector<1x128x32xf32> to vector<128x32xf32>
    %cst_134 = arith.constant dense<0.000000e+00> : vector<16x128xf32>
    %454 = tpu.matmul %451, %453, %cst_134 {dimension_numbers = #tpu.dot_dimension_numbers<[1], [1], [0], [0], [0, 0, 1, 0], [], []>} : vector<16x32xf32>, vector<128x32xf32>, vector<16x128xf32> -> vector<16x128xf32>
    %cst_135 = arith.constant 0.000000e+00 : f32
    %455 = vector.broadcast %cst_135 : f32 to vector<16x128xf32>
    %456 = arith.maximumf %454, %455 : vector<16x128xf32>
    %c1_136 = arith.constant 1 : index
    %c0_137 = arith.constant 0 : index
    %c0_138 = arith.constant 0 : index
    %457 = vector.load %arg8[%c1_136, %c0_137, %c0_138] : memref<2x32x128xf32, #tpu.memory_space<vmem>>, vector<1x32x128xf32>
    %458 = vector.shape_cast %457 : vector<1x32x128xf32> to vector<32x128xf32>
    %cst_139 = arith.constant dense<0.000000e+00> : vector<16x32xf32>
    %459 = tpu.matmul %456, %458, %cst_139 {dimension_numbers = #tpu.dot_dimension_numbers<[1], [1], [0], [0], [0, 0, 1, 0], [], []>} : vector<16x128xf32>, vector<32x128xf32>, vector<16x32xf32> -> vector<16x32xf32>
    %460 = arith.addf %421, %459 : vector<16x32xf32>
    %c0_140 = arith.constant 0 : index
    %c0_141 = arith.constant 0 : index
    %461 = vector.load %arg13[%c0_140, %c0_141] : memref<2x32xf32, #tpu.memory_space<vmem>>, vector<2x32xf32>
    %462 = vector.extract_strided_slice %461 {offsets = [0, 0], sizes = [1, 32], strides = [1, 1]} : vector<2x32xf32> to vector<1x32xf32>
    %463 = vector.shape_cast %462 : vector<1x32xf32> to vector<32xf32>
    %464 = vector.extract_strided_slice %461 {offsets = [1, 0], sizes = [1, 32], strides = [1, 1]} : vector<2x32xf32> to vector<1x32xf32>
    %465 = vector.shape_cast %464 : vector<1x32xf32> to vector<32xf32>
    %cst_142 = arith.constant dense<0.000000e+00> : vector<16xf32>
    %466 = vector.multi_reduction <add>, %460, %cst_142 [1] : vector<16x32xf32> to vector<16xf32>
    %467 = vector.shape_cast %466 : vector<16xf32> to vector<16x1xf32>
    %cst_143 = arith.constant 3.200000e+01 : f32
    %468 = vector.broadcast %cst_143 : f32 to vector<16x1xf32>
    %469 = arith.divf %467, %468 : vector<16x1xf32>
    %470 = arith.mulf %460, %460 : vector<16x32xf32>
    %cst_144 = arith.constant dense<0.000000e+00> : vector<16xf32>
    %471 = vector.multi_reduction <add>, %470, %cst_144 [1] : vector<16x32xf32> to vector<16xf32>
    %472 = vector.shape_cast %471 : vector<16xf32> to vector<16x1xf32>
    %cst_145 = arith.constant 3.200000e+01 : f32
    %473 = vector.broadcast %cst_145 : f32 to vector<16x1xf32>
    %474 = arith.divf %472, %473 : vector<16x1xf32>
    %475 = arith.mulf %469, %469 : vector<16x1xf32>
    %476 = arith.subf %474, %475 : vector<16x1xf32>
    %477 = vector.broadcast %469 : vector<16x1xf32> to vector<16x32xf32>
    %478 = arith.subf %460, %477 : vector<16x32xf32>
    %cst_146 = arith.constant 9.99999974E-6 : f32
    %479 = vector.broadcast %cst_146 : f32 to vector<16x1xf32>
    %480 = arith.addf %476, %479 : vector<16x1xf32>
    %481 = math.rsqrt %480 : vector<16x1xf32>
    %482 = vector.broadcast %481 : vector<16x1xf32> to vector<16x32xf32>
    %483 = arith.mulf %478, %482 : vector<16x32xf32>
    %484 = vector.shape_cast %463 : vector<32xf32> to vector<1x32xf32>
    %485 = vector.broadcast %484 : vector<1x32xf32> to vector<16x32xf32>
    %486 = arith.mulf %483, %485 : vector<16x32xf32>
    %487 = vector.shape_cast %465 : vector<32xf32> to vector<1x32xf32>
    %488 = vector.broadcast %487 : vector<1x32xf32> to vector<16x32xf32>
    %489 = arith.addf %486, %488 : vector<16x32xf32>
    %c0_147 = arith.constant 0 : index
    %c0_148 = arith.constant 0 : index
    %490 = vector.load %arg14[%c0_147, %c0_148] : memref<128x32xf32, #tpu.memory_space<vmem>>, vector<128x32xf32>
    %cst_149 = arith.constant dense<0.000000e+00> : vector<16x128xf32>
    %491 = tpu.matmul %489, %490, %cst_149 {dimension_numbers = #tpu.dot_dimension_numbers<[1], [1], [0], [0], [0, 0, 1, 0], [], []>} : vector<16x32xf32>, vector<128x32xf32>, vector<16x128xf32> -> vector<16x128xf32>
    %c0_150 = arith.constant 0 : index
    %c0_151 = arith.constant 0 : index
    %492 = vector.load %arg15[%c0_150, %c0_151] : memref<16x128xf32, #tpu.memory_space<vmem>>, vector<16x128xf32>
    tpu.vector_store %arg15[%c0_150, %c0_151], %491 {strides = array<i32>} : memref<16x128xf32, #tpu.memory_space<vmem>>, vector<16x128xf32>,
    return
  }
  func.func @transform_0(%arg0: i32) -> (i32, i32) {
    %c0_i32 = arith.constant 0 : i32
    %c0_i32_0 = arith.constant 0 : i32
    %c0_i32_1 = arith.constant 0 : i32
    return %c0_i32, %c0_i32_0 : i32, i32
  }
  func.func @transform_1(%arg0: i32) -> (i32, i32) {
    %c0_i32 = arith.constant 0 : i32
    %c0_i32_0 = arith.constant 0 : i32
    %c0_i32_1 = arith.constant 0 : i32
    return %c0_i32, %c0_i32_0 : i32, i32
  }
  func.func @transform_2(%arg0: i32) -> (i32, i32) {
    %c0_i32 = arith.constant 0 : i32
    %c0_i32_0 = arith.constant 0 : i32
    %c0_i32_1 = arith.constant 0 : i32
    return %c0_i32, %c0_i32_0 : i32, i32
  }
  func.func @transform_3(%arg0: i32) -> (i32, i32) {
    %c0_i32 = arith.constant 0 : i32
    %c0_i32_0 = arith.constant 0 : i32
    %c0_i32_1 = arith.constant 0 : i32
    return %c0_i32, %c0_i32_0 : i32, i32
  }
  func.func @transform_4(%arg0: i32) -> (i32, i32, i32) {
    %c0_i32 = arith.constant 0 : i32
    %c0_i32_0 = arith.constant 0 : i32
    %c0_i32_1 = arith.constant 0 : i32
    %c0_i32_2 = arith.constant 0 : i32
    return %c0_i32, %c0_i32_0, %c0_i32_1 : i32, i32, i32
  }
  func.func @transform_5(%arg0: i32) -> (i32, i32, i32) {
    %c0_i32 = arith.constant 0 : i32
    %c0_i32_0 = arith.constant 0 : i32
    %c0_i32_1 = arith.constant 0 : i32
    %c0_i32_2 = arith.constant 0 : i32
    return %c0_i32, %c0_i32_0, %c0_i32_1 : i32, i32, i32
  }
  func.func @transform_6(%arg0: i32) -> (i32, i32, i32) {
    %c0_i32 = arith.constant 0 : i32
    %c0_i32_0 = arith.constant 0 : i32
    %c0_i32_1 = arith.constant 0 : i32
    %c0_i32_2 = arith.constant 0 : i32
    return %c0_i32, %c0_i32_0, %c0_i32_1 : i32, i32, i32
  }
  func.func @transform_7(%arg0: i32) -> (i32, i32, i32) {
    %c0_i32 = arith.constant 0 : i32
    %c0_i32_0 = arith.constant 0 : i32
    %c0_i32_1 = arith.constant 0 : i32
    %c0_i32_2 = arith.constant 0 : i32
    return %c0_i32, %c0_i32_0, %c0_i32_1 : i32, i32, i32
  }
  func.func @transform_8(%arg0: i32) -> (i32, i32, i32) {
    %c0_i32 = arith.constant 0 : i32
    %c0_i32_0 = arith.constant 0 : i32
    %c0_i32_1 = arith.constant 0 : i32
    %c0_i32_2 = arith.constant 0 : i32
    return %c0_i32, %c0_i32_0, %c0_i32_1 : i32, i32, i32
  }
  func.func @transform_9(%arg0: i32) -> (i32, i32, i32) {
    %c0_i32 = arith.constant 0 : i32
    %c0_i32_0 = arith.constant 0 : i32
    %c0_i32_1 = arith.constant 0 : i32
    %c0_i32_2 = arith.constant 0 : i32
    return %c0_i32, %c0_i32_0, %c0_i32_1 : i32, i32, i32
  }
  func.func @transform_10(%arg0: i32) -> (i32, i32, i32) {
    %c0_i32 = arith.constant 0 : i32
    %c0_i32_0 = arith.constant 0 : i32
    %c0_i32_1 = arith.constant 0 : i32
    %c0_i32_2 = arith.constant 0 : i32
    return %c0_i32, %c0_i32_0, %c0_i32_1 : i32, i32, i32
  }
  func.func @transform_11(%arg0: i32) -> (i32, i32, i32) {
    %c0_i32 = arith.constant 0 : i32
    %c0_i32_0 = arith.constant 0 : i32
    %c0_i32_1 = arith.constant 0 : i32
    %c0_i32_2 = arith.constant 0 : i32
    return %c0_i32, %c0_i32_0, %c0_i32_1 : i32, i32, i32
  }
  func.func @transform_12(%arg0: i32) -> (i32, i32) {
    %c0_i32 = arith.constant 0 : i32
    %c0_i32_0 = arith.constant 0 : i32
    %c0_i32_1 = arith.constant 0 : i32
    return %c0_i32, %c0_i32_0 : i32, i32
  }
  func.func @transform_13(%arg0: i32) -> (i32, i32) {
    %c0_i32 = arith.constant 0 : i32
    %c0_i32_0 = arith.constant 0 : i32
    %c0_i32_1 = arith.constant 0 : i32
    return %c0_i32, %c0_i32_0 : i32, i32
  }
  func.func @transform_14(%arg0: i32) -> (i32, i32) {
    %c0_i32 = arith.constant 0 : i32
    %c0_i32_0 = arith.constant 0 : i32
    %c0_i32_1 = arith.constant 0 : i32
    return %c0_i32, %c0_i32_0 : i32, i32
  }
}

</mosaic_0001>

<bundles_post_ra>
// kernel: forward.1
= control target key start
LH: loop header
LB: loop body
LE: loop exit
PB: predicated region body
PF: predicated region fallthrough
CT: control target
= control target key end

     0   :  { %v2283_v2 = vmov 0   ;;  %s3266_s0 = inlined_call_operand.vmem [shape: s32[16,1], index: 0, kind: input, shape index: {}]   ;;  %s3267_s1 = inlined_call_operand.vmem [shape: f32[96,32], index: 1, kind: input, shape index: {}]   ;;  %s3268_s2 = inlined_call_operand.vmem [shape: f32[16,32], index: 2, kind: input, shape index: {}]   ;;  %s3269_s3 = inlined_call_operand.vmem [shape: f32[16,16], index: 3, kind: input, shape index: {}]   ;;  %s3270_s4 = inlined_call_operand.vmem [shape: f32[2,96,32], index: 4, kind: input, shape index: {}]   ;;  %s3271_s5 = inlined_call_operand.vmem [shape: f32[2,32,32], index: 5, kind: input, shape index: {}]   ;;  %s3272_s6 = inlined_call_operand.vmem [shape: f32[2,128,32], index: 6, kind: input, shape index: {}]   ;;  %s3273_s7 = inlined_call_operand.vmem [shape: f32[2,32,128], index: 7, kind: input, shape index: {}]   ;;  %s3274_s8 = inlined_call_operand.vmem [shape: f32[2,2,32], index: 8, kind: input, shape index: {}]   ;;  %s3275_s9 = inlined_call_operand.vmem [shape: f32[2,2,16], index: 9, kind: input, shape index: {}]   ;;  %s3276_s10 = inlined_call_operand.vmem [shape: f32[2,2,16], index: 10, kind: input, shape index: {}]   ;;  %s3277_s11 = inlined_call_operand.vmem [shape: f32[2,2,32], index: 11, kind: input, shape index: {}]   ;;  %s3278_s12 = inlined_call_operand.vmem [shape: f32[2,32], index: 12, kind: input, shape index: {}]   ;;  %s3279_s13 = inlined_call_operand.vmem [shape: f32[128,32], index: 13, kind: input, shape index: {}]   ;;  %s3280_s14 = inlined_call_operand.hbm [shape: f32[16,128], index: 14, kind: output, shape index: {}]  }
   0x1   :  { %v48_v0 = vld [vmem:[%s3266_s0] sm:$0xff]  ;;  %v75_v1 = vld [vmem:[%s3267_s1 + $0x58] sm:$0xff]  ;;  %2146 = vset.pattern.permute.xlu0 %v2283_v2  ;;  %v74_v3 = vld [vmem:[%s3267_s1 + $0x50] sm:$0xff] }
   0x2   :  { %89 = vmatpush.msra.mxu2 %v75_v1  ;;  %53 = vperm.xlu0 %2146, %v48_v0   ;;  %v73_v4 = vld [vmem:[%s3267_s1 + $0x48] sm:$0xff]  ;;  %v72_v5 = vld [vmem:[%s3267_s1 + $0x40] sm:$0xff] }
   0x4   :  { %90 = vmatpush.msra.mxu2 %v74_v3 }
   0x5   :  { %19 = vsyncpa [#allocation3], 0  ;;  %v71_v6 = vld [vmem:[%s3267_s1 + $0x38] sm:$0xff]  ;;  %v49_v7 = vld [vmem:[%s3266_s0 + $0x8] sm:$0xff]  ;;  %v50_v15 = vlaneseq  ;;  %vm78_vm0 = vcmask 785408   ;;  %v2284_v18 = vmov 0.0  }
   0x6   :  { %91 = vmatpush.msra.mxu2 %v73_v4  ;;  %v70_v8 = vld [vmem:[%s3267_s1 + $0x30] sm:$0xff]  ;;  %v69_v9 = vld [vmem:[%s3267_s1 + $0x28] sm:$0xff]  ;;  %v68_v10 = vld [vmem:[%s3267_s1 + $0x20] sm:$0xff]  ;;  %vm111_vm3 = vcmask 261120   ;;  %v2285_v39 = vmov 32.0   ;;  %s2286_s17 = smov 96  }
   0x7   :  { %v67_v11 = vld [vmem:[%s3267_s1 + $0x18] sm:$0xff]  ;;  %v66_v12 = vld [vmem:[%s3267_s1 + $0x10] sm:$0xff]  ;;  %v65_v13 = vld [vmem:[%s3267_s1 + $0x8] sm:$0xff]  ;;  %v51_v16 = vand.u32 127, %v50_v15  ;;  %2167 = vrcp.f32 %v2285_v39  ;;  %vm252_vm11 = vcmask 130048   ;;  %s2287_s19 = smov 32  }
   0x8   :  { %92 = vmatpush.msra.mxu2 %v72_v5  ;;  %v64_v14 = vld [vmem:[%s3267_s1] sm:$0xff]  ;;  %v184_v22 = vld [vmem:[%s3270_s4 + $0x58] sm:$0xff]  ;;  %v183_v23 = vld [vmem:[%s3270_s4 + $0x50] sm:$0xff]  ;;  %s2289_s20 = smov 112   ;;  %s2290_s21 = smov 80  }
   0x9   :  { %1974 = vmatpush.xpose.msk.msra.mxu1 %vm111_vm3, %v184_v22  ;;  %v182_v24 = vld [vmem:[%s3270_s4 + $0x48] sm:$0xff]  ;;  %v76_v25 = vld [vmem:[%s3268_s2] sm:$0xff]  ;;  %v180_v38 = vld [vmem:[%s3270_s4 + $0x38] sm:$0xff]  ;;  %s2291_s24 = smov 48   ;;  %s2292_s25 = smov 16  }
   0xa   :  { %93 = vmatpush.msra.mxu2 %v71_v6  ;;  %56 = vperm.xlu0 %2146, %v49_v7   ;;  %v77_v29 = vld [vmem:[%s3268_s2 + $0x8] sm:$0xff]  ;;  %v181_v37 = vld [vmem:[%s3270_s4 + $0x40] sm:$0xff]  ;;  %v179_v40 = vld [vmem:[%s3270_s4 + $0x30] sm:$0xff]  ;;  %s2293_s1 = smov 64   ;;  %s1958_s22 = sshll.u32 %s3280_s14, 4  ;;  %s1959_s22 = int_to_ptr.hbm [resolvable:$true] %s1958_s22 }
   0xb   :  { %v178_v42 = vld [vmem:[%s3270_s4 + $0x28] sm:$0xff]  ;;  %v177_v44 = vld [vmem:[%s3270_s4 + $0x20] sm:$0xff]  ;;  %v176_v46 = vld [vmem:[%s3270_s4 + $0x18] sm:$0xff]  ;;  %s2295_s23 = smov 128   ;;  %s2296_s26 = smov 8  }
   0xc   :  { %94 = vmatpush.msra.mxu2 %v70_v8  ;;  %v175_v48 = vld [vmem:[%s3270_s4 + $0x10] sm:$0xff]  ;;  %v174_v50 = vld [vmem:[%s3270_s4 + $0x8] sm:$0xff]  ;;  %v173_v53 = vld [vmem:[%s3270_s4] sm:$0xff] }
   0xd   :  { %1975 = vmatpush.xpose.msk.msra.mxu1 %vm111_vm3, %v183_v23  ;;  %v2168_v41 = vpop.eup %2167  ;;  %v110_v8 = vld [vmem:[%s3274_s8] sm:$0x3] }
   0xe   :  { %95 = vmatpush.msra.mxu2 %v69_v9  ;;  %v119_v43 = vmul.f32 32.0, %v2168_v41  ;;  %vm123_vm4 = vweird.f32 %v2168_v41 }
  0x10   :  { %96 = vmatpush.msra.mxu2 %v68_v10  ;;  %v120_v45 = vsub.f32 1.0, %v119_v43 }
  0x11   :  { %1976 = vmatpush.xpose.msk.msra.mxu1 %vm111_vm3, %v182_v24 }
  0x12   :  { %97 = vmatpush.msra.mxu2 %v67_v11  ;;  %v121_v47 = vmul.f32 %v2168_v41, %v120_v45  ;;  %v2528_v45 = vld [vmem:[%s3276_s10] sm:$0x3] }
  0x14   :  { %98 = vmatpush.msra.mxu2 %v66_v12  ;;  %v122_v49 = vadd.f32 %v2168_v41, %v121_v47  ;;  %v383_v47 = vperm.slane %v2528_v45, 1 }
  0x15   :  { %1977 = vmatpush.xpose.msk.msra.mxu1 %vm111_vm3, %v181_v37 }
  0x16   :  { %99 = vmatpush.msra.mxu2 %v65_v13  ;;  %v2478_v52 = vsel %vm123_vm4, %v2168_v41, %v122_v49  ;;  %v167_v13 = vperm.slane %v110_v8, 0  ;;  %v2288_v49 = vmov 16.0  }
  0x18   :  { %100 = vmatpush.msra.mxu2 %v64_v14 }
  0x19   :  { %1978 = vmatpush.xpose.msk.msra.mxu1 %vm111_vm3, %v180_v38 }
  0x1d   :  { %1979 = vmatpush.xpose.msk.msra.mxu1 %vm111_vm3, %v179_v40 }
  0x21   :  { %1980 = vmatpush.xpose.msk.msra.mxu1 %vm111_vm3, %v178_v42 }
  0x25   :  { %1981 = vmatpush.xpose.msk.msra.mxu1 %vm111_vm3, %v177_v44 }
  0x29   :  { %1982 = vmatpush.xpose.msk.msra.mxu1 %vm111_vm3, %v176_v46  ;;  %v376_v46 = vperm.slane %v2528_v45, 0 }
  0x2d   :  { %1983 = vmatpush.xpose.msk.msra.mxu1 %vm111_vm3, %v175_v48 }
  0x31   :  { %1984 = vmatpush.xpose.msk.msra.mxu1 %vm111_vm3, %v174_v50 }
  0x35   :  { %1985 = vmatpush.xpose.msk.msra.mxu1 %vm111_vm3, %v173_v53 }
  0x74   :  { %v54_v17 = vpop.permute.xlu0 %53 }
  0x75   :  { %vm58_vm1 = vcmp.eq.s32.totalorder %v54_v17, %v51_v16  ;;  %v170_v17 = vperm.slane %v110_v8, 1 }
  0x76   :  { %v1970_v19 = vsel %vm58_vm1, 1.0, %v2284_v18 }
  0x77   :  { %1972 = vmatmul.msk.f32.vlgmr.msra.gmra.mxu2 %vm78_vm0, %v1970_v19 }
  0x7c   :  { %v57_v20 = vpop.permute.xlu0 %56 }
  0x7d   :  { %vm59_vm2 = vcmp.eq.s32.totalorder %v57_v20, %v51_v16 }
  0x7e   :  { %v1971_v21 = vsel %vm59_vm2, 1.0, %v2284_v18 }
  0x7f   :  { %1973 = vmatmul.msk.f32.gmra.mxu2 %vm78_vm0, %v1971_v21 }
  0xfa   :  { %v102_v26 = vpop.f32.mrf.mxu2 }
  0xfb   :  { %v2429_v27 = vadd.f32 %v102_v26, %v76_v25 }
  0xfd   :  { %v112_v28 = vsel %vm111_vm3, %v2429_v27, 0.0  ;;  %v127_v30 = vmul.f32 %v2429_v27, %v2429_v27 }
  0xfe   :  { %113 = vadd.xlane.f32.xlu1 %v112_v28 }
  0xff   :  { %v129_v33 = vsel %vm111_vm3, %v127_v30, 0.0 }
 0x102   :  { %v105_v31 = vpop.f32.mrf.mxu2 }
 0x103   :  { %v2438_v32 = vadd.f32 %v105_v31, %v77_v29 }
 0x105   :  { %v115_v34 = vsel %vm111_vm3, %v2438_v32, 0.0  ;;  %v128_v35 = vmul.f32 %v2438_v32, %v2438_v32 }
 0x106   :  { %130 = vadd.xlane.f32.xlu1 %v129_v33  ;;  %116 = vadd.xlane.f32.xlu2 %v115_v34 }
 0x107   :  { %v132_v36 = vsel %vm111_vm3, %v128_v35, 0.0 }
 0x10e   :  { %133 = vadd.xlane.f32.xlu2 %v132_v36 }
 0x171   :  { %v114_v51 = vpop.xlane.xlu1 %113 }
 0x172   :  { %v125_v54 = vmul.f32 %v2478_v52, %v114_v51 }
 0x174   :  { %v137_v57 = vmul.f32 %v125_v54, %v125_v54  ;;  %v141_v12 = vsub.f32 %v2429_v27, %v125_v54 }
 0x179   :  { %v131_v55 = vpop.xlane.xlu1 %130  ;;  %v117_v56 = vpop.xlane.xlu2 %116 }
 0x17a   :  { %v135_v58 = vmul.f32 %v131_v55, %v2478_v52  ;;  %v126_v61 = vmul.f32 %v2478_v52, %v117_v56 }
 0x17c   :  { %v139_v59 = vsub.f32 %v135_v58, %v137_v57  ;;  %v138_v63 = vmul.f32 %v126_v61, %v126_v61  ;;  %v142_v23 = vsub.f32 %v2438_v32, %v126_v61 }
 0x17e   :  { %v143_v60 = vadd.f32 1e-05, %v139_v59 }
 0x180   :  { %2169 = vrsqrt.f32 %v143_v60  ;;  %vm151_vm6 = vweird.f32 %v143_v60 }
 0x181   :  { %v134_v62 = vpop.xlane.xlu2 %133 }
 0x182   :  { %v136_v0 = vmul.f32 %v134_v62, %v2478_v52 }
 0x184   :  { %v140_v1 = vsub.f32 %v136_v0, %v138_v63 }
 0x186   :  { %v2170_v2 = vpop.eup %2169  ;;  %v144_v3 = vadd.f32 1e-05, %v140_v1 }
 0x187   :  { %v146_v4 = vmul.f32 %v2170_v2, %v143_v60  ;;  %vm152_vm5 = vweird.f32 %v2170_v2 }
 0x188   :  { %2171 = vrsqrt.f32 %v144_v3  ;;  %vm153_vm7 = vmor %vm151_vm6, %vm152_vm5  ;;  %vm161_vm9 = vweird.f32 %v144_v3 }
 0x189   :  { %v147_v5 = vmul.f32 %v2170_v2, %v146_v4  ;;  %2173 = vrcp.f32 %v2288_v49 }
 0x18b   :  { %v148_v6 = vmul.f32 0.5, %v147_v5 }
 0x18d   :  { %v149_v7 = vsub.f32 1.5, %v148_v6 }
 0x18e   :  { %v2172_v9 = vpop.eup %2171 }
 0x18f   :  { %v150_v10 = vmul.f32 %v2170_v2, %v149_v7  ;;  %v156_v11 = vmul.f32 %v2172_v9, %v144_v3  ;;  %vm162_vm8 = vweird.f32 %v2172_v9  ;;  %v2174_v50 = vpop.eup %2173 }
 0x190   :  { %vm163_vm10 = vmor %vm161_vm9, %vm162_vm8  ;;  %v260_v51 = vmul.f32 16.0, %v2174_v50  ;;  %vm264_vm12 = vweird.f32 %v2174_v50 }
 0x191   :  { %v157_v14 = vmul.f32 %v2172_v9, %v156_v11  ;;  %v154_v15 = vsel %vm153_vm7, %v2170_v2, %v150_v10 }
 0x192   :  { %v165_v16 = vmul.f32 %v154_v15, %v141_v12  ;;  %v261_v53 = vsub.f32 1.0, %v260_v51 }
 0x193   :  { %v158_v18 = vmul.f32 0.5, %v157_v14 }
 0x194   :  { %v168_v19 = vmul.f32 %v167_v13, %v165_v16  ;;  %v262_v54 = vmul.f32 %v2174_v50, %v261_v53 }
 0x195   :  { %v159_v20 = vsub.f32 1.5, %v158_v18 }
 0x196   :  { %v171_v21 = vadd.f32 %v170_v17, %v168_v19  ;;  %v263_v55 = vadd.f32 %v2174_v50, %v262_v54 }
 0x197   :  { %v160_v22 = vmul.f32 %v2172_v9, %v159_v20 }
 0x198   :  { %1986 = vmatmul.msk.f32.vlgmr.msra.gmra.mxu1 %vm111_vm3, %v171_v21  ;;  %v2542_v56 = vsel %vm264_vm12, %v2174_v50, %v263_v55 }
 0x199   :  { %v164_v24 = vsel %vm163_vm10, %v2172_v9, %v160_v22 }
 0x19a   :  { %v166_v25 = vmul.f32 %v164_v24, %v142_v23 }
 0x19c   :  { %v169_v26 = vmul.f32 %v167_v13, %v166_v25 }
 0x19e   :  { %v172_v28 = vadd.f32 %v170_v17, %v169_v26 }
 0x1a0   :  { %1987 = vmatmul.msk.f32.gmra.mxu1 %vm111_vm3, %v172_v28 }
 0x215   :  { %v2495_v29 = vpop.f32.mrf.mxu1 }
 0x216   :  { %316 = vrot.lane.b32.xlu2 %v2495_v29, %s2286_s17  ;;  %v2511_v33 = vmul.f32 %v2495_v29, %v2495_v29  ;;  %v253_v36 = vsel %vm252_vm11, %v2495_v29, 0.0 }
 0x218   :  { %v270_v37 = vsel %vm252_vm11, %v2511_v33, 0.0 }
 0x21d   :  { %v2499_v30 = vpop.f32.mrf.mxu1 }
 0x21e   :  { %318 = vrot.lane.b32.xlu0 %v2499_v30, %s2286_s17  ;;  %v2505_v31 = vmul.f32 %v2499_v30, %v2499_v30  ;;  %v256_v38 = vsel %vm252_vm11, %v2499_v30, 0.0 }
 0x220   :  { %334 = vrot.lane.b32.xlu1 %v2505_v31, %s2286_s17  ;;  %v273_v48 = vsel %vm252_vm11, %v2505_v31, 0.0 }
 0x226   :  { %332 = vrot.lane.b32.xlu0 %v2511_v33, %s2286_s17 }
 0x270   :  { %v317_v34 = vpop.permute.xlu2 %316 }
 0x271   :  { %v322_v35 = vsel %vm252_vm11, %v317_v34, 0.0 }
 0x272   :  { %323 = vadd.xlane.f32.xlu1 %v322_v35 }
 0x27a   :  { %254 = vadd.xlane.f32.xlu1 %v253_v36 }
 0x282   :  { %271 = vadd.xlane.f32.xlu1 %v270_v37 }
 0x28a   :  { %257 = vadd.xlane.f32.xlu1 %v256_v38 }
 0x290   :  { %v319_v39 = vpop.permute.xlu0 %318 }
 0x291   :  { %v325_v44 = vsel %vm252_vm11, %v319_v39, 0.0 }
 0x292   :  { %v335_v40 = vpop.permute.xlu1 %334 }
 0x293   :  { %v341_v41 = vsel %vm252_vm11, %v335_v40, 0.0 }
 0x294   :  { %342 = vadd.xlane.f32.xlu2 %v341_v41 }
 0x298   :  { %v333_v42 = vpop.permute.xlu0 %332 }
 0x299   :  { %v338_v43 = vsel %vm252_vm11, %v333_v42, 0.0 }
 0x29a   :  { %339 = vadd.xlane.f32.xlu0 %v338_v43 }
 0x2a2   :  { %326 = vadd.xlane.f32.xlu0 %v325_v44 }
 0x2ac   :  { %378 = vrot.lane.b32.xlu2 %v376_v46, %s2287_s19 }
 0x2b6   :  { %385 = vrot.lane.b32.xlu0 %v383_v47, %s2287_s19 }
 0x2e0   :  { %274 = vadd.xlane.f32.xlu0 %v273_v48 }
 0x2e5   :  { %v324_v57 = vpop.xlane.xlu1 %323 }
 0x2e6   :  { %v328_v58 = vmul.f32 %v324_v57, %v2542_v56 }
 0x2e8   :  { %v346_v60 = vmul.f32 %v328_v58, %v328_v58  ;;  %v350_v14 = vsub.f32 %v2495_v29, %v328_v58 }
 0x2ed   :  { %v255_v37 = vpop.xlane.xlu1 %254 }
 0x2ee   :  { %v266_v39 = vmul.f32 %v2542_v56, %v255_v37 }
 0x2f0   :  { %v278_v40 = vmul.f32 %v266_v39, %v266_v39 }
 0x2f4   :  { %488 = vrot.lane.b32.xlu0 %v2499_v30, %s2289_s20 }
 0x2f5   :  { %v272_v38 = vpop.xlane.xlu1 %271 }
 0x2fd   :  { %v258_v41 = vpop.xlane.xlu1 %257 }
 0x2fe   :  { %v267_v44 = vmul.f32 %v2542_v56, %v258_v41 }
 0x300   :  { %v279_v50 = vmul.f32 %v267_v44, %v267_v44 }
 0x307   :  { %v343_v0 = vpop.xlane.xlu2 %342 }
 0x308   :  { %v345_v3 = vmul.f32 %v343_v0, %v2542_v56 }
 0x30d   :  { %v340_v59 = vpop.xlane.xlu0 %339 }
 0x30e   :  { %v344_v61 = vmul.f32 %v340_v59, %v2542_v56 }
 0x30f   :  { %v379_v17 = vpop.permute.xlu2 %378 }
 0x310   :  { %v348_v62 = vsub.f32 %v344_v61, %v346_v60 }
 0x312   :  { %v352_v63 = vadd.f32 1e-05, %v348_v62 }
 0x314   :  { %2175 = vrsqrt.f32 %v352_v63  ;;  %vm360_vm14 = vweird.f32 %v352_v63 }
 0x315   :  { %v327_v1 = vpop.xlane.xlu0 %326 }
 0x316   :  { %v329_v2 = vmul.f32 %v327_v1, %v2542_v56 }
 0x318   :  { %v347_v4 = vmul.f32 %v329_v2, %v329_v2  ;;  %v351_v26 = vsub.f32 %v2499_v30, %v329_v2 }
 0x31a   :  { %v2176_v5 = vpop.eup %2175  ;;  %v349_v6 = vsub.f32 %v345_v3, %v347_v4  ;;  %v250_v3 = vld [vmem:[%s3275_s9] sm:$0x3]  ;;  %v282_v4 = vsub.f32 %v2495_v29, %v266_v39  ;;  %v2597_v39 = vpack.i.bf16 %v2495_v29, %v2499_v30 }
 0x31b   :  { %v355_v7 = vmul.f32 %v2176_v5, %v352_v63  ;;  %vm361_vm13 = vweird.f32 %v2176_v5 }
 0x31c   :  { %v353_v8 = vadd.f32 1e-05, %v349_v6  ;;  %vm362_vm15 = vmor %vm360_vm14, %vm361_vm13 }
 0x31d   :  { %v356_v9 = vmul.f32 %v2176_v5, %v355_v7  ;;  %v2575_v7 = vperm.slane %v250_v3, 0 }
 0x31e   :  { %2177 = vrsqrt.f32 %v353_v8  ;;  %vm370_vm1 = vweird.f32 %v353_v8 }
 0x31f   :  { %v357_v10 = vmul.f32 0.5, %v356_v9 }
 0x321   :  { %v358_v11 = vsub.f32 1.5, %v357_v10 }
 0x323   :  { %v359_v12 = vmul.f32 %v2176_v5, %v358_v11  ;;  %v311_v11 = vperm.slane %v250_v3, 1 }
 0x324   :  { %v2178_v13 = vpop.eup %2177 }
 0x325   :  { %v365_v15 = vmul.f32 %v2178_v13, %v353_v8  ;;  %v363_v16 = vsel %vm362_vm15, %v2176_v5, %v359_v12  ;;  %vm371_vm0 = vweird.f32 %v2178_v13 }
 0x326   :  { %v374_v18 = vmul.f32 %v363_v16, %v350_v14  ;;  %vm372_vm2 = vmor %vm370_vm1, %vm371_vm0 }
 0x327   :  { %v366_v19 = vmul.f32 %v2178_v13, %v365_v15 }
 0x328   :  { %v381_v20 = vmul.f32 %v379_v17, %v374_v18  ;;  %v386_v21 = vpop.permute.xlu0 %385 }
 0x329   :  { %v367_v22 = vmul.f32 0.5, %v366_v19 }
 0x32a   :  { %v388_v23 = vadd.f32 %v386_v21, %v381_v20 }
 0x32b   :  { %v368_v24 = vsub.f32 1.5, %v367_v22 }
 0x32c   :  { %392 = vrot.lane.b32.xlu1 %v388_v23, %s2286_s17 }
 0x32d   :  { %v369_v25 = vmul.f32 %v2178_v13, %v368_v24 }
 0x32f   :  { %v373_v28 = vsel %vm372_vm2, %v2178_v13, %v369_v25  ;;  %v283_v13 = vsub.f32 %v2499_v30, %v267_v44 }
 0x330   :  { %v375_v34 = vmul.f32 %v373_v28, %v351_v26 }
 0x332   :  { %v382_v35 = vmul.f32 %v379_v17, %v375_v34 }
 0x334   :  { %v389_v36 = vadd.f32 %v386_v21, %v382_v35  ;;  %570 = vrot.lane.b32.xlu1 %v2511_v33, %s2290_s21 }
 0x336   :  { %394 = vrot.lane.b32.xlu2 %v389_v36, %s2286_s17 }
 0x33c   :  { %500 = vrot.lane.b32.xlu1 %v2511_v33, %s2289_s20  ;;  %v276_v33 = vmul.f32 %v272_v38, %v2542_v56 }
 0x33e   :  { %558 = vrot.lane.b32.xlu2 %v2499_v30, %s2290_s21  ;;  %v280_v42 = vsub.f32 %v276_v33, %v278_v40 }
 0x340   :  { %v284_v48 = vadd.f32 1e-05, %v280_v42 }
 0x342   :  { %2179 = vrsqrt.f32 %v284_v48  ;;  %vm292_vm5 = vweird.f32 %v284_v48 }
 0x346   :  { %572 = vrot.lane.b32.xlu2 %v2505_v31, %s2290_s21 }
 0x348   :  { %v2180_v54 = vpop.eup %2179 }
 0x349   :  { %vm293_vm4 = vweird.f32 %v2180_v54 }
 0x34a   :  { %vm294_vm6 = vmor %vm292_vm5, %vm293_vm4 }
 0x34e   :  { %556 = vrot.lane.b32.xlu2 %v2495_v29, %s2290_s21 }
 0x353   :  { %v275_v43 = vpop.xlane.xlu0 %274 }
 0x354   :  { %v277_v49 = vmul.f32 %v275_v43, %v2542_v56 }
 0x356   :  { %486 = vrot.lane.b32.xlu2 %v2495_v29, %s2289_s20  ;;  %v281_v51 = vsub.f32 %v277_v49, %v279_v50 }
 0x358   :  { %v285_v53 = vadd.f32 1e-05, %v281_v51 }
 0x35a   :  { %2181 = vrsqrt.f32 %v285_v53  ;;  %vm302_vm8 = vweird.f32 %v285_v53 }
 0x35e   :  { %502 = vrot.lane.b32.xlu2 %v2505_v31, %s2289_s20  ;;  %v287_v31 = vmul.f32 %v2180_v54, %v284_v48 }
 0x360   :  { %v288_v55 = vmul.f32 %v2180_v54, %v287_v31  ;;  %v2182_v57 = vpop.eup %2181 }
 0x361   :  { %v297_v59 = vmul.f32 %v2182_v57, %v285_v53  ;;  %vm303_vm7 = vweird.f32 %v2182_v57  ;;  %v2619_v53 = vld [vmem:[%s3269_s3] sm:$0xff] }
 0x362   :  { %v289_v58 = vmul.f32 0.5, %v288_v55  ;;  %vm304_vm9 = vmor %vm302_vm8, %vm303_vm7 }
 0x363   :  { %v298_v61 = vmul.f32 %v2182_v57, %v297_v59 }
 0x364   :  { %v290_v60 = vsub.f32 1.5, %v289_v58 }
 0x365   :  { %v299_v0 = vmul.f32 0.5, %v298_v61 }
 0x366   :  { %v291_v63 = vmul.f32 %v2180_v54, %v290_v60  ;;  %v489_v35 = vpop.permute.xlu0 %488 }
 0x367   :  { %v300_v2 = vsub.f32 1.5, %v299_v0  ;;  %v495_v37 = vsel %vm252_vm11, %v489_v35, 0.0 }
 0x368   :  { %v295_v1 = vsel %vm294_vm6, %v2180_v54, %v291_v63 }
 0x369   :  { %v306_v6 = vmul.f32 %v295_v1, %v282_v4  ;;  %v301_v8 = vmul.f32 %v2182_v57, %v300_v2  ;;  %v2631_v2 = vld [vmem:[%s3269_s3 + $0x8] sm:$0xff] }
 0x36b   :  { %v309_v10 = vmul.f32 %v2575_v7, %v306_v6  ;;  %v305_v12 = vsel %vm304_vm9, %v2182_v57, %v301_v8 }
 0x36c   :  { %v307_v17 = vmul.f32 %v305_v12, %v283_v13 }
 0x36d   :  { %v312_v16 = vadd.f32 %v311_v11, %v309_v10 }
 0x36e   :  { %v310_v19 = vmul.f32 %v2575_v7, %v307_v17 }
 0x370   :  { %v313_v23 = vadd.f32 %v311_v11, %v310_v19 }
 0x390   :  { %v395_v62 = vpop.permute.xlu2 %394 }
 0x391   :  { %1988 = vmatpush.xpose.msk.msrb.mxu2 %vm252_vm11, %v395_v62 }
 0x398   :  { %v559_v5 = vpop.permute.xlu2 %558 }
 0x399   :  { %v565_v9 = vsel %vm252_vm11, %v559_v5, 0.0 }
 0x39a   :  { %566 = vadd.xlane.f32.xlu1 %v565_v9 }
 0x39e   :  { %v393_v14 = vpop.permute.xlu1 %392 }
 0x39f   :  { %1989 = vmatpush.xpose.msk.msrb.mxu2 %vm252_vm11, %v393_v14 }
 0x3a0   :  { %v573_v15 = vpop.permute.xlu2 %572 }
 0x3a1   :  { %v579_v18 = vsel %vm252_vm11, %v573_v15, 0.0 }
 0x3a2   :  { %580 = vadd.xlane.f32.xlu0 %v579_v18  ;;  %1990 = vmatmul.msk.f32.vlgmr.msrb.gmra.mxu2 %vm252_vm11, %v312_v16 }
 0x3a6   :  { %v571_v20 = vpop.permute.xlu1 %570 }
 0x3a7   :  { %v576_v21 = vsel %vm252_vm11, %v571_v20, 0.0 }
 0x3a8   :  { %v557_v22 = vpop.permute.xlu2 %556  ;;  %577 = vadd.xlane.f32.xlu2 %v576_v21 }
 0x3a9   :  { %v562_v24 = vsel %vm252_vm11, %v557_v22, 0.0 }
 0x3aa   :  { %563 = vadd.xlane.f32.xlu1 %v562_v24  ;;  %1991 = vmatmul.msk.f32.gmra.mxu2 %vm252_vm11, %v313_v23 }
 0x3ae   :  { %v501_v25 = vpop.permute.xlu1 %500 }
 0x3af   :  { %v506_v26 = vsel %vm252_vm11, %v501_v25, 0.0 }
 0x3b0   :  { %v487_v28 = vpop.permute.xlu2 %486  ;;  %507 = vadd.xlane.f32.xlu0 %v506_v26 }
 0x3b1   :  { %v492_v34 = vsel %vm252_vm11, %v487_v28, 0.0 }
 0x3b2   :  { %493 = vadd.xlane.f32.xlu1 %v492_v34 }
 0x3b8   :  { %v503_v36 = vpop.permute.xlu2 %502 }
 0x3b9   :  { %v509_v38 = vsel %vm252_vm11, %v503_v36, 0.0 }
 0x3ba   :  { %496 = vadd.xlane.f32.xlu1 %v495_v37  ;;  %510 = vadd.xlane.f32.xlu2 %v509_v38 }
 0x3c4   :  { %614 = vrot.lane.b32.xlu0 %v376_v46, %s2291_s24 }
 0x3cc   :  { %551 = vrot.lane.b32.xlu0 %v311_v11, %s2292_s25 }
 0x3d3   :  { %619 = vrot.lane.b32.xlu1 %v383_v47, %s2291_s24 }
 0x3d4   :  { %2148 = vrot.lane.b32.xlu0 %v2597_v39, %s2293_s1 }
 0x40d   :  { %v567_v33 = vpop.xlane.xlu1 %566 }
 0x40e   :  { %v2605_v40 = vmul.f32 %v567_v33, %v2542_v56 }
 0x410   :  { %v585_v42 = vmul.f32 %v2605_v40, %v2605_v40  ;;  %v589_v35 = vsub.f32 %v2499_v30, %v2605_v40 }
 0x415   :  { %v581_v46 = vpop.xlane.xlu0 %580 }
 0x416   :  { %v583_v41 = vmul.f32 %v581_v46, %v2542_v56 }
 0x418   :  { %v587_v43 = vsub.f32 %v583_v41, %v585_v42 }
 0x41a   :  { %v591_v49 = vadd.f32 1e-05, %v587_v43 }
 0x41b   :  { %v578_v44 = vpop.xlane.xlu2 %577 }
 0x41c   :  { %v582_v47 = vmul.f32 %v578_v44, %v2542_v56  ;;  %2183 = vrsqrt.f32 %v591_v49  ;;  %vm608_vm13 = vweird.f32 %v591_v49 }
 0x41d   :  { %v564_v48 = vpop.xlane.xlu1 %563 }
 0x41e   :  { %v2611_v45 = vmul.f32 %v564_v48, %v2542_v56 }
 0x420   :  { %v584_v50 = vmul.f32 %v2611_v45, %v2611_v45  ;;  %v588_v42 = vsub.f32 %v2495_v29, %v2611_v45 }
 0x422   :  { %v586_v51 = vsub.f32 %v582_v47, %v584_v50  ;;  %v2184_v60 = vpop.eup %2183 }
 0x423   :  { %v508_v31 = vpop.xlane.xlu0 %507  ;;  %v603_v1 = vmul.f32 %v2184_v60, %v591_v49  ;;  %vm609_vm10 = vweird.f32 %v2184_v60 }
 0x424   :  { %v590_v54 = vadd.f32 1e-05, %v586_v51  ;;  %v512_v61 = vmul.f32 %v508_v31, %v2542_v56  ;;  %vm610_vm14 = vmor %vm608_vm13, %vm609_vm10 }
 0x425   :  { %v423_v55 = vpop.f32.mrf.mxu2  ;;  %v494_v57 = vpop.xlane.xlu1 %493  ;;  %v604_v8 = vmul.f32 %v2184_v60, %v603_v1 }
 0x426   :  { %v2622_v58 = vadd.f32 %v423_v55, %v2619_v53  ;;  %v498_v59 = vmul.f32 %v494_v57, %v2542_v56  ;;  %2185 = vrsqrt.f32 %v590_v54  ;;  %vm598_vm2 = vweird.f32 %v590_v54 }
 0x427   :  { %v605_v11 = vmul.f32 0.5, %v604_v8 }
 0x428   :  { %v514_v62 = vmul.f32 %v498_v59, %v498_v59  ;;  %v429_v63 = vsel %vm252_vm11, %v2622_v58, -inf  ;;  %v518_v25 = vsub.f32 %v2495_v29, %v498_v59 }
 0x429   :  { %430 = vmax.xlane.f32.xlu2 %v429_v63  ;;  %v606_v16 = vsub.f32 1.5, %v605_v11 }
 0x42a   :  { %v516_v0 = vsub.f32 %v512_v61, %v514_v62 }
 0x42b   :  { %v607_v20 = vmul.f32 %v2184_v60, %v606_v16 }
 0x42c   :  { %v520_v3 = vadd.f32 1e-05, %v516_v0  ;;  %v2186_v5 = vpop.eup %2185 }
 0x42d   :  { %v426_v4 = vpop.f32.mrf.mxu2  ;;  %v593_v10 = vmul.f32 %v2186_v5, %v590_v54  ;;  %v497_v22 = vpop.xlane.xlu1 %496  ;;  %v611_v28 = vsel %vm610_vm14, %v2184_v60, %v607_v20  ;;  %vm599_vm1 = vweird.f32 %v2186_v5 }
 0x42e   :  { %2187 = vrsqrt.f32 %v520_v3  ;;  %v2634_v6 = vadd.f32 %v426_v4, %v2631_v2  ;;  %vm528_vm15 = vweird.f32 %v520_v3  ;;  %v613_v38 = vmul.f32 %v611_v28, %v589_v35  ;;  %vm600_vm4 = vmor %vm598_vm2, %vm599_vm1  ;;  %v511_v54 = vpop.xlane.xlu2 %510 }
 0x42f   :  { %v594_v13 = vmul.f32 %v2186_v5, %v593_v10  ;;  %v499_v51 = vmul.f32 %v497_v22, %v2542_v56  ;;  %v513_v45 = vmul.f32 %v511_v54, %v2542_v56 }
 0x430   :  { %v432_v9 = vsel %vm252_vm11, %v2634_v6, -inf }
 0x431   :  { %433 = vmax.xlane.f32.xlu2 %v432_v9  ;;  %v595_v18 = vmul.f32 0.5, %v594_v13  ;;  %v515_v29 = vmul.f32 %v499_v51, %v499_v51  ;;  %v519_v13 = vsub.f32 %v2499_v30, %v499_v51 }
 0x433   :  { %v596_v23 = vsub.f32 1.5, %v595_v18  ;;  %v517_v31 = vsub.f32 %v513_v45, %v515_v29 }
 0x434   :  { %v2188_v12 = vpop.eup %2187 }
 0x435   :  { %v523_v14 = vmul.f32 %v2188_v12, %v520_v3  ;;  %vm529_vm12 = vweird.f32 %v2188_v12  ;;  %v597_v37 = vmul.f32 %v2186_v5, %v596_v23  ;;  %v521_v55 = vadd.f32 1e-05, %v517_v31 }
 0x436   :  { %v615_v15 = vpop.permute.xlu0 %614  ;;  %vm530_vm0 = vmor %vm528_vm15, %vm529_vm12 }
 0x437   :  { %v524_v17 = vmul.f32 %v2188_v12, %v523_v14  ;;  %v618_v33 = vmul.f32 %v615_v15, %v613_v38  ;;  %v601_v46 = vsel %vm600_vm4, %v2186_v5, %v597_v37  ;;  %2189 = vrsqrt.f32 %v521_v55 }
 0x438   :  { %v612_v49 = vmul.f32 %v601_v46, %v588_v42  ;;  %vm538_vm6 = vweird.f32 %v521_v55 }
 0x439   :  { %v525_v19 = vmul.f32 0.5, %v524_v17 }
 0x43a   :  { %v617_v47 = vmul.f32 %v615_v15, %v612_v49 }
 0x43b   :  { %v526_v21 = vsub.f32 1.5, %v525_v19 }
 0x43d   :  { %v527_v24 = vmul.f32 %v2188_v12, %v526_v21  ;;  %v2190_v57 = vpop.eup %2189 }
 0x43e   :  { %v2639_v26 = vpop.permute.xlu0 %551  ;;  %v533_v59 = vmul.f32 %v2190_v57, %v521_v55  ;;  %vm539_vm5 = vweird.f32 %v2190_v57 }
 0x43f   :  { %v531_v34 = vsel %vm530_vm0, %v2188_v12, %v527_v24  ;;  %vm540_vm7 = vmor %vm538_vm6, %vm539_vm5 }
 0x440   :  { %v542_v36 = vmul.f32 %v531_v34, %v518_v25 }
 0x445   :  { %v620_v41 = vpop.permute.xlu1 %619 }
 0x446   :  { %v623_v43 = vadd.f32 %v620_v41, %v618_v33  ;;  %v2149_v44 = vpop.permute.xlu0 %2148  ;;  %v622_v50 = vadd.f32 %v620_v41, %v617_v47 }
 0x447   :  { %v2150_v48 = vunpack.i.l.bf16 %v2149_v44  ;;  %v2151_v40 = vunpack.i.h.bf16 %v2149_v44 }
 0x448   :  { %634 = vrot.lane.b32.xlu0 %v623_v43, %s2290_s21 }
 0x449   :  { %477 = vmatpush.msra.mxu3 %v2150_v48  ;;  %545 = vrot.lane.b32.xlu2 %v2575_v7, %s2292_s25  ;;  %v534_v7 = vmul.f32 %v2190_v57, %v533_v59  ;;  %v737_v59 = vld [vmem:[%s3271_s5 + $0x18] sm:$0xff] }
 0x44b   :  { %478 = vmatpush.msra.mxu3 %v2151_v40  ;;  %v535_v63 = vmul.f32 0.5, %v534_v7  ;;  %v734_v7 = vld [vmem:[%s3271_s5] sm:$0xff] }
 0x44d   :  { %v536_v3 = vsub.f32 1.5, %v535_v63 }
 0x44f   :  { %v537_v9 = vmul.f32 %v2190_v57, %v536_v3 }
 0x450   :  { %632 = vrot.lane.b32.xlu0 %v622_v50, %s2290_s21 }
 0x451   :  { %v541_v11 = vsel %vm540_vm7, %v2190_v57, %v537_v9 }
 0x452   :  { %v543_v15 = vmul.f32 %v541_v11, %v519_v13  ;;  %v851_v11 = vld [vmem:[%s3272_s6 + $0x78] sm:$0xff]  ;;  %v848_v13 = vld [vmem:[%s3272_s6 + $0x60] sm:$0xff] }
 0x453   :  { %2006 = vmatpush.xpose.msk.msra.mxu0 %vm111_vm3, %v851_v11 }
 0x49c   :  { %v431_v60 = vpop.xlane.xlu2 %430 }
 0x49d   :  { %v435_v61 = vsub.f32 %v2622_v58, %v431_v60  ;;  %v736_v60 = vld [vmem:[%s3271_s5 + $0x10] sm:$0xff] }
 0x49f   :  { %v437_v62 = vmul.f32 1.442695, %v435_v61  ;;  %v735_v61 = vld [vmem:[%s3271_s5 + $0x8] sm:$0xff] }
 0x4a1   :  { %2191 = vpow2.f32 %v437_v62 }
 0x4a4   :  { %v434_v0 = vpop.xlane.xlu2 %433 }
 0x4a5   :  { %v436_v1 = vsub.f32 %v2634_v6, %v434_v0 }
 0x4a7   :  { %v2192_v4 = vpop.eup %2191  ;;  %v439_v5 = vmul.f32 1.442695, %v436_v1 }
 0x4a8   :  { %v441_v8 = vsel %vm252_vm11, %v2192_v4, 0.0 }
 0x4a9   :  { %2193 = vpow2.f32 %v439_v5  ;;  %442 = vadd.xlane.f32.xlu1 %v441_v8 }
 0x4ac   :  { %v546_v10 = vpop.permute.xlu2 %545 }
 0x4ad   :  { %v548_v58 = vmul.f32 %v546_v10, %v542_v36  ;;  %v549_v16 = vmul.f32 %v546_v10, %v543_v15 }
 0x4af   :  { %v2194_v12 = vpop.eup %2193  ;;  %v554_v14 = vadd.f32 %v2639_v26, %v548_v58  ;;  %v555_v17 = vadd.f32 %v2639_v26, %v549_v16 }
 0x4b0   :  { %v444_v6 = vsel %vm252_vm11, %v2194_v12, 0.0 }
 0x4b1   :  { %445 = vadd.xlane.f32.xlu2 %v444_v6  ;;  %626 = vrot.lane.b32.xlu0 %v554_v14, %s2289_s20  ;;  %v847_v14 = vld [vmem:[%s3272_s6 + $0x58] sm:$0xff]  ;;  %v846_v6 = vld [vmem:[%s3272_s6 + $0x50] sm:$0xff] }
 0x4b9   :  { %628 = vrot.lane.b32.xlu0 %v555_v17, %s2289_s20  ;;  %v845_v17 = vld [vmem:[%s3272_s6 + $0x48] sm:$0xff] }
 0x4ba   :  { %v635_v18 = vpop.permute.xlu0 %634 }
 0x4bb   :  { %1994 = vmatpush.xpose.msk.msrb.mxu3 %vm252_vm11, %v635_v18 }
 0x4c2   :  { %v633_v19 = vpop.permute.xlu0 %632 }
 0x4c3   :  { %1995 = vmatpush.xpose.msk.msrb.mxu3 %vm252_vm11, %v633_v19  ;;  %v844_v19 = vld [vmem:[%s3272_s6 + $0x40] sm:$0xff] }
 0x51c   :  { %v443_v30 = vpop.xlane.xlu1 %442 }
 0x51d   :  { %2195 = vrcp.f32 %v443_v30 }
 0x523   :  { %v2196_v20 = vpop.eup %2195  ;;  %v627_v25 = vpop.permute.xlu0 %626 }
 0x524   :  { %v446_v21 = vpop.xlane.xlu2 %445  ;;  %v449_v22 = vmul.f32 %v2196_v20, %v2192_v4  ;;  %v843_v20 = vld [vmem:[%s3272_s6 + $0x38] sm:$0xff] }
 0x525   :  { %2197 = vrcp.f32 %v446_v21  ;;  %v842_v21 = vld [vmem:[%s3272_s6 + $0x30] sm:$0xff] }
 0x526   :  { %1992 = vmatmul.msk.f32.vlgmr.msra.gmra.mxu3 %vm252_vm11, %v449_v22  ;;  %v841_v22 = vld [vmem:[%s3272_s6 + $0x28] sm:$0xff] }
 0x527   :  { %2000 = vmatpush.xpose.msk.msra.mxu3 %vm111_vm3, %v737_v59 }
 0x52b   :  { %v2198_v23 = vpop.eup %2197  ;;  %v629_v26 = vpop.permute.xlu0 %628  ;;  %2001 = vmatpush.xpose.msk.msra.mxu3 %vm111_vm3, %v736_v60  ;;  %v933_v60 = vld [vmem:[%s3273_s7 + $0x10] sm:$0xff] }
 0x52c   :  { %v450_v24 = vmul.f32 %v2198_v23, %v2194_v12  ;;  %v849_v12 = vld [vmem:[%s3272_s6 + $0x68] sm:$0xff]  ;;  %v840_v23 = vld [vmem:[%s3272_s6 + $0x20] sm:$0xff] }
 0x52e   :  { %1993 = vmatmul.msk.f32.gmra.mxu3 %vm252_vm11, %v450_v24  ;;  %v839_v24 = vld [vmem:[%s3272_s6 + $0x18] sm:$0xff] }
 0x52f   :  { %2002 = vmatpush.xpose.msk.msra.mxu3 %vm111_vm3, %v735_v61 }
 0x533   :  { %2003 = vmatpush.xpose.msk.msra.mxu3 %vm111_vm3, %v734_v7 }
 0x536   :  { %1996 = vmatmul.msk.f32.vlgmr.msrb.gmra.mxu3 %vm252_vm11, %v627_v25  ;;  %v838_v25 = vld [vmem:[%s3272_s6 + $0x10] sm:$0xff] }
 0x53e   :  { %1997 = vmatmul.msk.f32.gmra.mxu3 %vm252_vm11, %v629_v26  ;;  %v837_v26 = vld [vmem:[%s3272_s6 + $0x8] sm:$0xff] }
 0x5a9   :  { %v480_v28 = vpop.f32.mrf.mxu3 }
 0x5b1   :  { %v483_v34 = vpop.f32.mrf.mxu3 }
 0x5b9   :  { %v661_v35 = vpop.f32.mrf.mxu3 }
 0x5ba   :  { %v662_v36 = vadd.f32 %v661_v35, %v2619_v53 }
 0x5bc   :  { %v667_v37 = vsel %vm252_vm11, %v662_v36, -inf }
 0x5bd   :  { %668 = vmax.xlane.f32.xlu1 %v667_v37 }
 0x5c1   :  { %v664_v38 = vpop.f32.mrf.mxu3 }
 0x5c2   :  { %v665_v33 = vadd.f32 %v664_v38, %v2631_v2 }
 0x5c4   :  { %v670_v46 = vsel %vm252_vm11, %v665_v33, -inf }
 0x5c5   :  { %671 = vmax.xlane.f32.xlu0 %v670_v46 }
 0x5d6   :  { %2153 = vrot.lane.b32.xlu1 %v2597_v39, %s2291_s24 }
 0x630   :  { %v669_v41 = vpop.xlane.xlu1 %668 }
 0x631   :  { %v673_v42 = vsub.f32 %v662_v36, %v669_v41 }
 0x633   :  { %v675_v43 = vmul.f32 1.442695, %v673_v42 }
 0x635   :  { %2199 = vpow2.f32 %v675_v43 }
 0x638   :  { %v672_v44 = vpop.xlane.xlu0 %671 }
 0x639   :  { %v674_v48 = vsub.f32 %v665_v33, %v672_v44 }
 0x63b   :  { %v2200_v49 = vpop.eup %2199  ;;  %v677_v53 = vmul.f32 1.442695, %v674_v48 }
 0x63c   :  { %v679_v40 = vsel %vm252_vm11, %v2200_v49, 0.0 }
 0x63d   :  { %2201 = vpow2.f32 %v677_v53  ;;  %680 = vadd.xlane.f32.xlu2 %v679_v40 }
 0x643   :  { %v2202_v47 = vpop.eup %2201 }
 0x644   :  { %v682_v2 = vsel %vm252_vm11, %v2202_v47, 0.0 }
 0x645   :  { %683 = vadd.xlane.f32.xlu2 %v682_v2 }
 0x648   :  { %v2154_v50 = vpop.permute.xlu1 %2153 }
 0x649   :  { %v2155_v51 = vunpack.i.l.bf16 %v2154_v50  ;;  %v2156_v54 = vunpack.i.h.bf16 %v2154_v50 }
 0x64b   :  { %715 = vmatpush.msra.mxu2 %v2155_v51 }
 0x64d   :  { %716 = vmatpush.msra.mxu2 %v2156_v54 }
 0x6b0   :  { %v681_v39 = vpop.xlane.xlu2 %680 }
 0x6b1   :  { %2203 = vrcp.f32 %v681_v39 }
 0x6b7   :  { %v2204_v29 = vpop.eup %2203 }
 0x6b8   :  { %v687_v45 = vmul.f32 %v2204_v29, %v2200_v49  ;;  %v684_v31 = vpop.xlane.xlu2 %683  ;;  %v781_v49 = vld [vmem:[%s3277_s11] sm:$0x3] }
 0x6b9   :  { %2205 = vrcp.f32 %v684_v31  ;;  %v833_v51 = vperm.slane %v781_v49, 1  ;;  %v934_v31 = vld [vmem:[%s3273_s7 + $0x18] sm:$0xff] }
 0x6ba   :  { %1998 = vmatmul.msk.f32.vlgmr.msra.gmra.mxu2 %vm252_vm11, %v687_v45 }
 0x6bb   :  { %947 = vmatpush.xpose.msrb.mxu2 %v934_v31 }
 0x6bf   :  { %v2206_v55 = vpop.eup %2205  ;;  %948 = vmatpush.xpose.msrb.mxu2 %v933_v60 }
 0x6c0   :  { %v688_v57 = vmul.f32 %v2206_v55, %v2202_v47  ;;  %v830_v47 = vperm.slane %v781_v49, 0 }
 0x6c2   :  { %1999 = vmatmul.msk.f32.gmra.mxu2 %vm252_vm11, %v688_v57 }
 0x73d   :  { %v718_v62 = vpop.f32.mrf.mxu2 }
 0x73e   :  { %726 = vrot.lane.b32.xlu2 %v718_v62, %s2292_s25  ;;  %v932_v62 = vld [vmem:[%s3273_s7 + $0x8] sm:$0xff] }
 0x73f   :  { %949 = vmatpush.xpose.msrb.mxu2 %v932_v62  ;;  %v2876_v62 = vld [vmem:[%s3276_s10 + $0x2] sm:$0x3] }
 0x745   :  { %v721_v63 = vpop.f32.mrf.mxu2 }
 0x746   :  { %728 = vrot.lane.b32.xlu1 %v721_v63, %s2292_s25 }
 0x798   :  { %v727_v0 = vpop.permute.xlu2 %726 }
 0x799   :  { %v732_v1 = vsel %vm252_vm11, %v480_v28, %v727_v0  ;;  %v836_v28 = vld [vmem:[%s3272_s6] sm:$0xff] }
 0x79a   :  { %2004 = vmatmul.msk.f32.vlgmr.msra.gmra.mxu3 %vm111_vm3, %v732_v1 }
 0x7b8   :  { %v729_v3 = vpop.permute.xlu1 %728 }
 0x7b9   :  { %v733_v4 = vsel %vm252_vm11, %v483_v34, %v729_v3 }
 0x7ba   :  { %2005 = vmatmul.msk.f32.gmra.mxu3 %vm111_vm3, %v733_v4 }
 0x81d   :  { %v773_v5 = vpop.f32.mrf.mxu3 }
 0x81e   :  { %v2699_v8 = vadd.f32 %v773_v5, %v2429_v27  ;;  %v850_v27 = vld [vmem:[%s3272_s6 + $0x70] sm:$0xff] }
 0x81f   :  { %2007 = vmatpush.xpose.msk.msra.mxu0 %vm111_vm3, %v850_v27 }
 0x820   :  { %v782_v9 = vsel %vm111_vm3, %v2699_v8, 0.0  ;;  %v790_v10 = vmul.f32 %v2699_v8, %v2699_v8 }
 0x821   :  { %783 = vadd.xlane.f32.xlu1 %v782_v9 }
 0x822   :  { %v792_v58 = vsel %vm111_vm3, %v790_v10, 0.0 }
 0x823   :  { %793 = vadd.xlane.f32.xlu2 %v792_v58  ;;  %2008 = vmatpush.xpose.msk.msra.mxu0 %vm111_vm3, %v849_v12  ;;  %v931_v12 = vld [vmem:[%s3273_s7] sm:$0xff] }
 0x824   :  { %950 = vmatpush.xpose.msrb.mxu2 %v931_v12 }
 0x827   :  { %2009 = vmatpush.xpose.msk.msra.mxu0 %vm111_vm3, %v848_v13 }
 0x82b   :  { %2010 = vmatpush.xpose.msk.msra.mxu0 %vm111_vm3, %v847_v14 }
 0x82f   :  { %2011 = vmatpush.xpose.msk.msra.mxu0 %vm111_vm3, %v846_v6 }
 0x833   :  { %2012 = vmatpush.xpose.msk.msra.mxu0 %vm111_vm3, %v845_v17 }
 0x837   :  { %2013 = vmatpush.xpose.msk.msra.mxu0 %vm111_vm3, %v844_v19 }
 0x83b   :  { %2014 = vmatpush.xpose.msk.msra.mxu0 %vm111_vm3, %v843_v20  ;;  %v2036_v20 = vld [vmem:[%s3270_s4 + $0xb8] sm:$0xff] }
 0x83c   :  { %2037 = vmatpush.xpose.msk.msrb.mxu3 %vm111_vm3, %v2036_v20 }
 0x83d   :  { %v776_v15 = vpop.f32.mrf.mxu3 }
 0x83e   :  { %v2730_v16 = vadd.f32 %v776_v15, %v2438_v32 }
 0x83f   :  { %2015 = vmatpush.xpose.msk.msra.mxu0 %vm111_vm3, %v842_v21  ;;  %v2034_v21 = vld [vmem:[%s3270_s4 + $0xa8] sm:$0xff] }
 0x840   :  { %v785_v18 = vsel %vm111_vm3, %v2730_v16, 0.0  ;;  %v791_v32 = vmul.f32 %v2730_v16, %v2730_v16 }
 0x841   :  { %786 = vadd.xlane.f32.xlu0 %v785_v18 }
 0x842   :  { %v795_v30 = vsel %vm111_vm3, %v791_v32, 0.0 }
 0x843   :  { %2016 = vmatpush.xpose.msk.msra.mxu0 %vm111_vm3, %v841_v22 }
 0x847   :  { %2017 = vmatpush.xpose.msk.msra.mxu0 %vm111_vm3, %v840_v23 }
 0x849   :  { %796 = vadd.xlane.f32.xlu0 %v795_v30 }
 0x84b   :  { %2018 = vmatpush.xpose.msk.msra.mxu0 %vm111_vm3, %v839_v24 }
 0x84f   :  { %2019 = vmatpush.xpose.msk.msra.mxu0 %vm111_vm3, %v838_v25 }
 0x853   :  { %2020 = vmatpush.xpose.msk.msra.mxu0 %vm111_vm3, %v837_v26 }
 0x857   :  { %2021 = vmatpush.xpose.msk.msra.mxu0 %vm111_vm3, %v836_v28  ;;  %v2033_v28 = vld [vmem:[%s3270_s4 + $0xa0] sm:$0xff] }
 0x894   :  { %v784_v34 = vpop.xlane.xlu1 %783 }
 0x895   :  { %v788_v35 = vmul.f32 %v784_v34, %v2478_v52  ;;  %v2031_v34 = vld [vmem:[%s3270_s4 + $0x90] sm:$0xff] }
 0x896   :  { %v794_v36 = vpop.xlane.xlu2 %793 }
 0x897   :  { %v800_v37 = vmul.f32 %v788_v35, %v788_v35  ;;  %v798_v38 = vmul.f32 %v794_v36, %v2478_v52  ;;  %v804_v40 = vsub.f32 %v2699_v8, %v788_v35  ;;  %v2030_v35 = vld [vmem:[%s3270_s4 + $0x88] sm:$0xff]  ;;  %v2029_v36 = vld [vmem:[%s3270_s4 + $0x80] sm:$0xff] }
 0x899   :  { %v802_v33 = vsub.f32 %v798_v38, %v800_v37  ;;  %v2028_v37 = vld [vmem:[%s3270_s4 + $0x78] sm:$0xff]  ;;  %v2027_v38 = vld [vmem:[%s3270_s4 + $0x70] sm:$0xff] }
 0x89b   :  { %v806_v46 = vadd.f32 1e-05, %v802_v33 }
 0x89d   :  { %2207 = vrsqrt.f32 %v806_v46  ;;  %vm814_vm9 = vweird.f32 %v806_v46 }
 0x8a3   :  { %v2208_v41 = vpop.eup %2207 }
 0x8a4   :  { %v809_v42 = vmul.f32 %v2208_v41, %v806_v46  ;;  %vm815_vm8 = vweird.f32 %v2208_v41  ;;  %v2026_v46 = vld [vmem:[%s3270_s4 + $0x68] sm:$0xff] }
 0x8a5   :  { %vm816_vm10 = vmor %vm814_vm9, %vm815_vm8 }
 0x8a6   :  { %v810_v43 = vmul.f32 %v2208_v41, %v809_v42 }
 0x8a8   :  { %v811_v44 = vmul.f32 0.5, %v810_v43 }
 0x8aa   :  { %v812_v48 = vsub.f32 1.5, %v811_v44 }
 0x8ac   :  { %v813_v53 = vmul.f32 %v2208_v41, %v812_v48 }
 0x8ae   :  { %v817_v2 = vsel %vm816_vm10, %v2208_v41, %v813_v53  ;;  %v2025_v41 = vld [vmem:[%s3270_s4 + $0x60] sm:$0xff] }
 0x8af   :  { %v828_v50 = vmul.f32 %v817_v2, %v804_v40 }
 0x8b1   :  { %v831_v54 = vmul.f32 %v830_v47, %v828_v50 }
 0x8b3   :  { %v834_v39 = vadd.f32 %v833_v51, %v831_v54 }
 0x8b4   :  { %v787_v29 = vpop.xlane.xlu0 %786 }
 0x8b5   :  { %2022 = vmatmul.msk.f32.vlgmr.msra.gmra.mxu0 %vm111_vm3, %v834_v39  ;;  %v789_v45 = vmul.f32 %v787_v29, %v2478_v52 }
 0x8b7   :  { %v801_v57 = vmul.f32 %v789_v45, %v789_v45  ;;  %v805_v9 = vsub.f32 %v2730_v16, %v789_v45 }
 0x8bc   :  { %v797_v55 = vpop.xlane.xlu0 %796 }
 0x8bd   :  { %v799_v59 = vmul.f32 %v797_v55, %v2478_v52 }
 0x8bf   :  { %v803_v61 = vsub.f32 %v799_v59, %v801_v57 }
 0x8c1   :  { %v807_v7 = vadd.f32 1e-05, %v803_v61 }
 0x8c3   :  { %2209 = vrsqrt.f32 %v807_v7  ;;  %vm824_vm13 = vweird.f32 %v807_v7 }
 0x8c9   :  { %v2210_v63 = vpop.eup %2209 }
 0x8ca   :  { %v819_v0 = vmul.f32 %v2210_v63, %v807_v7  ;;  %vm825_vm12 = vweird.f32 %v2210_v63 }
 0x8cb   :  { %vm826_vm14 = vmor %vm824_vm13, %vm825_vm12 }
 0x8cc   :  { %v820_v1 = vmul.f32 %v2210_v63, %v819_v0  ;;  %v1214_v0 = vperm.slane %v2876_v62, 0 }
 0x8ce   :  { %v821_v3 = vmul.f32 0.5, %v820_v1  ;;  %v1221_v1 = vperm.slane %v2876_v62, 1  ;;  %1452 = vrot.lane.b32.xlu2 %v1214_v0, %s2291_s24  ;;  %1216 = vrot.lane.b32.xlu1 %v1214_v0, %s2287_s19 }
 0x8d0   :  { %v822_v4 = vsub.f32 1.5, %v821_v3 }
 0x8d2   :  { %v823_v5 = vmul.f32 %v2210_v63, %v822_v4 }
 0x8d4   :  { %v827_v10 = vsel %vm826_vm14, %v2210_v63, %v823_v5 }
 0x8d5   :  { %v829_v58 = vmul.f32 %v827_v10, %v805_v9 }
 0x8d7   :  { %v832_v11 = vmul.f32 %v830_v47, %v829_v58 }
 0x8d9   :  { %v835_v27 = vadd.f32 %v833_v51, %v832_v11  ;;  %v2024_v51 = vld [vmem:[%s3274_s8 + $0x2] sm:$0x3] }
 0x8da   :  { %v1010_v45 = vperm.slane %v2024_v51, 0  ;;  %v1013_v57 = vperm.slane %v2024_v51, 1 }
 0x8db   :  { %2023 = vmatmul.msk.f32.gmra.mxu0 %vm111_vm3, %v835_v27 }
 0x932   :  { %v923_v13 = vpop.f32.mrf.mxu0 }
 0x933   :  { %v929_v14 = vmax.f32 %v923_v13, 0.0 }
 0x935   :  { %951 = vmatmul.f32.vlgmr.msrb.gmra.mxu2 %v929_v14 }
 0x958   :  { %v926_v6 = vpop.f32.mrf.mxu0 }
 0x959   :  { %v930_v15 = vmax.f32 %v926_v6, 0.0 }
 0x95b   :  { %954 = vmatmul.f32.gmra.mxu2 %v930_v15 }
 0x9b8   :  { %v952_v17 = vpop.f32.mrf.mxu2 }
 0x9b9   :  { %v2802_v18 = vadd.f32 %v952_v17, %v2699_v8  ;;  %v2035_v8 = vld [vmem:[%s3270_s4 + $0xb0] sm:$0xff] }
 0x9ba   :  { %2038 = vmatpush.xpose.msk.msrb.mxu3 %vm111_vm3, %v2035_v8 }
 0x9bb   :  { %v962_v19 = vsel %vm111_vm3, %v2802_v18, 0.0  ;;  %v970_v32 = vmul.f32 %v2802_v18, %v2802_v18 }
 0x9bc   :  { %963 = vadd.xlane.f32.xlu0 %v962_v19 }
 0x9bd   :  { %v972_v30 = vsel %vm111_vm3, %v970_v32, 0.0 }
 0x9be   :  { %2039 = vmatpush.xpose.msk.msrb.mxu3 %vm111_vm3, %v2034_v21 }
 0x9c2   :  { %2040 = vmatpush.xpose.msk.msrb.mxu3 %vm111_vm3, %v2033_v28 }
 0x9c4   :  { %973 = vadd.xlane.f32.xlu0 %v972_v30 }
 0x9de   :  { %v955_v22 = vpop.f32.mrf.mxu2 }
 0x9df   :  { %v2822_v23 = vadd.f32 %v955_v22, %v2730_v16  ;;  %v2032_v16 = vld [vmem:[%s3270_s4 + $0x98] sm:$0xff]  ;;  %v2926_v22 = vpop.permute.xlu2 %1452 }
 0x9e0   :  { %2041 = vmatpush.xpose.msk.msrb.mxu3 %vm111_vm3, %v2032_v16 }
 0x9e1   :  { %v965_v24 = vsel %vm111_vm3, %v2822_v23, 0.0  ;;  %v971_v25 = vmul.f32 %v2822_v23, %v2822_v23 }
 0x9e2   :  { %966 = vadd.xlane.f32.xlu0 %v965_v24 }
 0x9e3   :  { %v975_v26 = vsel %vm111_vm3, %v971_v25, 0.0 }
 0x9e4   :  { %2042 = vmatpush.xpose.msk.msrb.mxu3 %vm111_vm3, %v2031_v34 }
 0x9e8   :  { %2043 = vmatpush.xpose.msk.msrb.mxu3 %vm111_vm3, %v2030_v35  ;;  %v2932_v35 = vpop.permute.xlu1 %1216 }
 0x9ea   :  { %976 = vadd.xlane.f32.xlu0 %v975_v26 }
 0x9ec   :  { %2044 = vmatpush.xpose.msk.msrb.mxu3 %vm111_vm3, %v2029_v36 }
 0x9f0   :  { %2045 = vmatpush.xpose.msk.msrb.mxu3 %vm111_vm3, %v2028_v37 }
 0x9f4   :  { %2046 = vmatpush.xpose.msk.msrb.mxu3 %vm111_vm3, %v2027_v38 }
 0x9f8   :  { %2047 = vmatpush.xpose.msk.msrb.mxu3 %vm111_vm3, %v2026_v46 }
 0x9fc   :  { %2048 = vmatpush.xpose.msk.msrb.mxu3 %vm111_vm3, %v2025_v41 }
 0x9fe   :  { %1223 = vrot.lane.b32.xlu0 %v1221_v1, %s2287_s19 }
 0xa2f   :  { %v964_v33 = vpop.xlane.xlu0 %963 }
 0xa30   :  { %v968_v42 = vmul.f32 %v964_v33, %v2478_v52 }
 0xa32   :  { %v980_v44 = vmul.f32 %v968_v42, %v968_v42  ;;  %v984_v29 = vsub.f32 %v2802_v18, %v968_v42 }
 0xa37   :  { %v974_v43 = vpop.xlane.xlu0 %973 }
 0xa38   :  { %v978_v48 = vmul.f32 %v974_v43, %v2478_v52 }
 0xa3a   :  { %v982_v49 = vsub.f32 %v978_v48, %v980_v44 }
 0xa3c   :  { %v986_v53 = vadd.f32 1e-05, %v982_v49 }
 0xa3e   :  { %2211 = vrsqrt.f32 %v986_v53  ;;  %vm994_vm0 = vweird.f32 %v986_v53 }
 0xa44   :  { %v2212_v40 = vpop.eup %2211 }
 0xa45   :  { %v989_v47 = vmul.f32 %v2212_v40, %v986_v53  ;;  %vm995_vm15 = vweird.f32 %v2212_v40 }
 0xa46   :  { %vm996_vm1 = vmor %vm994_vm0, %vm995_vm15 }
 0xa47   :  { %v990_v2 = vmul.f32 %v2212_v40, %v989_v47 }
 0xa49   :  { %v991_v50 = vmul.f32 0.5, %v990_v2 }
 0xa4b   :  { %v992_v54 = vsub.f32 1.5, %v991_v50 }
 0xa4d   :  { %v993_v39 = vmul.f32 %v2212_v40, %v992_v54 }
 0xa4f   :  { %v997_v31 = vsel %vm996_vm1, %v2212_v40, %v993_v39 }
 0xa50   :  { %v1008_v55 = vmul.f32 %v997_v31, %v984_v29 }
 0xa52   :  { %v1011_v59 = vmul.f32 %v1010_v45, %v1008_v55 }
 0xa54   :  { %v1014_v60 = vadd.f32 %v1013_v57, %v1011_v59 }
 0xa55   :  { %v967_v61 = vpop.xlane.xlu0 %966 }
 0xa56   :  { %2049 = vmatmul.msk.f32.vlgmr.msrb.gmra.mxu3 %vm111_vm3, %v1014_v60  ;;  %v969_v7 = vmul.f32 %v967_v61, %v2478_v52 }
 0xa58   :  { %v981_v3 = vmul.f32 %v969_v7, %v969_v7  ;;  %v985_v14 = vsub.f32 %v2822_v23, %v969_v7 }
 0xa5d   :  { %v977_v63 = vpop.xlane.xlu0 %976 }
 0xa5e   :  { %v979_v4 = vmul.f32 %v977_v63, %v2478_v52 }
 0xa60   :  { %v983_v5 = vsub.f32 %v979_v4, %v981_v3 }
 0xa62   :  { %v987_v9 = vadd.f32 1e-05, %v983_v5 }
 0xa64   :  { %2213 = vrsqrt.f32 %v987_v9  ;;  %vm1004_vm4 = vweird.f32 %v987_v9 }
 0xa6a   :  { %v2214_v10 = vpop.eup %2213 }
 0xa6b   :  { %v999_v58 = vmul.f32 %v2214_v10, %v987_v9  ;;  %vm1005_vm2 = vweird.f32 %v2214_v10 }
 0xa6c   :  { %vm1006_vm5 = vmor %vm1004_vm4, %vm1005_vm2 }
 0xa6d   :  { %v1000_v11 = vmul.f32 %v2214_v10, %v999_v58 }
 0xa6f   :  { %v1001_v27 = vmul.f32 0.5, %v1000_v11 }
 0xa70   :  { %v2930_v16 = vpop.permute.xlu0 %1223 }
 0xa71   :  { %v1002_v12 = vsub.f32 1.5, %v1001_v27 }
 0xa73   :  { %v1003_v13 = vmul.f32 %v2214_v10, %v1002_v12 }
 0xa75   :  { %v1007_v6 = vsel %vm1006_vm5, %v2214_v10, %v1003_v13 }
 0xa76   :  { %v1009_v15 = vmul.f32 %v1007_v6, %v985_v14 }
 0xa78   :  { %v1012_v17 = vmul.f32 %v1010_v45, %v1009_v15  ;;  %v2051_v45 = vld [vmem:[%s3275_s9 + $0x2] sm:$0x3] }
 0xa79   :  { %v2952_v31 = vperm.slane %v2051_v45, 1  ;;  %v2956_v55 = vperm.slane %v2051_v45, 0 }
 0xa7a   :  { %v1015_v19 = vadd.f32 %v1013_v57, %v1012_v17 }
 0xa7c   :  { %2050 = vmatmul.msk.f32.gmra.mxu3 %vm111_vm3, %v1015_v19 }
 0xad9   :  { %v2888_v32 = vpop.f32.mrf.mxu3 }
 0xada   :  { %1394 = vrot.lane.b32.xlu2 %v2888_v32, %s2290_s21  ;;  %1154 = vrot.lane.b32.xlu0 %v2888_v32, %s2286_s17  ;;  %v2896_v30 = vmul.f32 %v2888_v32, %v2888_v32  ;;  %v1098_v21 = vsel %vm252_vm11, %v2888_v32, 0.0 }
 0xadc   :  { %1408 = vrot.lane.b32.xlu1 %v2896_v30, %s2290_s21  ;;  %v1108_v7 = vsel %vm252_vm11, %v2896_v30, 0.0 }
 0xae2   :  { %1170 = vrot.lane.b32.xlu2 %v2896_v30, %s2286_s17  ;;  %1324 = vrot.lane.b32.xlu0 %v2888_v32, %s2289_s20 }
 0xaea   :  { %1338 = vrot.lane.b32.xlu2 %v2896_v30, %s2289_s20 }
 0xaff   :  { %v2906_v20 = vpop.f32.mrf.mxu3 }
 0xb00   :  { %1156 = vrot.lane.b32.xlu1 %v2906_v20, %s2286_s17  ;;  %v2912_v8 = vmul.f32 %v2906_v20, %v2906_v20  ;;  %v1101_v12 = vsel %vm252_vm11, %v2906_v20, 0.0 }
 0xb02   :  { %1172 = vrot.lane.b32.xlu2 %v2912_v8, %s2286_s17  ;;  %v1111_v3 = vsel %vm252_vm11, %v2912_v8, 0.0 }
 0xb08   :  { %1396 = vrot.lane.b32.xlu1 %v2906_v20, %s2290_s21 }
 0xb0c   :  { %1099 = vadd.xlane.f32.xlu0 %v1098_v21 }
 0xb10   :  { %1326 = vrot.lane.b32.xlu1 %v2906_v20, %s2289_s20 }
 0xb20   :  { %1410 = vrot.lane.b32.xlu0 %v2912_v8, %s2290_s21 }
 0xb28   :  { %1340 = vrot.lane.b32.xlu0 %v2912_v8, %s2289_s20 }
 0xb34   :  { %v1395_v24 = vpop.permute.xlu2 %1394 }
 0xb35   :  { %v1400_v25 = vsel %vm252_vm11, %v1395_v24, 0.0 }
 0xb36   :  { %1401 = vadd.xlane.f32.xlu2 %v1400_v25 }
 0xb3c   :  { %v1171_v26 = vpop.permute.xlu2 %1170 }
 0xb3d   :  { %v1176_v28 = vsel %vm252_vm11, %v1171_v26, 0.0 }
 0xb3e   :  { %1177 = vadd.xlane.f32.xlu2 %v1176_v28 }
 0xb44   :  { %v1339_v34 = vpop.permute.xlu2 %1338 }
 0xb45   :  { %v1344_v36 = vsel %vm252_vm11, %v1339_v34, 0.0 }
 0xb46   :  { %1345 = vadd.xlane.f32.xlu2 %v1344_v36 }
 0xb4c   :  { %v1155_v37 = vpop.permute.xlu0 %1154 }
 0xb4d   :  { %v1160_v46 = vsel %vm252_vm11, %v1155_v37, 0.0 }
 0xb4e   :  { %v1409_v38 = vpop.permute.xlu1 %1408 }
 0xb4f   :  { %v1414_v33 = vsel %vm252_vm11, %v1409_v38, 0.0 }
 0xb50   :  { %1415 = vadd.xlane.f32.xlu1 %v1414_v33 }
 0xb52   :  { %1161 = vadd.xlane.f32.xlu0 %v1160_v46 }
 0xb54   :  { %v1325_v41 = vpop.permute.xlu0 %1324 }
 0xb55   :  { %v1330_v42 = vsel %vm252_vm11, %v1325_v41, 0.0 }
 0xb5a   :  { %1331 = vadd.xlane.f32.xlu0 %v1330_v42 }
 0xb5c   :  { %v1173_v53 = vpop.permute.xlu2 %1172 }
 0xb5d   :  { %v1179_v47 = vsel %vm252_vm11, %v1173_v53, 0.0 }
 0xb72   :  { %v1157_v43 = vpop.permute.xlu1 %1156 }
 0xb73   :  { %v1163_v44 = vsel %vm252_vm11, %v1157_v43, 0.0 }
 0xb74   :  { %1164 = vadd.xlane.f32.xlu2 %v1163_v44 }
 0xb7a   :  { %v1397_v48 = vpop.permute.xlu1 %1396 }
 0xb7b   :  { %v1403_v49 = vsel %vm252_vm11, %v1397_v48, 0.0 }
 0xb7c   :  { %1404 = vadd.xlane.f32.xlu1 %v1403_v49 }
 0xb7f   :  { %v2942_v50 = vpop.xlane.xlu0 %1099 }
 0xb82   :  { %v1327_v40 = vpop.permute.xlu1 %1326 }
 0xb83   :  { %v1333_v2 = vsel %vm252_vm11, %v1327_v40, 0.0 }
 0xb84   :  { %1180 = vadd.xlane.f32.xlu1 %v1179_v47  ;;  %1334 = vadd.xlane.f32.xlu2 %v1333_v2 }
 0xb92   :  { %v1411_v51 = vpop.permute.xlu0 %1410 }
 0xb93   :  { %v1417_v54 = vsel %vm252_vm11, %v1411_v51, 0.0 }
 0xb94   :  { %1418 = vadd.xlane.f32.xlu0 %v1417_v54 }
 0xb9a   :  { %v1341_v39 = vpop.permute.xlu0 %1340 }
 0xb9b   :  { %v1347_v29 = vsel %vm252_vm11, %v1341_v39, 0.0 }
 0xb9c   :  { %1348 = vadd.xlane.f32.xlu2 %v1347_v29 }
 0xb9d   :  { %1457 = vrot.lane.b32.xlu1 %v1221_v1, %s2291_s24 }
 0xba8   :  { %1389 = vrot.lane.b32.xlu0 %v2952_v31, %s2292_s25 }
 0xba9   :  { %v1402_v57 = vpop.xlane.xlu2 %1401 }
 0xbaa   :  { %v1406_v27 = vmul.f32 %v1402_v57, %v2542_v56 }
 0xbac   :  { %v1422_v17 = vmul.f32 %v1406_v27, %v1406_v27 }
 0xbb1   :  { %v1178_v59 = vpop.xlane.xlu2 %1177 }
 0xbb2   :  { %v1182_v62 = vmul.f32 %v1178_v59, %v2542_v56 }
 0xbb4   :  { %1383 = vrot.lane.b32.xlu2 %v2956_v55, %s2292_s25 }
 0xbb9   :  { %v1346_v25 = vpop.xlane.xlu2 %1345 }
 0xbba   :  { %v1350_v53 = vmul.f32 %v1346_v25, %v2542_v56 }
 0xbc3   :  { %v1416_v58 = vpop.xlane.xlu1 %1415 }
 0xbc4   :  { %v1420_v14 = vmul.f32 %v1416_v58, %v2542_v56 }
 0xbc5   :  { %v1162_v60 = vpop.xlane.xlu0 %1161 }
 0xbc6   :  { %v1166_v61 = vmul.f32 %v1162_v60, %v2542_v56  ;;  %v1424_v30 = vsub.f32 %v1420_v14, %v1422_v17 }
 0xbc7   :  { %1109 = vadd.xlane.f32.xlu1 %v1108_v7  ;;  %v1426_v7 = vsub.f32 %v2888_v32, %v1406_v27 }
 0xbc8   :  { %v1184_v63 = vmul.f32 %v1166_v61, %v1166_v61  ;;  %v1188_v6 = vsub.f32 %v2888_v32, %v1166_v61  ;;  %v1428_v24 = vadd.f32 1e-05, %v1424_v30 }
 0xbca   :  { %v1186_v0 = vsub.f32 %v1182_v62, %v1184_v63  ;;  %vm1436_vm10 = vweird.f32 %v1428_v24 }
 0xbcc   :  { %v1190_v1 = vadd.f32 1e-05, %v1186_v0 }
 0xbcd   :  { %v1332_v37 = vpop.xlane.xlu0 %1331 }
 0xbce   :  { %2215 = vrsqrt.f32 %v1190_v1  ;;  %vm1198_vm7 = vweird.f32 %v1190_v1  ;;  %v2976_v33 = vmul.f32 %v1332_v37, %v2542_v56 }
 0xbcf   :  { %1112 = vadd.xlane.f32.xlu1 %v1111_v3  ;;  %2217 = vrsqrt.f32 %v1428_v24 }
 0xbd0   :  { %v1352_v44 = vmul.f32 %v2976_v33, %v2976_v33 }
 0xbd2   :  { %v1354_v47 = vsub.f32 %v1350_v53, %v1352_v44 }
 0xbd4   :  { %v2216_v4 = vpop.eup %2215  ;;  %v2982_v51 = vadd.f32 1e-05, %v1354_v47 }
 0xbd5   :  { %v1193_v5 = vmul.f32 %v2216_v4, %v1190_v1  ;;  %vm1199_vm6 = vweird.f32 %v2216_v4  ;;  %v2218_v28 = vpop.eup %2217 }
 0xbd6   :  { %vm1200_vm8 = vmor %vm1198_vm7, %vm1199_vm6  ;;  %v1431_v36 = vmul.f32 %v2218_v28, %v1428_v24  ;;  %vm1437_vm9 = vweird.f32 %v2218_v28  ;;  %vm1366_vm5 = vweird.f32 %v2982_v51 }
 0xbd7   :  { %v1194_v9 = vmul.f32 %v2216_v4, %v1193_v5  ;;  %vm1438_vm12 = vmor %vm1436_vm10, %vm1437_vm9 }
 0xbd8   :  { %v1432_v46 = vmul.f32 %v2218_v28, %v1431_v36 }
 0xbd9   :  { %v1195_v10 = vmul.f32 0.5, %v1194_v9 }
 0xbda   :  { %v1433_v49 = vmul.f32 0.5, %v1432_v46 }
 0xbdb   :  { %v1196_v11 = vsub.f32 1.5, %v1195_v10 }
 0xbdc   :  { %v1434_v2 = vsub.f32 1.5, %v1433_v49 }
 0xbdd   :  { %v1197_v13 = vmul.f32 %v2216_v4, %v1196_v11  ;;  %1102 = vadd.xlane.f32.xlu2 %v1101_v12 }
 0xbde   :  { %v1435_v54 = vmul.f32 %v2218_v28, %v1434_v2 }
 0xbdf   :  { %v1201_v15 = vsel %vm1200_vm8, %v2216_v4, %v1197_v13 }
 0xbe0   :  { %v1212_v19 = vmul.f32 %v1201_v15, %v1188_v6  ;;  %v1439_v61 = vsel %vm1438_vm12, %v2218_v28, %v1435_v54 }
 0xbe1   :  { %v1450_v3 = vmul.f32 %v1439_v61, %v1426_v7 }
 0xbe2   :  { %v1219_v8 = vmul.f32 %v2932_v35, %v1212_v19 }
 0xbe3   :  { %v1455_v27 = vmul.f32 %v2926_v22, %v1450_v3 }
 0xbe4   :  { %v1226_v21 = vadd.f32 %v2930_v16, %v1219_v8 }
 0xbe6   :  { %1230 = vrot.lane.b32.xlu0 %v1226_v21, %s2286_s17 }
 0xbe7   :  { %v1165_v34 = vpop.xlane.xlu2 %1164 }
 0xbe8   :  { %v1167_v38 = vmul.f32 %v1165_v34, %v2542_v56 }
 0xbea   :  { %v1185_v42 = vmul.f32 %v1167_v38, %v1167_v38  ;;  %v1189_v11 = vsub.f32 %v2906_v20, %v1167_v38 }
 0xbef   :  { %v1405_v26 = vpop.xlane.xlu1 %1404 }
 0xbf0   :  { %v1407_v29 = vmul.f32 %v1405_v26, %v2542_v56 }
 0xbf2   :  { %v1423_v62 = vmul.f32 %v1407_v29, %v1407_v29 }
 0xbf7   :  { %v1181_v41 = vpop.xlane.xlu1 %1180  ;;  %v1335_v57 = vpop.xlane.xlu2 %1334 }
 0xbf8   :  { %v1183_v43 = vmul.f32 %v1181_v41, %v2542_v56  ;;  %v1337_v9 = vmul.f32 %v1335_v57, %v2542_v56 }
 0xbfa   :  { %v1187_v48 = vsub.f32 %v1183_v43, %v1185_v42  ;;  %v1353_v15 = vmul.f32 %v1337_v9, %v1337_v9 }
 0xbfc   :  { %v1191_v40 = vadd.f32 1e-05, %v1187_v48 }
 0xbfe   :  { %2219 = vrsqrt.f32 %v1191_v40  ;;  %vm1208_vm14 = vweird.f32 %v1191_v40 }
 0xbff   :  { %2221 = vrsqrt.f32 %v2982_v51 }
 0xc04   :  { %v2220_v39 = vpop.eup %2219 }
 0xc05   :  { %v1203_v45 = vmul.f32 %v2220_v39, %v1191_v40  ;;  %vm1209_vm13 = vweird.f32 %v2220_v39  ;;  %v2222_v5 = vpop.eup %2221 }
 0xc06   :  { %vm1210_vm15 = vmor %vm1208_vm14, %vm1209_vm13  ;;  %v1361_v12 = vmul.f32 %v2222_v5, %v2982_v51  ;;  %vm1367_vm4 = vweird.f32 %v2222_v5 }
 0xc07   :  { %v1204_v59 = vmul.f32 %v2220_v39, %v1203_v45  ;;  %v1419_v60 = vpop.xlane.xlu0 %1418  ;;  %vm1368_vm6 = vmor %vm1366_vm5, %vm1367_vm4 }
 0xc08   :  { %v1421_v63 = vmul.f32 %v1419_v60, %v2542_v56  ;;  %v1362_v24 = vmul.f32 %v2222_v5, %v1361_v12 }
 0xc09   :  { %v1205_v0 = vmul.f32 0.5, %v1204_v59  ;;  %v1357_v59 = vsub.f32 %v2906_v20, %v1337_v9 }
 0xc0a   :  { %v1425_v1 = vsub.f32 %v1421_v63, %v1423_v62  ;;  %v1363_v37 = vmul.f32 0.5, %v1362_v24 }
 0xc0b   :  { %v1206_v4 = vsub.f32 1.5, %v1205_v0 }
 0xc0c   :  { %v1429_v10 = vadd.f32 1e-05, %v1425_v1  ;;  %v1364_v41 = vsub.f32 1.5, %v1363_v37  ;;  %v1104_v1 = vmul.f32 %v2942_v50, %v2542_v56 }
 0xc0d   :  { %v1207_v58 = vmul.f32 %v2220_v39, %v1206_v4 }
 0xc0e   :  { %2223 = vrsqrt.f32 %v1429_v10  ;;  %vm1446_vm1 = vweird.f32 %v1429_v10 }
 0xc0f   :  { %v1349_v13 = vpop.xlane.xlu2 %1348  ;;  %v1458_v14 = vpop.permute.xlu1 %1457  ;;  %v1211_v6 = vsel %vm1210_vm15, %v2220_v39, %v1207_v58  ;;  %v1356_v39 = vsub.f32 %v2888_v32, %v2976_v33 }
 0xc10   :  { %v1351_v17 = vmul.f32 %v1349_v13, %v2542_v56  ;;  %v1460_v19 = vadd.f32 %v1458_v14, %v1455_v27  ;;  %v1213_v30 = vmul.f32 %v1211_v6, %v1189_v11 }
 0xc12   :  { %v1355_v8 = vsub.f32 %v1351_v17, %v1353_v15  ;;  %1470 = vrot.lane.b32.xlu2 %v1460_v19, %s2290_s21  ;;  %v1220_v21 = vmul.f32 %v2932_v35, %v1213_v30  ;;  %v1427_v35 = vsub.f32 %v2906_v20, %v1407_v29 }
 0xc14   :  { %v2224_v25 = vpop.eup %2223  ;;  %v1359_v26 = vadd.f32 1e-05, %v1355_v8  ;;  %v1227_v28 = vadd.f32 %v2930_v16, %v1220_v21  ;;  %v1365_v16 = vmul.f32 %v2222_v5, %v1364_v41 }
 0xc15   :  { %v1441_v34 = vmul.f32 %v2224_v25, %v1429_v10  ;;  %vm1447_vm0 = vweird.f32 %v2224_v25 }
 0xc16   :  { %2225 = vrsqrt.f32 %v1359_v26  ;;  %1232 = vrot.lane.b32.xlu1 %v1227_v28, %s2286_s17  ;;  %vm1448_vm2 = vmor %vm1446_vm1, %vm1447_vm0  ;;  %v1369_v54 = vsel %vm1368_vm6, %v2222_v5, %v1365_v16  ;;  %vm1376_vm8 = vweird.f32 %v1359_v26  ;;  %v1116_v5 = vmul.f32 %v1104_v1, %v1104_v1 }
 0xc17   :  { %v1442_v36 = vmul.f32 %v2224_v25, %v1441_v34  ;;  %v1384_v57 = vpop.permute.xlu2 %1383  ;;  %v1380_v60 = vmul.f32 %v1369_v54, %v1356_v39 }
 0xc19   :  { %v1443_v38 = vmul.f32 0.5, %v1442_v36 }
 0xc1a   :  { %v1390_v7 = vpop.permute.xlu0 %1389 }
 0xc1b   :  { %v1444_v46 = vsub.f32 1.5, %v1443_v38 }
 0xc1c   :  { %v2226_v42 = vpop.eup %2225 }
 0xc1d   :  { %v1371_v43 = vmul.f32 %v2226_v42, %v1359_v26  ;;  %v1445_v44 = vmul.f32 %v2224_v25, %v1444_v46  ;;  %vm1377_vm7 = vweird.f32 %v2226_v42 }
 0xc1e   :  { %vm1378_vm9 = vmor %vm1376_vm8, %vm1377_vm7 }
 0xc1f   :  { %v1372_v48 = vmul.f32 %v2226_v42, %v1371_v43  ;;  %v1449_v49 = vsel %vm1448_vm2, %v2224_v25, %v1445_v44 }
 0xc20   :  { %v1451_v53 = vmul.f32 %v1449_v49, %v1427_v35 }
 0xc21   :  { %v1373_v40 = vmul.f32 0.5, %v1372_v48 }
 0xc22   :  { %v1456_v47 = vmul.f32 %v2926_v22, %v1451_v53  ;;  %v1386_v22 = vmul.f32 %v1384_v57, %v1380_v60 }
 0xc23   :  { %v1374_v2 = vsub.f32 1.5, %v1373_v40 }
 0xc24   :  { %v1461_v45 = vadd.f32 %v1458_v14, %v1456_v47  ;;  %v1392_v63 = vadd.f32 %v1390_v7, %v1386_v22 }
 0xc25   :  { %v1375_v29 = vmul.f32 %v2226_v42, %v1374_v2 }
 0xc26   :  { %1472 = vrot.lane.b32.xlu0 %v1461_v45, %s2290_s21 }
 0xc27   :  { %v1379_v51 = vsel %vm1378_vm9, %v2226_v42, %v1375_v29 }
 0xc28   :  { %v1381_v61 = vmul.f32 %v1379_v51, %v1357_v59 }
 0xc2a   :  { %v1387_v62 = vmul.f32 %v1384_v57, %v1381_v61  ;;  %v2256_v57 = vld [vmem:[%s3269_s3 + $0x8] sm:$0xff] }
 0xc2c   :  { %v1393_v0 = vadd.f32 %v1390_v7, %v1387_v62  ;;  %v2157_v7 = vpack.i.bf16 %v2888_v32, %v2906_v20 }
 0xc2e   :  { %1466 = vrot.lane.b32.xlu1 %v1393_v0, %s2289_s20  ;;  %1464 = vrot.lane.b32.xlu0 %v1392_v63, %s2289_s20 }
 0xc3a   :  { %v1110_v33 = vpop.xlane.xlu1 %1109 }
 0xc3b   :  { %v1114_v3 = vmul.f32 %v1110_v33, %v2542_v56 }
 0xc3d   :  { %v1118_v9 = vsub.f32 %v1114_v3, %v1116_v5 }
 0xc3f   :  { %v1122_v11 = vadd.f32 1e-05, %v1118_v9 }
 0xc41   :  { %2227 = vrsqrt.f32 %v1122_v11  ;;  %vm1130_vm12 = vweird.f32 %v1122_v11 }
 0xc42   :  { %v1113_v58 = vpop.xlane.xlu1 %1112 }
 0xc43   :  { %v1115_v12 = vmul.f32 %v1113_v58, %v2542_v56 }
 0xc47   :  { %v2228_v6 = vpop.eup %2227 }
 0xc48   :  { %v1125_v15 = vmul.f32 %v2228_v6, %v1122_v11  ;;  %vm1131_vm10 = vweird.f32 %v2228_v6 }
 0xc49   :  { %vm1132_vm13 = vmor %vm1130_vm12, %vm1131_vm10 }
 0xc4a   :  { %v1126_v17 = vmul.f32 %v2228_v6, %v1125_v15 }
 0xc4c   :  { %v1127_v19 = vmul.f32 0.5, %v1126_v17 }
 0xc4e   :  { %v1128_v8 = vsub.f32 1.5, %v1127_v19 }
 0xc50   :  { %v1103_v4 = vpop.xlane.xlu2 %1102  ;;  %v1129_v24 = vmul.f32 %v2228_v6, %v1128_v8 }
 0xc51   :  { %v1105_v10 = vmul.f32 %v1103_v4, %v2542_v56  ;;  %v1120_v56 = vsub.f32 %v2888_v32, %v1104_v1 }
 0xc52   :  { %v1133_v26 = vsel %vm1132_vm13, %v2228_v6, %v1129_v24 }
 0xc53   :  { %v1117_v27 = vmul.f32 %v1105_v10, %v1105_v10  ;;  %v1144_v34 = vmul.f32 %v1133_v26, %v1120_v56  ;;  %v1121_v41 = vsub.f32 %v2906_v20, %v1105_v10 }
 0xc55   :  { %v1119_v13 = vsub.f32 %v1115_v12, %v1117_v27  ;;  %v1147_v38 = vmul.f32 %v2956_v55, %v1144_v34 }
 0xc57   :  { %v1123_v14 = vadd.f32 1e-05, %v1119_v13  ;;  %v1150_v44 = vadd.f32 %v2952_v31, %v1147_v38 }
 0xc58   :  { %v1231_v42 = vpop.permute.xlu0 %1230 }
 0xc59   :  { %2229 = vrsqrt.f32 %v1123_v14  ;;  %vm1140_vm15 = vweird.f32 %v1123_v14 }
 0xc5f   :  { %v2230_v50 = vpop.eup %2229 }
 0xc60   :  { %v1135_v30 = vmul.f32 %v2230_v50, %v1123_v14  ;;  %vm1141_vm14 = vweird.f32 %v2230_v50 }
 0xc61   :  { %vm1142_vm0 = vmor %vm1140_vm15, %vm1141_vm14 }
 0xc62   :  { %v1136_v21 = vmul.f32 %v2230_v50, %v1135_v30 }
 0xc64   :  { %v1137_v25 = vmul.f32 0.5, %v1136_v21 }
 0xc66   :  { %v1138_v28 = vsub.f32 1.5, %v1137_v25 }
 0xc68   :  { %v1139_v36 = vmul.f32 %v2230_v50, %v1138_v28 }
 0xc6a   :  { %v1143_v46 = vsel %vm1142_vm0, %v2230_v50, %v1139_v36 }
 0xc6b   :  { %v1145_v43 = vmul.f32 %v1143_v46, %v1121_v41 }
 0xc6c   :  { %v1471_v16 = vpop.permute.xlu2 %1470 }
 0xc6d   :  { %v1148_v35 = vmul.f32 %v2956_v55, %v1145_v43  ;;  %v2255_v55 = vld [vmem:[%s3269_s3] sm:$0xff]  ;;  %v2068_v43 = vld [vmem:[%s3271_s5 + $0x38] sm:$0xff] }
 0xc6f   :  { %v1151_v48 = vadd.f32 %v2952_v31, %v1148_v35 }
 0xc88   :  { %v1233_v37 = vpop.permute.xlu1 %1232 }
 0xc89   :  { %2053 = vmatpush.xpose.msk.msra.mxu2 %vm252_vm11, %v1233_v37 }
 0xc8d   :  { %2054 = vmatpush.xpose.msk.msra.mxu2 %vm252_vm11, %v1231_v42 }
 0xc90   :  { %2055 = vmatmul.msk.f32.vlgmr.msra.gmra.mxu2 %vm252_vm11, %v1150_v44  ;;  %v2067_v44 = vld [vmem:[%s3271_s5 + $0x30] sm:$0xff] }
 0xc98   :  { %v1473_v49 = vpop.permute.xlu0 %1472  ;;  %2056 = vmatmul.msk.f32.gmra.mxu2 %vm252_vm11, %v1151_v48  ;;  %v2066_v48 = vld [vmem:[%s3271_s5 + $0x28] sm:$0xff] }
 0xc99   :  { %2059 = vmatpush.xpose.msk.msrb.mxu2 %vm252_vm11, %v1473_v49  ;;  %v2065_v49 = vld [vmem:[%s3271_s5 + $0x20] sm:$0xff] }
 0xc9d   :  { %2060 = vmatpush.xpose.msk.msrb.mxu2 %vm252_vm11, %v1471_v16 }
 0xca0   :  { %v1465_v53 = vpop.permute.xlu0 %1464  ;;  %v1467_v40 = vpop.permute.xlu1 %1466 }
 0xca1   :  { %2061 = vmatmul.msk.f32.vlgmr.msrb.gmra.mxu2 %vm252_vm11, %v1465_v53 }
 0xca2   :  { %2069 = vmatpush.xpose.msk.msra.mxu2 %vm111_vm3, %v2068_v43 }
 0xca6   :  { %2070 = vmatpush.xpose.msk.msra.mxu2 %vm111_vm3, %v2067_v44 }
 0xca9   :  { %2062 = vmatmul.msk.f32.gmra.mxu2 %vm252_vm11, %v1467_v40 }
 0xcaa   :  { %2071 = vmatpush.xpose.msk.msra.mxu2 %vm111_vm3, %v2066_v48 }
 0xcae   :  { %2072 = vmatpush.xpose.msk.msra.mxu2 %vm111_vm3, %v2065_v49 }
 0xd13   :  { %v1261_v47 = vpop.f32.mrf.mxu2 }
 0xd14   :  { %v1262_v31 = vadd.f32 %v2255_v55, %v1261_v47 }
 0xd16   :  { %v1267_v2 = vsel %vm252_vm11, %v1262_v31, -inf }
 0xd17   :  { %1268 = vmax.xlane.f32.xlu2 %v1267_v2 }
 0xd1b   :  { %v1264_v54 = vpop.f32.mrf.mxu2 }
 0xd1c   :  { %v1265_v59 = vadd.f32 %v2256_v57, %v1264_v54  ;;  %v2091_v54 = vld [vmem:[%s3272_s6 + $0xf8] sm:$0xff] }
 0xd1e   :  { %v1270_v61 = vsel %vm252_vm11, %v1265_v59, -inf }
 0xd24   :  { %v1499_v39 = vpop.f32.mrf.mxu2 }
 0xd25   :  { %v1500_v45 = vadd.f32 %v2255_v55, %v1499_v39  ;;  %v2090_v39 = vld [vmem:[%s3272_s6 + $0xf0] sm:$0xff] }
 0xd27   :  { %v1505_v29 = vsel %vm252_vm11, %v1500_v45, -inf }
 0xd28   :  { %1506 = vmax.xlane.f32.xlu0 %v1505_v29  ;;  %v2088_v29 = vld [vmem:[%s3272_s6 + $0xe0] sm:$0xff] }
 0xd2c   :  { %v1502_v60 = vpop.f32.mrf.mxu2 }
 0xd2d   :  { %v1503_v51 = vadd.f32 %v2256_v57, %v1502_v60  ;;  %v2087_v57 = vld [vmem:[%s3272_s6 + $0xd8] sm:$0xff] }
 0xd2f   :  { %v1508_v22 = vsel %vm252_vm11, %v1503_v51, -inf }
 0xd30   :  { %1271 = vmax.xlane.f32.xlu0 %v1270_v61  ;;  %1509 = vmax.xlane.f32.xlu1 %v1508_v22 }
 0xd44   :  { %2158 = vrot.lane.b32.xlu0 %v2157_v7, %s2291_s24 }
 0xd8a   :  { %v1269_v62 = vpop.xlane.xlu2 %1268 }
 0xd8b   :  { %v1273_v33 = vsub.f32 %v1262_v31, %v1269_v62 }
 0xd8d   :  { %v1275_v3 = vmul.f32 1.442695, %v1273_v33 }
 0xd9b   :  { %v1507_v63 = vpop.xlane.xlu0 %1506 }
 0xd9c   :  { %v1511_v0 = vsub.f32 %v1500_v45, %v1507_v63  ;;  %v2089_v45 = vld [vmem:[%s3272_s6 + $0xe8] sm:$0xff]  ;;  %v2084_v63 = vld [vmem:[%s3272_s6 + $0xc0] sm:$0xff] }
 0xd9e   :  { %v1513_v1 = vmul.f32 1.442695, %v1511_v0 }
 0xda0   :  { %2231 = vpow2.f32 %v1513_v1 }
 0xda1   :  { %2233 = vpow2.f32 %v1275_v3 }
 0xda3   :  { %v1272_v4 = vpop.xlane.xlu0 %1271  ;;  %v1510_v5 = vpop.xlane.xlu1 %1509 }
 0xda4   :  { %v1512_v9 = vsub.f32 %v1503_v51, %v1510_v5  ;;  %v1274_v58 = vsub.f32 %v1265_v59, %v1272_v4  ;;  %v2086_v51 = vld [vmem:[%s3272_s6 + $0xd0] sm:$0xff]  ;;  %v2083_v4 = vld [vmem:[%s3272_s6 + $0xb8] sm:$0xff]  ;;  %v2081_v5 = vld [vmem:[%s3272_s6 + $0xa8] sm:$0xff] }
 0xda6   :  { %v2232_v10 = vpop.eup %2231  ;;  %v1515_v11 = vmul.f32 1.442695, %v1512_v9  ;;  %v1277_v32 = vmul.f32 1.442695, %v1274_v58  ;;  %v2080_v9 = vld [vmem:[%s3272_s6 + $0xa0] sm:$0xff]  ;;  %v2078_v58 = vld [vmem:[%s3272_s6 + $0x90] sm:$0xff] }
 0xda7   :  { %v1517_v27 = vsel %vm252_vm11, %v2232_v10, 0.0  ;;  %v2234_v20 = vpop.eup %2233 }
 0xda8   :  { %1518 = vadd.xlane.f32.xlu1 %v1517_v27  ;;  %2235 = vpow2.f32 %v1515_v11  ;;  %v1279_v13 = vsel %vm252_vm11, %v2234_v20, 0.0  ;;  %v2077_v11 = vld [vmem:[%s3272_s6 + $0x88] sm:$0xff]  ;;  %v2076_v27 = vld [vmem:[%s3272_s6 + $0x80] sm:$0xff] }
 0xda9   :  { %2237 = vpow2.f32 %v1277_v32 }
 0xdae   :  { %v2236_v12 = vpop.eup %2235 }
 0xdaf   :  { %v1520_v14 = vsel %vm252_vm11, %v2236_v12, 0.0  ;;  %v2238_v6 = vpop.eup %2237 }
 0xdb0   :  { %1280 = vadd.xlane.f32.xlu1 %v1279_v13  ;;  %1521 = vadd.xlane.f32.xlu2 %v1520_v14  ;;  %v1282_v17 = vsel %vm252_vm11, %v2238_v6, 0.0 }
 0xdb6   :  { %v2159_v15 = vpop.permute.xlu0 %2158 }
 0xdb7   :  { %v2160_v50 = vunpack.i.l.bf16 %v2159_v15  ;;  %v2161_v19 = vunpack.i.h.bf16 %v2159_v15 }
 0xdb8   :  { %1283 = vadd.xlane.f32.xlu1 %v1282_v17 }
 0xdb9   :  { %1553 = vmatpush.msrb.mxu1 %v2160_v50 }
 0xdbb   :  { %1554 = vmatpush.msrb.mxu1 %v2161_v19  ;;  %v2113_v19 = vld [vmem:[%s3273_s7 + $0x38] sm:$0xff] }
 0xdbd   :  { %2092 = vmatpush.xpose.msk.msra.mxu1 %vm111_vm3, %v2091_v54 }
 0xdc1   :  { %2093 = vmatpush.xpose.msk.msra.mxu1 %vm111_vm3, %v2090_v39 }
 0xdc5   :  { %2094 = vmatpush.xpose.msk.msra.mxu1 %vm111_vm3, %v2089_v45 }
 0xdc8   :  { %2163 = vrot.lane.b32.xlu2 %v2157_v7, %s2293_s1 }
 0xdc9   :  { %2095 = vmatpush.xpose.msk.msra.mxu1 %vm111_vm3, %v2088_v29 }
 0xdcd   :  { %2096 = vmatpush.xpose.msk.msra.mxu1 %vm111_vm3, %v2087_v57 }
 0xdd1   :  { %2097 = vmatpush.xpose.msk.msra.mxu1 %vm111_vm3, %v2086_v51 }
 0xe1b   :  { %v1519_v30 = vpop.xlane.xlu1 %1518 }
 0xe1c   :  { %2239 = vrcp.f32 %v1519_v30 }
 0xe22   :  { %v2240_v8 = vpop.eup %2239 }
 0xe23   :  { %v1281_v21 = vpop.xlane.xlu1 %1280  ;;  %v1525_v24 = vmul.f32 %v2240_v8, %v2232_v10  ;;  %v1522_v25 = vpop.xlane.xlu2 %1521  ;;  %v2079_v10 = vld [vmem:[%s3272_s6 + $0x98] sm:$0xff] }
 0xe24   :  { %2241 = vrcp.f32 %v1522_v25 }
 0xe25   :  { %2063 = vmatmul.msk.f32.vlgmr.msrb.gmra.mxu1 %vm252_vm11, %v1525_v24  ;;  %2243 = vrcp.f32 %v1281_v21  ;;  %v2112_v24 = vld [vmem:[%s3273_s7 + $0x30] sm:$0xff] }
 0xe2a   :  { %v2242_v26 = vpop.eup %2241 }
 0xe2b   :  { %v2164_v28 = vpop.permute.xlu2 %2163  ;;  %v1284_v56 = vpop.xlane.xlu1 %1283  ;;  %v1526_v34 = vmul.f32 %v2242_v26, %v2236_v12 }
 0xe2c   :  { %v2244_v36 = vpop.eup %2243  ;;  %v2165_v37 = vunpack.i.l.bf16 %v2164_v28  ;;  %v2166_v38 = vunpack.i.h.bf16 %v2164_v28  ;;  %2245 = vrcp.f32 %v1284_v56 }
 0xe2d   :  { %2064 = vmatmul.msk.f32.gmra.mxu1 %vm252_vm11, %v1526_v34  ;;  %v1287_v46 = vmul.f32 %v2244_v36, %v2234_v20  ;;  %v2111_v34 = vld [vmem:[%s3273_s7 + $0x28] sm:$0xff] }
 0xe2e   :  { %1315 = vmatpush.msra.mxu3 %v2165_v37 }
 0xe30   :  { %1316 = vmatpush.msra.mxu3 %v2166_v38  ;;  %v2075_v38 = vld [vmem:[%s3277_s11 + $0x2] sm:$0x3] }
 0xe31   :  { %2057 = vmatmul.msk.f32.vlgmr.msra.gmra.mxu3 %vm252_vm11, %v1287_v46  ;;  %v1670_v44 = vperm.slane %v2075_v38, 0 }
 0xe32   :  { %v2246_v41 = vpop.eup %2245  ;;  %1789 = vmatpush.xpose.msrb.mxu3 %v2113_v19  ;;  %v1857_v19 = vld [vmem:[%s3279_s13] sm:$0xff] }
 0xe33   :  { %v1288_v42 = vmul.f32 %v2246_v41, %v2238_v6 }
 0xe36   :  { %1790 = vmatpush.xpose.msrb.mxu3 %v2112_v24 }
 0xe39   :  { %2058 = vmatmul.msk.f32.gmra.mxu3 %vm252_vm11, %v1288_v42 }
 0xe3a   :  { %1791 = vmatpush.xpose.msrb.mxu3 %v2111_v34 }
 0xea2   :  { %v1556_v35 = vpop.f32.mrf.mxu1 }
 0xea3   :  { %1564 = vrot.lane.b32.xlu0 %v1556_v35, %s2292_s25 }
 0xeaa   :  { %v1559_v16 = vpop.f32.mrf.mxu1 }
 0xeab   :  { %1566 = vrot.lane.b32.xlu1 %v1559_v16, %s2292_s25 }
 0xeb4   :  { %v1318_v53 = vpop.f32.mrf.mxu3 }
 0xebc   :  { %v1321_v55 = vpop.f32.mrf.mxu3 }
 0xf15   :  { %v1565_v40 = vpop.permute.xlu0 %1564 }
 0xf16   :  { %v1570_v47 = vsel %vm252_vm11, %v1318_v53, %v1565_v40  ;;  %v1673_v53 = vperm.slane %v2075_v38, 1 }
 0xf17   :  { %2073 = vmatmul.msk.f32.vlgmr.msra.gmra.mxu2 %vm111_vm3, %v1570_v47 }
 0xf1d   :  { %v1567_v31 = vpop.permute.xlu1 %1566 }
 0xf1e   :  { %v1571_v2 = vsel %vm252_vm11, %v1321_v55, %v1567_v31 }
 0xf1f   :  { %2074 = vmatmul.msk.f32.gmra.mxu2 %vm111_vm3, %v1571_v2 }
 0xf9a   :  { %v1612_v59 = vpop.f32.mrf.mxu2 }
 0xf9b   :  { %v3090_v60 = vadd.f32 %v1612_v59, %v2802_v18  ;;  %v2085_v18 = vld [vmem:[%s3272_s6 + $0xc8] sm:$0xff]  ;;  %v2110_v59 = vld [vmem:[%s3273_s7 + $0x20] sm:$0xff] }
 0xf9c   :  { %2098 = vmatpush.xpose.msk.msra.mxu1 %vm111_vm3, %v2085_v18  ;;  %1792 = vmatpush.xpose.msrb.mxu3 %v2110_v59  ;;  %v1872_v18 = vld [vmem:[%s3279_s13 + $0x78] sm:$0xff] }
 0xf9d   :  { %v1622_v61 = vsel %vm111_vm3, %v3090_v60, 0.0  ;;  %v1630_v22 = vmul.f32 %v3090_v60, %v3090_v60  ;;  %2114 = vmatpush.xpose.msk.msrb.mxu0 %vm111_vm3, %v1872_v18 }
 0xf9e   :  { %1623 = vadd.xlane.f32.xlu0 %v1622_v61 }
 0xf9f   :  { %v1632_v7 = vsel %vm111_vm3, %v1630_v22, 0.0 }
 0xfa0   :  { %1633 = vadd.xlane.f32.xlu2 %v1632_v7  ;;  %2099 = vmatpush.xpose.msk.msra.mxu1 %vm111_vm3, %v2084_v63  ;;  %v1870_v63 = vld [vmem:[%s3279_s13 + $0x68] sm:$0xff] }
 0xfa2   :  { %v1615_v62 = vpop.f32.mrf.mxu2 }
 0xfa3   :  { %v3109_v0 = vadd.f32 %v1615_v62, %v2822_v23  ;;  %v2082_v23 = vld [vmem:[%s3272_s6 + $0xb0] sm:$0xff] }
 0xfa4   :  { %2100 = vmatpush.xpose.msk.msra.mxu1 %vm111_vm3, %v2083_v4  ;;  %v1871_v62 = vld [vmem:[%s3279_s13 + $0x70] sm:$0xff] }
 0xfa5   :  { %v1625_v33 = vsel %vm111_vm3, %v3109_v0, 0.0  ;;  %v1631_v1 = vmul.f32 %v3109_v0, %v3109_v0  ;;  %2115 = vmatpush.xpose.msk.msrb.mxu0 %vm111_vm3, %v1871_v62 }
 0xfa6   :  { %1626 = vadd.xlane.f32.xlu1 %v1625_v33  ;;  %v1869_v33 = vld [vmem:[%s3279_s13 + $0x60] sm:$0xff] }
 0xfa7   :  { %v1635_v3 = vsel %vm111_vm3, %v1631_v1, 0.0  ;;  %v1868_v1 = vld [vmem:[%s3279_s13 + $0x58] sm:$0xff] }
 0xfa8   :  { %1636 = vadd.xlane.f32.xlu0 %v1635_v3  ;;  %2101 = vmatpush.xpose.msk.msra.mxu1 %vm111_vm3, %v2082_v23  ;;  %v1867_v23 = vld [vmem:[%s3279_s13 + $0x50] sm:$0xff] }
 0xfa9   :  { %2116 = vmatpush.xpose.msk.msrb.mxu0 %vm111_vm3, %v1870_v63 }
 0xfac   :  { %2102 = vmatpush.xpose.msk.msra.mxu1 %vm111_vm3, %v2081_v5 }
 0xfad   :  { %2117 = vmatpush.xpose.msk.msrb.mxu0 %vm111_vm3, %v1869_v33 }
 0xfb0   :  { %2103 = vmatpush.xpose.msk.msra.mxu1 %vm111_vm3, %v2080_v9 }
 0xfb1   :  { %2118 = vmatpush.xpose.msk.msrb.mxu0 %vm111_vm3, %v1868_v1 }
 0xfb4   :  { %2104 = vmatpush.xpose.msk.msra.mxu1 %vm111_vm3, %v2079_v10 }
 0xfb5   :  { %2119 = vmatpush.xpose.msk.msrb.mxu0 %vm111_vm3, %v1867_v23 }
 0xfb8   :  { %2105 = vmatpush.xpose.msk.msra.mxu1 %vm111_vm3, %v2078_v58 }
 0xfbc   :  { %2106 = vmatpush.xpose.msk.msra.mxu1 %vm111_vm3, %v2077_v11  ;;  %v1865_v11 = vld [vmem:[%s3279_s13 + $0x40] sm:$0xff] }
 0xfc0   :  { %2107 = vmatpush.xpose.msk.msra.mxu1 %vm111_vm3, %v2076_v27 }
0x1011   :  { %v1624_v32 = vpop.xlane.xlu0 %1623 }
0x1012   :  { %v1628_v20 = vmul.f32 %v1624_v32, %v2478_v52 }
0x1013   :  { %v1634_v12 = vpop.xlane.xlu2 %1633 }
0x1014   :  { %v1640_v13 = vmul.f32 %v1628_v20, %v1628_v20  ;;  %v1638_v14 = vmul.f32 %v1634_v12, %v2478_v52  ;;  %v1644_v43 = vsub.f32 %v3090_v60, %v1628_v20 }
0x1016   :  { %v1642_v6 = vsub.f32 %v1638_v14, %v1640_v13  ;;  %v1864_v13 = vld [vmem:[%s3279_s13 + $0x38] sm:$0xff]  ;;  %v1862_v14 = vld [vmem:[%s3279_s13 + $0x28] sm:$0xff] }
0x1018   :  { %v1646_v15 = vadd.f32 1e-05, %v1642_v6  ;;  %v1861_v6 = vld [vmem:[%s3279_s13 + $0x20] sm:$0xff] }
0x1019   :  { %v1627_v17 = vpop.xlane.xlu1 %1626 }
0x101a   :  { %2247 = vrsqrt.f32 %v1646_v15  ;;  %v1629_v50 = vmul.f32 %v1627_v17, %v2478_v52  ;;  %vm1654_vm1 = vweird.f32 %v1646_v15  ;;  %v1859_v17 = vld [vmem:[%s3279_s13 + $0x10] sm:$0xff] }
0x101b   :  { %v1637_v30 = vpop.xlane.xlu0 %1636 }
0x101c   :  { %v1641_v8 = vmul.f32 %v1629_v50, %v1629_v50  ;;  %v1639_v21 = vmul.f32 %v1637_v30, %v2478_v52  ;;  %v1645_v54 = vsub.f32 %v3109_v0, %v1629_v50  ;;  %v1858_v50 = vld [vmem:[%s3279_s13 + $0x8] sm:$0xff] }
0x101e   :  { %v1643_v25 = vsub.f32 %v1639_v21, %v1641_v8 }
0x1020   :  { %v2248_v26 = vpop.eup %2247  ;;  %v1647_v56 = vadd.f32 1e-05, %v1643_v25 }
0x1021   :  { %v1649_v28 = vmul.f32 %v2248_v26, %v1646_v15  ;;  %vm1655_vm11 = vweird.f32 %v2248_v26  ;;  %v1860_v15 = vld [vmem:[%s3279_s13 + $0x18] sm:$0xff] }
0x1022   :  { %2249 = vrsqrt.f32 %v1647_v56  ;;  %vm1656_vm2 = vmor %vm1654_vm1, %vm1655_vm11  ;;  %vm1664_vm5 = vweird.f32 %v1647_v56 }
0x1023   :  { %v1650_v36 = vmul.f32 %v2248_v26, %v1649_v28 }
0x1025   :  { %v1651_v37 = vmul.f32 0.5, %v1650_v36 }
0x1027   :  { %v1652_v46 = vsub.f32 1.5, %v1651_v37 }
0x1028   :  { %v2250_v41 = vpop.eup %2249 }
0x1029   :  { %v1653_v42 = vmul.f32 %v2248_v26, %v1652_v46  ;;  %v1659_v35 = vmul.f32 %v2250_v41, %v1647_v56  ;;  %vm1665_vm4 = vweird.f32 %v2250_v41 }
0x102a   :  { %vm1666_vm6 = vmor %vm1664_vm5, %vm1665_vm4 }
0x102b   :  { %v1657_v48 = vsel %vm1656_vm2, %v2248_v26, %v1653_v42  ;;  %v1660_v16 = vmul.f32 %v2250_v41, %v1659_v35 }
0x102c   :  { %v1668_v49 = vmul.f32 %v1657_v48, %v1644_v43 }
0x102d   :  { %v1661_v47 = vmul.f32 0.5, %v1660_v16 }
0x102e   :  { %v1671_v40 = vmul.f32 %v1670_v44, %v1668_v49  ;;  %v1802_v49 = vld [vmem:[%s3278_s12] sm:$0x3]  ;;  %s2294_s12 = smov [#allocation2]  }
0x102f   :  { %v1662_v55 = vsub.f32 1.5, %v1661_v47  ;;  %v1851_v47 = vperm.slane %v1802_v49, 0  ;;  %s1956_s1 = sshll.u32 %s2294_s12, 4  ;;  %s1957_s1 = int_to_ptr.vmem [resolvable:$true] %s1956_s1 }
0x1030   :  { %v1674_v31 = vadd.f32 %v1673_v53, %v1671_v40 }
0x1031   :  { %v1663_v2 = vmul.f32 %v2250_v41, %v1662_v55 }
0x1032   :  { %2108 = vmatmul.msk.f32.vlgmr.msra.gmra.mxu1 %vm111_vm3, %v1674_v31 }
0x1033   :  { %v1667_v39 = vsel %vm1666_vm6, %v2250_v41, %v1663_v2 }
0x1034   :  { %v1669_v45 = vmul.f32 %v1667_v39, %v1645_v54  ;;  %v1854_v54 = vperm.slane %v1802_v49, 1 }
0x1036   :  { %v1672_v29 = vmul.f32 %v1670_v44, %v1669_v45 }
0x1038   :  { %v1675_v57 = vadd.f32 %v1673_v53, %v1672_v29 }
0x103a   :  { %2109 = vmatmul.msk.f32.gmra.mxu1 %vm111_vm3, %v1675_v57 }
0x10af   :  { %v1764_v51 = vpop.f32.mrf.mxu1 }
0x10b0   :  { %v1770_v61 = vmax.f32 %v1764_v51, 0.0 }
0x10b2   :  { %1793 = vmatmul.f32.vlgmr.msrb.gmra.mxu3 %v1770_v61 }
0x10b7   :  { %v1767_v22 = vpop.f32.mrf.mxu1 }
0x10b8   :  { %v1771_v7 = vmax.f32 %v1767_v22, 0.0 }
0x10ba   :  { %1796 = vmatmul.f32.gmra.mxu3 %v1771_v7 }
0x1135   :  { %v1794_v3 = vpop.f32.mrf.mxu3 }
0x1136   :  { %v3193_v4 = vadd.f32 %v1794_v3, %v3090_v60  ;;  %v1866_v60 = vld [vmem:[%s3279_s13 + $0x48] sm:$0xff] }
0x1137   :  { %2120 = vmatpush.xpose.msk.msrb.mxu0 %vm111_vm3, %v1866_v60 }
0x1138   :  { %v1803_v5 = vsel %vm111_vm3, %v3193_v4, 0.0  ;;  %v1811_v9 = vmul.f32 %v3193_v4, %v3193_v4 }
0x1139   :  { %1804 = vadd.xlane.f32.xlu2 %v1803_v5 }
0x113a   :  { %v1813_v10 = vsel %vm111_vm3, %v1811_v9, 0.0 }
0x113b   :  { %1814 = vadd.xlane.f32.xlu0 %v1813_v10  ;;  %2121 = vmatpush.xpose.msk.msrb.mxu0 %vm111_vm3, %v1865_v11 }
0x113d   :  { %v1797_v58 = vpop.f32.mrf.mxu3 }
0x113e   :  { %v3212_v27 = vadd.f32 %v1797_v58, %v3109_v0  ;;  %v1863_v0 = vld [vmem:[%s3279_s13 + $0x30] sm:$0xff] }
0x113f   :  { %2122 = vmatpush.xpose.msk.msrb.mxu0 %vm111_vm3, %v1864_v13 }
0x1140   :  { %v1806_v32 = vsel %vm111_vm3, %v3212_v27, 0.0  ;;  %v1812_v20 = vmul.f32 %v3212_v27, %v3212_v27 }
0x1141   :  { %1807 = vadd.xlane.f32.xlu2 %v1806_v32 }
0x1142   :  { %v1816_v12 = vsel %vm111_vm3, %v1812_v20, 0.0 }
0x1143   :  { %1817 = vadd.xlane.f32.xlu0 %v1816_v12  ;;  %2123 = vmatpush.xpose.msk.msrb.mxu0 %vm111_vm3, %v1863_v0 }
0x1147   :  { %2124 = vmatpush.xpose.msk.msrb.mxu0 %vm111_vm3, %v1862_v14 }
0x114b   :  { %2125 = vmatpush.xpose.msk.msrb.mxu0 %vm111_vm3, %v1861_v6 }
0x114f   :  { %2126 = vmatpush.xpose.msk.msrb.mxu0 %vm111_vm3, %v1860_v15 }
0x1153   :  { %2127 = vmatpush.xpose.msk.msrb.mxu0 %vm111_vm3, %v1859_v17 }
0x1157   :  { %2128 = vmatpush.xpose.msk.msrb.mxu0 %vm111_vm3, %v1858_v50 }
0x115b   :  { %2129 = vmatpush.xpose.msk.msrb.mxu0 %vm111_vm3, %v1857_v19 }
0x11ac   :  { %v1805_v30 = vpop.xlane.xlu2 %1804 }
0x11ad   :  { %v1809_v8 = vmul.f32 %v1805_v30, %v2478_v52 }
0x11ae   :  { %v1815_v21 = vpop.xlane.xlu0 %1814 }
0x11af   :  { %v1821_v24 = vmul.f32 %v1809_v8, %v1809_v8  ;;  %v1819_v25 = vmul.f32 %v1815_v21, %v2478_v52  ;;  %v1825_v40 = vsub.f32 %v3193_v4, %v1809_v8 }
0x11b1   :  { %v1823_v26 = vsub.f32 %v1819_v25, %v1821_v24 }
0x11b3   :  { %v1827_v28 = vadd.f32 1e-05, %v1823_v26 }
0x11b4   :  { %v1808_v56 = vpop.xlane.xlu2 %1807 }
0x11b5   :  { %2251 = vrsqrt.f32 %v1827_v28  ;;  %v1810_v34 = vmul.f32 %v1808_v56, %v2478_v52  ;;  %vm1835_vm8 = vweird.f32 %v1827_v28 }
0x11b6   :  { %v1818_v36 = vpop.xlane.xlu0 %1817 }
0x11b7   :  { %v1822_v37 = vmul.f32 %v1810_v34, %v1810_v34  ;;  %v1820_v38 = vmul.f32 %v1818_v36, %v2478_v52  ;;  %v1826_v51 = vsub.f32 %v3212_v27, %v1810_v34 }
0x11b9   :  { %v1824_v46 = vsub.f32 %v1820_v38, %v1822_v37 }
0x11bb   :  { %v2252_v41 = vpop.eup %2251  ;;  %v1828_v43 = vadd.f32 1e-05, %v1824_v46 }
0x11bc   :  { %v1830_v42 = vmul.f32 %v2252_v41, %v1827_v28  ;;  %vm1836_vm7 = vweird.f32 %v2252_v41 }
0x11bd   :  { %2253 = vrsqrt.f32 %v1828_v43  ;;  %vm1837_vm9 = vmor %vm1835_vm8, %vm1836_vm7  ;;  %vm1845_vm12 = vweird.f32 %v1828_v43 }
0x11be   :  { %v1831_v44 = vmul.f32 %v2252_v41, %v1830_v42 }
0x11c0   :  { %v1832_v35 = vmul.f32 0.5, %v1831_v44 }
0x11c2   :  { %v1833_v48 = vsub.f32 1.5, %v1832_v35 }
0x11c3   :  { %v2254_v16 = vpop.eup %2253 }
0x11c4   :  { %v1834_v53 = vmul.f32 %v2252_v41, %v1833_v48  ;;  %v1840_v52 = vmul.f32 %v2254_v16, %v1828_v43  ;;  %vm1846_vm10 = vweird.f32 %v2254_v16 }
0x11c5   :  { %vm1847_vm13 = vmor %vm1845_vm12, %vm1846_vm10 }
0x11c6   :  { %v1838_v55 = vsel %vm1837_vm9, %v2252_v41, %v1834_v53  ;;  %v1841_v31 = vmul.f32 %v2254_v16, %v1840_v52 }
0x11c7   :  { %v1849_v2 = vmul.f32 %v1838_v55, %v1825_v40 }
0x11c8   :  { %v1842_v39 = vmul.f32 0.5, %v1841_v31 }
0x11c9   :  { %v1852_v45 = vmul.f32 %v1851_v47, %v1849_v2 }
0x11ca   :  { %v1843_v29 = vsub.f32 1.5, %v1842_v39 }
0x11cb   :  { %v1855_v57 = vadd.f32 %v1854_v54, %v1852_v45 }
0x11cc   :  { %v1844_v59 = vmul.f32 %v2254_v16, %v1843_v29 }
0x11cd   :  { %2130 = vmatmul.msk.f32.vlgmr.msrb.gmra.mxu0 %vm111_vm3, %v1855_v57 }
0x11ce   :  { %v1848_v61 = vsel %vm1847_vm13, %v2254_v16, %v1844_v59 }
0x11cf   :  { %v1850_v22 = vmul.f32 %v1848_v61, %v1826_v51 }
0x11d1   :  { %v1853_v7 = vmul.f32 %v1851_v47, %v1850_v22 }
0x11d3   :  { %v1856_v18 = vadd.f32 %v1854_v54, %v1853_v7 }
0x11d5   :  { %2131 = vmatmul.msk.f32.gmra.mxu0 %vm111_vm3, %v1856_v18 }
0x124a   :  { %v1944_v62 = vpop.f32.mrf.mxu0 }
0x124b   :  { %1950 = vst [vmem:[#allocation2] sm:$0xff] %v1944_v62 }
0x1252   :  { %v1947_v63 = vpop.f32.mrf.mxu0 }
0x1253   :  { %1951 = vst [vmem:[#allocation2 + $0x8] sm:$0xff] %v1947_v63 }
0x1254   :  { %1964 = dma.vmem_to_hbm [thread:$0]  %s1957_s1, 256, %s1959_s22, [#allocation3], %s2295_s23, %s2295_s23, %s2296_s26  }
0x1255   :  { %2281 = dma.done.wait [#allocation3], 256  }
0x1256   :  { %2282 = vsyncadd [#allocation3], 4294967040 }
0x1257   :  { %1969 = vsyncpa [#allocation3], 1 }

</bundles_post_ra>
